<compile_context>
chip_gen: v6e
topology: v6e:2x2x1
jax: 0.10.0
libtpu: 0.0.40
codegen_flags: <defaults>
</compile_context>

<pallas_src>
import math
import functools

import jax
import jax.numpy as jnp
from jax.experimental import pallas as pl
from jax.experimental.pallas import tpu as pltpu

EPS = 1e-6
F32 = jnp.float32
BF16 = jnp.bfloat16


def _layernorm(x, g, b):
    mu = jnp.mean(x, axis=-1, keepdims=True)
    var = jnp.mean(jnp.square(x - mu), axis=-1, keepdims=True)
    return (x - mu) * jax.lax.rsqrt(var + EPS) * g + b


# -----------------------------------------------------------------------------
# Fused kernel: grid = (batch, layer). Activation persists in VMEM scratch across
# the layer axis; per-layer weights are streamed by their BlockSpecs.
# -----------------------------------------------------------------------------
def linkage_former_kernel(ids_ref, bias_ref, rest_ref,
                          lut_ref, wbr_ref, pos_ref, g0_ref, be0_ref,
                          wq_ref, wk_ref, wv_ref, wo_ref, bo_ref, g1_ref, be1_ref,
                          w1_ref, b1_ref, w2_ref, b2_ref, g2_ref, be2_ref,
                          wm1_ref, wm2_ref, wm3_ref,
                          out_ref, x_ref,
                          *, n_head, d_k, d_v, n_amino, scale_emb):
    layer = pl.program_id(1)
    n_layers = pl.num_programs(1)
    S, D = pos_ref.shape

    # ------------- prologue: only at layer 0 (per batch element) -------------
    @pl.when(layer == 0)
    def _prologue():
        ids = ids_ref[0]                                              # (S, 1) int32
        onehot = (ids == jax.lax.broadcasted_iota(jnp.int32, (S, n_amino), 1)).astype(F32)
        # lut = emb_table @ wB[:d_amino] + bB  (folded in the wrapper)
        x = (jnp.dot(onehot, lut_ref[...], preferred_element_type=F32)
             + jnp.dot(rest_ref[0], wbr_ref[...], preferred_element_type=F32))
        x = x + pos_ref[...]                       # Encoder_Embedding: X * 1.0 + embds
        if scale_emb:
            x = x * (float(D) ** 0.5)              # scale AFTER positional add (reference order)
        # nn.Dropout layers are identity at inference.
        x_ref[...] = _layernorm(x, g0_ref[...], be0_ref[...])

    # ------------- encoder layer `layer` (weights streamed per step) ---------
    x = x_ref[...]                                                    # (S, D) f32
    xb = x.astype(BF16)
    bias = bias_ref[0]                                                # (1, S) additive mask
    scale = 1.0 / math.sqrt(d_k)

    # Flat, lane-dense projections (bf16 operands, f32 accumulation).
    q = jnp.dot(xb, wq_ref[0], preferred_element_type=F32).reshape(S, n_head, d_k)
    k = jnp.dot(xb, wk_ref[0], preferred_element_type=F32).reshape(S, n_head, d_k)
    v = jnp.dot(xb, wv_ref[0], preferred_element_type=F32).reshape(S, n_head, d_v)

    s = jnp.einsum('qhd,khd->hqk', q.astype(BF16), k.astype(BF16),
                   preferred_element_type=F32) * scale
    s = s + bias[None]                                                # mask padded keys
    s = s - jnp.max(s, axis=-1, keepdims=True)                        # f32 softmax
    p = jnp.exp(s)
    p = p / jnp.sum(p, axis=-1, keepdims=True)                        # exact (correctness fb)

    o = jnp.einsum('hqk,khd->qhd', p.astype(BF16), v.astype(BF16),
                   preferred_element_type=F32)
    o = o.reshape(S, n_head * d_v).astype(BF16)                       # single head-merge relayout
    attn_out = jnp.dot(o, wo_ref[0], preferred_element_type=F32) + bo_ref[0]
    x = _layernorm(attn_out + x, g1_ref[0], be1_ref[0])

    h1 = jnp.maximum(
        jnp.dot(x.astype(BF16), w1_ref[0], preferred_element_type=F32) + b1_ref[0], 0.0)
    h2 = jnp.dot(h1.astype(BF16), w2_ref[0], preferred_element_type=F32) + b2_ref[0]
    x = _layernorm(h2 + x, g2_ref[0], be2_ref[0])
    x_ref[...] = x

    # ------------- epilogue: mlp_head at the last layer ----------------------
    @pl.when(layer == n_layers - 1)
    def _epilogue():
        m = jnp.dot(x.astype(BF16), wm1_ref[...], preferred_element_type=F32)
        m = jnp.dot(m.astype(BF16), wm2_ref[...], preferred_element_type=F32)
        out_ref[0] = jnp.dot(m.astype(BF16), wm3_ref[...], preferred_element_type=F32)


# -----------------------------------------------------------------------------
# Wrapper: builds BlockSpecs, folds the embedding lookup, casts matmul weights to
# bf16, sizes the VMEM limit, and launches one pallas_call.
# -----------------------------------------------------------------------------
def linkage_former_forward(src_seq, params, *, n_head, d_k, d_v, pad_idx=0,
                           scale_emb=True):
    B, S, dims = src_seq.shape
    assert dims == 13
    n_amino, d_amino = params['emb_table'].shape
    D = params['wB'].shape[1]
    L = params['wq'].shape[0]
    d_inner = params['w1'].shape[2]

    ids = src_seq[:, :, 0].astype(jnp.int32)                          # (B, S)
    ids3 = ids[:, :, None]                                            # (B, S, 1)
    rest = src_seq[:, :, 1:].astype(F32)                              # (B, S, 12)
    # get_pad_mask -> additive bias per key (0 attend, -1e9 masked)
    bias = jnp.where(ids != pad_idx, 0.0, -1e9).astype(F32)[:, None, :]   # (B, 1, S)

    # Fold Embedding lookup, linearB's amino half and its bias into one lookup matrix.
    lut = (params['emb_table'] @ params['wB'][:d_amino] + params['bB']).astype(F32)
    wbr = params['wB'][d_amino:].astype(F32)                          # (12, D)
    pos = params['pos_emb'][0, :S, :].astype(F32)                     # (S, D)

    bf = lambda a: a.astype(BF16)
    # Layer-independent operands: resident in VMEM for the whole grid.
    const_args = [lut, wbr, pos, params['g0'], params['be0']]
    # Per-layer operands: streamed along the layer grid axis (auto double-buffered).
    layer_args = [bf(params['wq']), bf(params['wk']), bf(params['wv']),
                  bf(params['wo']), params['bo'], params['g1'], params['be1'],
                  bf(params['w1']), params['b1'], bf(params['w2']), params['b2'],
                  params['g2'], params['be2']]
    head_args = [bf(params['wm1']), bf(params['wm2']), bf(params['wm3'])]

    def batch_spec(a):
        return pl.BlockSpec((1,) + a.shape[1:],
                            lambda b, l: (b,) + (0,) * (a.ndim - 1))

    def const_spec(a):
        return pl.BlockSpec(a.shape, lambda b, l: (0,) * a.ndim)

    def layer_spec(a):
        return pl.BlockSpec((1,) + a.shape[1:],
                            lambda b, l: (l,) + (0,) * (a.ndim - 1))

    # ---- VMEM budget: resident weights + 2x streamed layer + activations -------
    def nbytes(a):
        return int(a.size) * a.dtype.itemsize

    resident = sum(nbytes(a) for a in const_args + head_args)
    per_layer = sum(nbytes(a) // L for a in layer_args)
    per_batch = (nbytes(ids3) + nbytes(bias) + nbytes(rest)) // B + S * D * 4
    interm_elems = (3 * n_head * S * S + 3 * S * n_head * max(d_k, d_v)
                    + 2 * S * d_inner + 6 * S * D)
    vmem_bytes = (resident + 2 * per_layer + 2 * per_batch + S * D * 4
                  + 4 * interm_elems + (4 << 20))
    vmem_bytes = int(min(max(vmem_bytes, 16 << 20), 64 << 20))

    # ---- cost hint for the XLA scheduler ---------------------------------------
    flops_layer = (2 * S * D * n_head * (2 * d_k + d_v)
                   + 2 * n_head * S * S * (d_k + d_v)
                   + 2 * S * n_head * d_v * D
                   + 4 * S * D * d_inner)
    flops_head = 2 * S * (D * 2 * D + 2 * D * 4 * D + 4 * D * D)
    flops_pro = 2 * S * (n_amino + 12) * D
    cost = pl.CostEstimate(
        flops=int(B * (L * flops_layer + flops_head + flops_pro)),
        transcendentals=int(B * L * n_head * S * S),
        bytes_accessed=int(sum(nbytes(a) for a in
                               [ids3, bias, rest] + const_args + layer_args + head_args)
                           + B * S * D * 4))

    kernel = functools.partial(linkage_former_kernel, n_head=n_head, d_k=d_k, d_v=d_v,
                               n_amino=n_amino, scale_emb=scale_emb)

    return pl.pallas_call(
        kernel,
        out_shape=jax.ShapeDtypeStruct((B, S, D), F32),
        grid=(B, L),
        in_specs=([batch_spec(ids3), batch_spec(bias), batch_spec(rest)]
                  + [const_spec(a) for a in const_args]
                  + [layer_spec(a) for a in layer_args]
                  + [const_spec(a) for a in head_args]),
        out_specs=pl.BlockSpec((1, S, D), lambda b, l: (b, 0, 0)),
        scratch_shapes=[pltpu.VMEM((S, D), F32)],
        compiler_params=pltpu.CompilerParams(
            dimension_semantics=("parallel", "arbitrary"),
            vmem_limit_bytes=vmem_bytes),
        cost_estimate=cost,
    )(ids3, bias, rest, *const_args, *layer_args, *head_args)


# -----------------------------------------------------------------------------
# Deterministic parameter construction (layer weights stacked along a leading L axis)
# -----------------------------------------------------------------------------
def make_params(key, *, n_amino_feature, d_amino_vec, d_model, d_inner,
                n_head, d_k, d_v, n_layers, pad_idx, max_len):
    counter = [0]

    def nrm(shape, s=0.05):
        counter[0] += 1
        k = jax.random.fold_in(key, counter[0])
        return jax.random.normal(k, shape, F32) * s

    emb = nrm((n_amino_feature, d_amino_vec), 0.1).at[pad_idx].set(0.0)  # padding row = 0
    L, hk, hv = n_layers, n_head * d_k, n_head * d_v

    return dict(
        emb_table=emb,
        wB=nrm((d_amino_vec + 12, d_model)), bB=nrm((1, d_model), 0.01),
        pos_emb=nrm((1, max_len, d_model), 0.1),          # Encoder_Embedding.embeddings
        g0=jnp.ones((1, d_model), F32), be0=jnp.zeros((1, d_model), F32),
        wq=nrm((L, d_model, hk)), wk=nrm((L, d_model, hk)), wv=nrm((L, d_model, hv)),
        wo=nrm((L, hv, d_model)), bo=nrm((L, 1, d_model), 0.01),
        g1=jnp.ones((L, 1, d_model), F32), be1=jnp.zeros((L, 1, d_model), F32),
        w1=nrm((L, d_model, d_inner)), b1=nrm((L, 1, d_inner), 0.01),
        w2=nrm((L, d_inner, d_model)), b2=nrm((L, 1, d_model), 0.01),
        g2=jnp.ones((L, 1, d_model), F32), be2=jnp.zeros((L, 1, d_model), F32),
        wm1=nrm((d_model, 2 * d_model)),
        wm2=nrm((2 * d_model, 4 * d_model)),
        wm3=nrm((4 * d_model, d_model)),
    )


if __name__ == "__main__":
    # Small but lane-dense shapes consistent with the module:
    #   linearB input is 20 => d_amino_vec = 8 ; n_src_vocab default 21 ; pad_idx 0.
    #   D=128, d_inner=256, H*d_k=128, mlp widths 256/512/128 -> trailing dims are
    #   multiples of 128; S=16 is a multiple of 8 (f32) / 16 (bf16). Even batch => both
    #   v7x TensorCores engaged by the parallel batch axis.
    bs, S = 2, 16
    n_src_vocab, d_amino_vec = 21, 8
    d_model, d_inner = 128, 256
    n_head, d_k, d_v = 2, 64, 64
    n_layers = 2
    pad_idx = 0

    key = jax.random.PRNGKey(0)
    k_idx, k_rest, k_par = jax.random.split(key, 3)

    # src_seq: (bs, S, 13); column 0 holds amino-acid indices, columns 1..12 are floats.
    amino_idx = jax.random.randint(k_idx, (bs, S), 1, n_src_vocab)
    amino_idx = amino_idx.at[1, S - 3:].set(pad_idx)      # padded tail in batch 1
    rest = jax.random.normal(k_rest, (bs, S, 12), F32)
    src_seq = jnp.concatenate([amino_idx[..., None].astype(F32), rest], axis=2)

    params = make_params(k_par, n_amino_feature=n_src_vocab, d_amino_vec=d_amino_vec,
                         d_model=d_model, d_inner=d_inner, n_head=n_head,
                         d_k=d_k, d_v=d_v, n_layers=n_layers,
                         pad_idx=pad_idx, max_len=S)

    out = linkage_former_forward(src_seq, params, n_head=n_head, d_k=d_k, d_v=d_v,
                                 pad_idx=pad_idx, scale_emb=True)
    out = jax.block_until_ready(out)
    assert out.shape == (bs, S, d_model)
    assert bool(jnp.all(jnp.isfinite(out)))
    print("KERNEL_OK")
</pallas_src>

<mosaic_0001>
module attributes {stable_mosaic.version = 11 : i64} {
  func.func @linkage_former_kernel(%arg0: i32, %arg1: i32, %arg2: memref<1x16x1xi32, #tpu.memory_space<vmem>>, %arg3: memref<1x1x16xf32, #tpu.memory_space<vmem>>, %arg4: memref<1x16x12xf32, #tpu.memory_space<vmem>>, %arg5: memref<21x128xf32, #tpu.memory_space<vmem>>, %arg6: memref<12x128xf32, #tpu.memory_space<vmem>>, %arg7: memref<16x128xf32, #tpu.memory_space<vmem>>, %arg8: memref<1x128xf32, #tpu.memory_space<vmem>>, %arg9: memref<1x128xf32, #tpu.memory_space<vmem>>, %arg10: memref<1x128x128xbf16, #tpu.memory_space<vmem>>, %arg11: memref<1x128x128xbf16, #tpu.memory_space<vmem>>, %arg12: memref<1x128x128xbf16, #tpu.memory_space<vmem>>, %arg13: memref<1x128x128xbf16, #tpu.memory_space<vmem>>, %arg14: memref<1x1x128xf32, #tpu.memory_space<vmem>>, %arg15: memref<1x1x128xf32, #tpu.memory_space<vmem>>, %arg16: memref<1x1x128xf32, #tpu.memory_space<vmem>>, %arg17: memref<1x128x256xbf16, #tpu.memory_space<vmem>>, %arg18: memref<1x1x256xf32, #tpu.memory_space<vmem>>, %arg19: memref<1x256x128xbf16, #tpu.memory_space<vmem>>, %arg20: memref<1x1x128xf32, #tpu.memory_space<vmem>>, %arg21: memref<1x1x128xf32, #tpu.memory_space<vmem>>, %arg22: memref<1x1x128xf32, #tpu.memory_space<vmem>>, %arg23: memref<128x256xbf16, #tpu.memory_space<vmem>>, %arg24: memref<256x512xbf16, #tpu.memory_space<vmem>>, %arg25: memref<512x128xbf16, #tpu.memory_space<vmem>>, %arg26: memref<1x16x128xf32, #tpu.memory_space<vmem>>, %arg27: memref<16x128xf32, #tpu.memory_space<vmem>>) attributes {dimension_semantics = [#tpu.dimension_semantics<parallel>, #tpu.dimension_semantics<arbitrary>], iteration_bounds = array<i64: 2, 2>, scalar_prefetch = 0 : i64, scratch_operands = 1 : i64, tpu.core_type = #tpu.core_type<tc>, window_params = [{transform_indices = @transform_0, window_bounds = array<i64: 1, 16, 1>}, {transform_indices = @transform_1, window_bounds = array<i64: 1, 1, 16>}, {transform_indices = @transform_2, window_bounds = array<i64: 1, 16, 12>}, {pipeline_mode = #tpu.pipeline_mode<synchronous>, transform_indices = @transform_3, window_bounds = array<i64: 21, 128>}, {pipeline_mode = #tpu.pipeline_mode<synchronous>, transform_indices = @transform_4, window_bounds = array<i64: 12, 128>}, {pipeline_mode = #tpu.pipeline_mode<synchronous>, transform_indices = @transform_5, window_bounds = array<i64: 16, 128>}, {pipeline_mode = #tpu.pipeline_mode<synchronous>, transform_indices = @transform_6, window_bounds = array<i64: 1, 128>}, {pipeline_mode = #tpu.pipeline_mode<synchronous>, transform_indices = @transform_7, window_bounds = array<i64: 1, 128>}, {transform_indices = @transform_8, window_bounds = array<i64: 1, 128, 128>}, {transform_indices = @transform_9, window_bounds = array<i64: 1, 128, 128>}, {transform_indices = @transform_10, window_bounds = array<i64: 1, 128, 128>}, {transform_indices = @transform_11, window_bounds = array<i64: 1, 128, 128>}, {transform_indices = @transform_12, window_bounds = array<i64: 1, 1, 128>}, {transform_indices = @transform_13, window_bounds = array<i64: 1, 1, 128>}, {transform_indices = @transform_14, window_bounds = array<i64: 1, 1, 128>}, {transform_indices = @transform_15, window_bounds = array<i64: 1, 128, 256>}, {transform_indices = @transform_16, window_bounds = array<i64: 1, 1, 256>}, {transform_indices = @transform_17, window_bounds = array<i64: 1, 256, 128>}, {transform_indices = @transform_18, window_bounds = array<i64: 1, 1, 128>}, {transform_indices = @transform_19, window_bounds = array<i64: 1, 1, 128>}, {transform_indices = @transform_20, window_bounds = array<i64: 1, 1, 128>}, {pipeline_mode = #tpu.pipeline_mode<synchronous>, transform_indices = @transform_21, window_bounds = array<i64: 128, 256>}, {pipeline_mode = #tpu.pipeline_mode<synchronous>, transform_indices = @transform_22, window_bounds = array<i64: 256, 512>}, {pipeline_mode = #tpu.pipeline_mode<synchronous>, transform_indices = @transform_23, window_bounds = array<i64: 512, 128>}, {transform_indices = @transform_24, window_bounds = array<i64: 1, 16, 128>}]} {
    %c0_i32 = arith.constant 0 : i32
    %0 = arith.cmpi eq, %arg1, %c0_i32 : i32
    %1 = arith.extui %0 : i1 to i32
    %c0_i32_0 = arith.constant 0 : i32
    %2 = arith.cmpi ne, %1, %c0_i32_0 : i32
    scf.if %2 {
      %c0_68 = arith.constant 0 : index
      %c0_69 = arith.constant 0 : index
      %c0_70 = arith.constant 0 : index
      %125 = vector.load %arg2[%c0_68, %c0_69, %c0_70] : memref<1x16x1xi32, #tpu.memory_space<vmem>>, vector<1x16x1xi32>
      %126 = vector.shape_cast %125 : vector<1x16x1xi32> to vector<16x1xi32>
      %127 = tpu.iota {dimensions = array<i32: 1>} : vector<16x21xi32>
      %128 = vector.broadcast %126 : vector<16x1xi32> to vector<16x21xi32>
      %129 = arith.cmpi eq, %128, %127 : vector<16x21xi32>
      %130 = arith.extui %129 : vector<16x21xi1> to vector<16x21xi32>
      %131 = arith.sitofp %130 : vector<16x21xi32> to vector<16x21xf32>
      %c0_71 = arith.constant 0 : index
      %c0_72 = arith.constant 0 : index
      %132 = vector.load %arg5[%c0_71, %c0_72] : memref<21x128xf32, #tpu.memory_space<vmem>>, vector<21x128xf32>
      %cst_73 = arith.constant dense<0.000000e+00> : vector<16x128xf32>
      %133 = tpu.matmul %131, %132, %cst_73 {dimension_numbers = #tpu.dot_dimension_numbers<[1], [0], [0], [1], [0, 0, 1, 1], [], []>} : vector<16x21xf32>, vector<21x128xf32>, vector<16x128xf32> -> vector<16x128xf32>
      %c0_74 = arith.constant 0 : index
      %c0_75 = arith.constant 0 : index
      %c0_76 = arith.constant 0 : index
      %134 = vector.load %arg4[%c0_74, %c0_75, %c0_76] : memref<1x16x12xf32, #tpu.memory_space<vmem>>, vector<1x16x12xf32>
      %135 = vector.shape_cast %134 : vector<1x16x12xf32> to vector<16x12xf32>
      %c0_77 = arith.constant 0 : index
      %c0_78 = arith.constant 0 : index
      %136 = vector.load %arg6[%c0_77, %c0_78] : memref<12x128xf32, #tpu.memory_space<vmem>>, vector<12x128xf32>
      %cst_79 = arith.constant dense<0.000000e+00> : vector<16x128xf32>
      %137 = tpu.matmul %135, %136, %cst_79 {dimension_numbers = #tpu.dot_dimension_numbers<[1], [0], [0], [1], [0, 0, 1, 1], [], []>} : vector<16x12xf32>, vector<12x128xf32>, vector<16x128xf32> -> vector<16x128xf32>
      %138 = arith.addf %133, %137 : vector<16x128xf32>
      %c0_80 = arith.constant 0 : index
      %c0_81 = arith.constant 0 : index
      %139 = vector.load %arg7[%c0_80, %c0_81] : memref<16x128xf32, #tpu.memory_space<vmem>>, vector<16x128xf32>
      %140 = arith.addf %138, %139 : vector<16x128xf32>
      %cst_82 = arith.constant 11.3137083 : f32
      %141 = vector.broadcast %cst_82 : f32 to vector<16x128xf32>
      %142 = arith.mulf %140, %141 : vector<16x128xf32>
      %c0_83 = arith.constant 0 : index
      %c0_84 = arith.constant 0 : index
      %143 = vector.load %arg8[%c0_83, %c0_84] : memref<1x128xf32, #tpu.memory_space<vmem>>, vector<1x128xf32>
      %c0_85 = arith.constant 0 : index
      %c0_86 = arith.constant 0 : index
      %144 = vector.load %arg9[%c0_85, %c0_86] : memref<1x128xf32, #tpu.memory_space<vmem>>, vector<1x128xf32>
      %cst_87 = arith.constant dense<0.000000e+00> : vector<16xf32>
      %145 = vector.multi_reduction <add>, %142, %cst_87 [1] : vector<16x128xf32> to vector<16xf32>
      %146 = vector.shape_cast %145 : vector<16xf32> to vector<16x1xf32>
      %cst_88 = arith.constant 1.280000e+02 : f32
      %147 = vector.broadcast %cst_88 : f32 to vector<16x1xf32>
      %148 = arith.divf %146, %147 : vector<16x1xf32>
      %149 = vector.broadcast %148 : vector<16x1xf32> to vector<16x128xf32>
      %150 = arith.subf %142, %149 : vector<16x128xf32>
      %151 = arith.mulf %150, %150 : vector<16x128xf32>
      %cst_89 = arith.constant dense<0.000000e+00> : vector<16xf32>
      %152 = vector.multi_reduction <add>, %151, %cst_89 [1] : vector<16x128xf32> to vector<16xf32>
      %153 = vector.shape_cast %152 : vector<16xf32> to vector<16x1xf32>
      %cst_90 = arith.constant 1.280000e+02 : f32
      %154 = vector.broadcast %cst_90 : f32 to vector<16x1xf32>
      %155 = arith.divf %153, %154 : vector<16x1xf32>
      %156 = vector.broadcast %148 : vector<16x1xf32> to vector<16x128xf32>
      %157 = arith.subf %142, %156 : vector<16x128xf32>
      %cst_91 = arith.constant 9.99999997E-7 : f32
      %158 = vector.broadcast %cst_91 : f32 to vector<16x1xf32>
      %159 = arith.addf %155, %158 : vector<16x1xf32>
      %160 = math.rsqrt %159 : vector<16x1xf32>
      %161 = vector.broadcast %160 : vector<16x1xf32> to vector<16x128xf32>
      %162 = arith.mulf %157, %161 : vector<16x128xf32>
      %163 = vector.broadcast %143 : vector<1x128xf32> to vector<16x128xf32>
      %164 = arith.mulf %162, %163 : vector<16x128xf32>
      %165 = vector.broadcast %144 : vector<1x128xf32> to vector<16x128xf32>
      %166 = arith.addf %164, %165 : vector<16x128xf32>
      %c0_92 = arith.constant 0 : index
      %c0_93 = arith.constant 0 : index
      %167 = vector.load %arg27[%c0_92, %c0_93] : memref<16x128xf32, #tpu.memory_space<vmem>>, vector<16x128xf32>
      tpu.vector_store %arg27[%c0_92, %c0_93], %166 {strides = array<i32>} : memref<16x128xf32, #tpu.memory_space<vmem>>, vector<16x128xf32>,
    } else {
    }
    %c0 = arith.constant 0 : index
    %c0_1 = arith.constant 0 : index
    %3 = vector.load %arg27[%c0, %c0_1] : memref<16x128xf32, #tpu.memory_space<vmem>>, vector<16x128xf32>
    %4 = arith.truncf %3 : vector<16x128xf32> to vector<16x128xbf16>
    %c0_2 = arith.constant 0 : index
    %c0_3 = arith.constant 0 : index
    %c0_4 = arith.constant 0 : index
    %5 = vector.load %arg3[%c0_2, %c0_3, %c0_4] : memref<1x1x16xf32, #tpu.memory_space<vmem>>, vector<1x1x16xf32>
    %6 = vector.shape_cast %5 : vector<1x1x16xf32> to vector<1x16xf32>
    %c0_5 = arith.constant 0 : index
    %c0_6 = arith.constant 0 : index
    %c0_7 = arith.constant 0 : index
    %7 = vector.load %arg10[%c0_5, %c0_6, %c0_7] : memref<1x128x128xbf16, #tpu.memory_space<vmem>>, vector<1x128x128xbf16>
    %8 = vector.shape_cast %7 : vector<1x128x128xbf16> to vector<128x128xbf16>
    %cst = arith.constant dense<0.000000e+00> : vector<16x128xf32>
    %9 = tpu.matmul %4, %8, %cst {dimension_numbers = #tpu.dot_dimension_numbers<[1], [0], [0], [1], [0, 0, 1, 1], [], []>} : vector<16x128xbf16>, vector<128x128xbf16>, vector<16x128xf32> -> vector<16x128xf32>
    %10 = vector.shape_cast %9 : vector<16x128xf32> to vector<16x2x64xf32>
    %c0_8 = arith.constant 0 : index
    %c0_9 = arith.constant 0 : index
    %c0_10 = arith.constant 0 : index
    %11 = vector.load %arg11[%c0_8, %c0_9, %c0_10] : memref<1x128x128xbf16, #tpu.memory_space<vmem>>, vector<1x128x128xbf16>
    %12 = vector.shape_cast %11 : vector<1x128x128xbf16> to vector<128x128xbf16>
    %cst_11 = arith.constant dense<0.000000e+00> : vector<16x128xf32>
    %13 = tpu.matmul %4, %12, %cst_11 {dimension_numbers = #tpu.dot_dimension_numbers<[1], [0], [0], [1], [0, 0, 1, 1], [], []>} : vector<16x128xbf16>, vector<128x128xbf16>, vector<16x128xf32> -> vector<16x128xf32>
    %14 = vector.shape_cast %13 : vector<16x128xf32> to vector<16x2x64xf32>
    %c0_12 = arith.constant 0 : index
    %c0_13 = arith.constant 0 : index
    %c0_14 = arith.constant 0 : index
    %15 = vector.load %arg12[%c0_12, %c0_13, %c0_14] : memref<1x128x128xbf16, #tpu.memory_space<vmem>>, vector<1x128x128xbf16>
    %16 = vector.shape_cast %15 : vector<1x128x128xbf16> to vector<128x128xbf16>
    %cst_15 = arith.constant dense<0.000000e+00> : vector<16x128xf32>
    %17 = tpu.matmul %4, %16, %cst_15 {dimension_numbers = #tpu.dot_dimension_numbers<[1], [0], [0], [1], [0, 0, 1, 1], [], []>} : vector<16x128xbf16>, vector<128x128xbf16>, vector<16x128xf32> -> vector<16x128xf32>
    %18 = vector.shape_cast %17 : vector<16x128xf32> to vector<16x2x64xf32>
    %19 = arith.truncf %10 : vector<16x2x64xf32> to vector<16x2x64xbf16>
    %20 = arith.truncf %14 : vector<16x2x64xf32> to vector<16x2x64xbf16>
    "tpu.trace_start"() <{level = 10 : i32, message = "qhd,khd->hqk"}> : () -> ()
    %cst_16 = arith.constant dense<0.000000e+00> : vector<2x16x16xf32>
    %21 = tpu.matmul %19, %20, %cst_16 {dimension_numbers = #tpu.dot_dimension_numbers<[2], [2], [0], [0], [0, 1, 0, 0, 1, 0], [1], [1]>} : vector<16x2x64xbf16>, vector<16x2x64xbf16>, vector<2x16x16xf32> -> vector<2x16x16xf32>
    "tpu.trace_stop"() : () -> ()
    %cst_17 = arith.constant 1.250000e-01 : f32
    %22 = vector.broadcast %cst_17 : f32 to vector<2x16x16xf32>
    %23 = arith.mulf %21, %22 : vector<2x16x16xf32>
    %24 = vector.shape_cast %6 : vector<1x16xf32> to vector<1x1x16xf32>
    %25 = vector.broadcast %24 : vector<1x1x16xf32> to vector<2x16x16xf32>
    %26 = arith.addf %23, %25 : vector<2x16x16xf32>
    %cst_18 = arith.constant dense<0xFF800000> : vector<2x16xf32>
    %27 = vector.multi_reduction <maximumf>, %26, %cst_18 [2] : vector<2x16x16xf32> to vector<2x16xf32>
    %28 = vector.shape_cast %27 : vector<2x16xf32> to vector<2x16x1xf32>
    %29 = vector.broadcast %28 : vector<2x16x1xf32> to vector<2x16x16xf32>
    %30 = arith.subf %26, %29 : vector<2x16x16xf32>
    %31 = math.exp %30 : vector<2x16x16xf32>
    %cst_19 = arith.constant dense<0.000000e+00> : vector<2x16xf32>
    %32 = vector.multi_reduction <add>, %31, %cst_19 [2] : vector<2x16x16xf32> to vector<2x16xf32>
    %33 = vector.shape_cast %32 : vector<2x16xf32> to vector<2x16x1xf32>
    %34 = vector.broadcast %33 : vector<2x16x1xf32> to vector<2x16x16xf32>
    %35 = arith.divf %31, %34 : vector<2x16x16xf32>
    %36 = arith.truncf %35 : vector<2x16x16xf32> to vector<2x16x16xbf16>
    %37 = arith.truncf %18 : vector<16x2x64xf32> to vector<16x2x64xbf16>
    "tpu.trace_start"() <{level = 10 : i32, message = "hqk,khd->qhd"}> : () -> ()
    %cst_20 = arith.constant dense<0.000000e+00> : vector<2x64x16xf32>
    %38 = tpu.matmul %37, %36, %cst_20 {dimension_numbers = #tpu.dot_dimension_numbers<[0], [2], [2], [1], [0, 1, 0, 2, 1, 1], [1], [0]>} : vector<16x2x64xbf16>, vector<2x16x16xbf16>, vector<2x64x16xf32> -> vector<2x64x16xf32>
    %39 = tpu.transpose %38, [2, 0, 1] : vector<2x64x16xf32> -> vector<16x2x64xf32>
    "tpu.trace_stop"() : () -> ()
    %40 = vector.shape_cast %39 : vector<16x2x64xf32> to vector<16x128xf32>
    %41 = arith.truncf %40 : vector<16x128xf32> to vector<16x128xbf16>
    %c0_21 = arith.constant 0 : index
    %c0_22 = arith.constant 0 : index
    %c0_23 = arith.constant 0 : index
    %42 = vector.load %arg13[%c0_21, %c0_22, %c0_23] : memref<1x128x128xbf16, #tpu.memory_space<vmem>>, vector<1x128x128xbf16>
    %43 = vector.shape_cast %42 : vector<1x128x128xbf16> to vector<128x128xbf16>
    %cst_24 = arith.constant dense<0.000000e+00> : vector<16x128xf32>
    %44 = tpu.matmul %41, %43, %cst_24 {dimension_numbers = #tpu.dot_dimension_numbers<[1], [0], [0], [1], [0, 0, 1, 1], [], []>} : vector<16x128xbf16>, vector<128x128xbf16>, vector<16x128xf32> -> vector<16x128xf32>
    %c0_25 = arith.constant 0 : index
    %c0_26 = arith.constant 0 : index
    %c0_27 = arith.constant 0 : index
    %45 = vector.load %arg14[%c0_25, %c0_26, %c0_27] : memref<1x1x128xf32, #tpu.memory_space<vmem>>, vector<1x1x128xf32>
    %46 = vector.shape_cast %45 : vector<1x1x128xf32> to vector<1x128xf32>
    %47 = vector.broadcast %46 : vector<1x128xf32> to vector<16x128xf32>
    %48 = arith.addf %44, %47 : vector<16x128xf32>
    %49 = arith.addf %48, %3 : vector<16x128xf32>
    %c0_28 = arith.constant 0 : index
    %c0_29 = arith.constant 0 : index
    %c0_30 = arith.constant 0 : index
    %50 = vector.load %arg15[%c0_28, %c0_29, %c0_30] : memref<1x1x128xf32, #tpu.memory_space<vmem>>, vector<1x1x128xf32>
    %51 = vector.shape_cast %50 : vector<1x1x128xf32> to vector<1x128xf32>
    %c0_31 = arith.constant 0 : index
    %c0_32 = arith.constant 0 : index
    %c0_33 = arith.constant 0 : index
    %52 = vector.load %arg16[%c0_31, %c0_32, %c0_33] : memref<1x1x128xf32, #tpu.memory_space<vmem>>, vector<1x1x128xf32>
    %53 = vector.shape_cast %52 : vector<1x1x128xf32> to vector<1x128xf32>
    %cst_34 = arith.constant dense<0.000000e+00> : vector<16xf32>
    %54 = vector.multi_reduction <add>, %49, %cst_34 [1] : vector<16x128xf32> to vector<16xf32>
    %55 = vector.shape_cast %54 : vector<16xf32> to vector<16x1xf32>
    %cst_35 = arith.constant 1.280000e+02 : f32
    %56 = vector.broadcast %cst_35 : f32 to vector<16x1xf32>
    %57 = arith.divf %55, %56 : vector<16x1xf32>
    %58 = vector.broadcast %57 : vector<16x1xf32> to vector<16x128xf32>
    %59 = arith.subf %49, %58 : vector<16x128xf32>
    %60 = arith.mulf %59, %59 : vector<16x128xf32>
    %cst_36 = arith.constant dense<0.000000e+00> : vector<16xf32>
    %61 = vector.multi_reduction <add>, %60, %cst_36 [1] : vector<16x128xf32> to vector<16xf32>
    %62 = vector.shape_cast %61 : vector<16xf32> to vector<16x1xf32>
    %cst_37 = arith.constant 1.280000e+02 : f32
    %63 = vector.broadcast %cst_37 : f32 to vector<16x1xf32>
    %64 = arith.divf %62, %63 : vector<16x1xf32>
    %65 = vector.broadcast %57 : vector<16x1xf32> to vector<16x128xf32>
    %66 = arith.subf %49, %65 : vector<16x128xf32>
    %cst_38 = arith.constant 9.99999997E-7 : f32
    %67 = vector.broadcast %cst_38 : f32 to vector<16x1xf32>
    %68 = arith.addf %64, %67 : vector<16x1xf32>
    %69 = math.rsqrt %68 : vector<16x1xf32>
    %70 = vector.broadcast %69 : vector<16x1xf32> to vector<16x128xf32>
    %71 = arith.mulf %66, %70 : vector<16x128xf32>
    %72 = vector.broadcast %51 : vector<1x128xf32> to vector<16x128xf32>
    %73 = arith.mulf %71, %72 : vector<16x128xf32>
    %74 = vector.broadcast %53 : vector<1x128xf32> to vector<16x128xf32>
    %75 = arith.addf %73, %74 : vector<16x128xf32>
    %76 = arith.truncf %75 : vector<16x128xf32> to vector<16x128xbf16>
    %c0_39 = arith.constant 0 : index
    %c0_40 = arith.constant 0 : index
    %c0_41 = arith.constant 0 : index
    %77 = vector.load %arg17[%c0_39, %c0_40, %c0_41] : memref<1x128x256xbf16, #tpu.memory_space<vmem>>, vector<1x128x256xbf16>
    %78 = vector.shape_cast %77 : vector<1x128x256xbf16> to vector<128x256xbf16>
    %cst_42 = arith.constant dense<0.000000e+00> : vector<16x256xf32>
    %79 = tpu.matmul %76, %78, %cst_42 {dimension_numbers = #tpu.dot_dimension_numbers<[1], [0], [0], [1], [0, 0, 1, 1], [], []>} : vector<16x128xbf16>, vector<128x256xbf16>, vector<16x256xf32> -> vector<16x256xf32>
    %c0_43 = arith.constant 0 : index
    %c0_44 = arith.constant 0 : index
    %c0_45 = arith.constant 0 : index
    %80 = vector.load %arg18[%c0_43, %c0_44, %c0_45] : memref<1x1x256xf32, #tpu.memory_space<vmem>>, vector<1x1x256xf32>
    %81 = vector.shape_cast %80 : vector<1x1x256xf32> to vector<1x256xf32>
    %82 = vector.broadcast %81 : vector<1x256xf32> to vector<16x256xf32>
    %83 = arith.addf %79, %82 : vector<16x256xf32>
    %cst_46 = arith.constant 0.000000e+00 : f32
    %84 = vector.broadcast %cst_46 : f32 to vector<16x256xf32>
    %85 = arith.maximumf %83, %84 : vector<16x256xf32>
    %86 = arith.truncf %85 : vector<16x256xf32> to vector<16x256xbf16>
    %c0_47 = arith.constant 0 : index
    %c0_48 = arith.constant 0 : index
    %c0_49 = arith.constant 0 : index
    %87 = vector.load %arg19[%c0_47, %c0_48, %c0_49] : memref<1x256x128xbf16, #tpu.memory_space<vmem>>, vector<1x256x128xbf16>
    %88 = vector.shape_cast %87 : vector<1x256x128xbf16> to vector<256x128xbf16>
    %cst_50 = arith.constant dense<0.000000e+00> : vector<16x128xf32>
    %89 = tpu.matmul %86, %88, %cst_50 {dimension_numbers = #tpu.dot_dimension_numbers<[1], [0], [0], [1], [0, 0, 1, 1], [], []>} : vector<16x256xbf16>, vector<256x128xbf16>, vector<16x128xf32> -> vector<16x128xf32>
    %c0_51 = arith.constant 0 : index
    %c0_52 = arith.constant 0 : index
    %c0_53 = arith.constant 0 : index
    %90 = vector.load %arg20[%c0_51, %c0_52, %c0_53] : memref<1x1x128xf32, #tpu.memory_space<vmem>>, vector<1x1x128xf32>
    %91 = vector.shape_cast %90 : vector<1x1x128xf32> to vector<1x128xf32>
    %92 = vector.broadcast %91 : vector<1x128xf32> to vector<16x128xf32>
    %93 = arith.addf %89, %92 : vector<16x128xf32>
    %94 = arith.addf %93, %75 : vector<16x128xf32>
    %c0_54 = arith.constant 0 : index
    %c0_55 = arith.constant 0 : index
    %c0_56 = arith.constant 0 : index
    %95 = vector.load %arg21[%c0_54, %c0_55, %c0_56] : memref<1x1x128xf32, #tpu.memory_space<vmem>>, vector<1x1x128xf32>
    %96 = vector.shape_cast %95 : vector<1x1x128xf32> to vector<1x128xf32>
    %c0_57 = arith.constant 0 : index
    %c0_58 = arith.constant 0 : index
    %c0_59 = arith.constant 0 : index
    %97 = vector.load %arg22[%c0_57, %c0_58, %c0_59] : memref<1x1x128xf32, #tpu.memory_space<vmem>>, vector<1x1x128xf32>
    %98 = vector.shape_cast %97 : vector<1x1x128xf32> to vector<1x128xf32>
    %cst_60 = arith.constant dense<0.000000e+00> : vector<16xf32>
    %99 = vector.multi_reduction <add>, %94, %cst_60 [1] : vector<16x128xf32> to vector<16xf32>
    %100 = vector.shape_cast %99 : vector<16xf32> to vector<16x1xf32>
    %cst_61 = arith.constant 1.280000e+02 : f32
    %101 = vector.broadcast %cst_61 : f32 to vector<16x1xf32>
    %102 = arith.divf %100, %101 : vector<16x1xf32>
    %103 = vector.broadcast %102 : vector<16x1xf32> to vector<16x128xf32>
    %104 = arith.subf %94, %103 : vector<16x128xf32>
    %105 = arith.mulf %104, %104 : vector<16x128xf32>
    %cst_62 = arith.constant dense<0.000000e+00> : vector<16xf32>
    %106 = vector.multi_reduction <add>, %105, %cst_62 [1] : vector<16x128xf32> to vector<16xf32>
    %107 = vector.shape_cast %106 : vector<16xf32> to vector<16x1xf32>
    %cst_63 = arith.constant 1.280000e+02 : f32
    %108 = vector.broadcast %cst_63 : f32 to vector<16x1xf32>
    %109 = arith.divf %107, %108 : vector<16x1xf32>
    %110 = vector.broadcast %102 : vector<16x1xf32> to vector<16x128xf32>
    %111 = arith.subf %94, %110 : vector<16x128xf32>
    %cst_64 = arith.constant 9.99999997E-7 : f32
    %112 = vector.broadcast %cst_64 : f32 to vector<16x1xf32>
    %113 = arith.addf %109, %112 : vector<16x1xf32>
    %114 = math.rsqrt %113 : vector<16x1xf32>
    %115 = vector.broadcast %114 : vector<16x1xf32> to vector<16x128xf32>
    %116 = arith.mulf %111, %115 : vector<16x128xf32>
    %117 = vector.broadcast %96 : vector<1x128xf32> to vector<16x128xf32>
    %118 = arith.mulf %116, %117 : vector<16x128xf32>
    %119 = vector.broadcast %98 : vector<1x128xf32> to vector<16x128xf32>
    %120 = arith.addf %118, %119 : vector<16x128xf32>
    %c0_65 = arith.constant 0 : index
    %c0_66 = arith.constant 0 : index
    %121 = vector.load %arg27[%c0_65, %c0_66] : memref<16x128xf32, #tpu.memory_space<vmem>>, vector<16x128xf32>
    tpu.vector_store %arg27[%c0_65, %c0_66], %120 {strides = array<i32>} : memref<16x128xf32, #tpu.memory_space<vmem>>, vector<16x128xf32>,
    %c1_i32 = arith.constant 1 : i32
    %122 = arith.cmpi eq, %arg1, %c1_i32 : i32
    %123 = arith.extui %122 : i1 to i32
    %c0_i32_67 = arith.constant 0 : i32
    %124 = arith.cmpi ne, %123, %c0_i32_67 : i32
    scf.if %124 {
      %125 = arith.truncf %120 : vector<16x128xf32> to vector<16x128xbf16>
      %c0_68 = arith.constant 0 : index
      %c0_69 = arith.constant 0 : index
      %126 = vector.load %arg23[%c0_68, %c0_69] : memref<128x256xbf16, #tpu.memory_space<vmem>>, vector<128x256xbf16>
      %cst_70 = arith.constant dense<0.000000e+00> : vector<16x256xf32>
      %127 = tpu.matmul %125, %126, %cst_70 {dimension_numbers = #tpu.dot_dimension_numbers<[1], [0], [0], [1], [0, 0, 1, 1], [], []>} : vector<16x128xbf16>, vector<128x256xbf16>, vector<16x256xf32> -> vector<16x256xf32>
      %128 = arith.truncf %127 : vector<16x256xf32> to vector<16x256xbf16>
      %c0_71 = arith.constant 0 : index
      %c0_72 = arith.constant 0 : index
      %129 = vector.load %arg24[%c0_71, %c0_72] : memref<256x512xbf16, #tpu.memory_space<vmem>>, vector<256x512xbf16>
      %cst_73 = arith.constant dense<0.000000e+00> : vector<16x512xf32>
      %130 = tpu.matmul %128, %129, %cst_73 {dimension_numbers = #tpu.dot_dimension_numbers<[1], [0], [0], [1], [0, 0, 1, 1], [], []>} : vector<16x256xbf16>, vector<256x512xbf16>, vector<16x512xf32> -> vector<16x512xf32>
      %131 = arith.truncf %130 : vector<16x512xf32> to vector<16x512xbf16>
      %c0_74 = arith.constant 0 : index
      %c0_75 = arith.constant 0 : index
      %132 = vector.load %arg25[%c0_74, %c0_75] : memref<512x128xbf16, #tpu.memory_space<vmem>>, vector<512x128xbf16>
      %cst_76 = arith.constant dense<0.000000e+00> : vector<16x128xf32>
      %133 = tpu.matmul %131, %132, %cst_76 {dimension_numbers = #tpu.dot_dimension_numbers<[1], [0], [0], [1], [0, 0, 1, 1], [], []>} : vector<16x512xbf16>, vector<512x128xbf16>, vector<16x128xf32> -> vector<16x128xf32>
      %c0_77 = arith.constant 0 : index
      %c0_78 = arith.constant 0 : index
      %c0_79 = arith.constant 0 : index
      %134 = vector.load %arg26[%c0_77, %c0_78, %c0_79] : memref<1x16x128xf32, #tpu.memory_space<vmem>>, vector<1x16x128xf32>
      %135 = vector.shape_cast %134 : vector<1x16x128xf32> to vector<16x128xf32>
      %136 = vector.shape_cast %133 : vector<16x128xf32> to vector<1x16x128xf32>
      tpu.vector_store %arg26[%c0_77, %c0_78, %c0_79], %136 {strides = array<i32>} : memref<1x16x128xf32, #tpu.memory_space<vmem>>, vector<1x16x128xf32>,
    } else {
    }
    return
  }
  func.func @transform_0(%arg0: i32, %arg1: i32) -> (i32, i32, i32) {
    %c0_i32 = arith.constant 0 : i32
    %c0_i32_0 = arith.constant 0 : i32
    %c0_i32_1 = arith.constant 0 : i32
    return %arg0, %c0_i32, %c0_i32_0 : i32, i32, i32
  }
  func.func @transform_1(%arg0: i32, %arg1: i32) -> (i32, i32, i32) {
    %c0_i32 = arith.constant 0 : i32
    %c0_i32_0 = arith.constant 0 : i32
    %c0_i32_1 = arith.constant 0 : i32
    return %arg0, %c0_i32, %c0_i32_0 : i32, i32, i32
  }
  func.func @transform_2(%arg0: i32, %arg1: i32) -> (i32, i32, i32) {
    %c0_i32 = arith.constant 0 : i32
    %c0_i32_0 = arith.constant 0 : i32
    %c0_i32_1 = arith.constant 0 : i32
    return %arg0, %c0_i32, %c0_i32_0 : i32, i32, i32
  }
  func.func @transform_3(%arg0: i32, %arg1: i32) -> (i32, i32) {
    %c0_i32 = arith.constant 0 : i32
    %c0_i32_0 = arith.constant 0 : i32
    %c0_i32_1 = arith.constant 0 : i32
    return %c0_i32, %c0_i32_0 : i32, i32
  }
  func.func @transform_4(%arg0: i32, %arg1: i32) -> (i32, i32) {
    %c0_i32 = arith.constant 0 : i32
    %c0_i32_0 = arith.constant 0 : i32
    %c0_i32_1 = arith.constant 0 : i32
    return %c0_i32, %c0_i32_0 : i32, i32
  }
  func.func @transform_5(%arg0: i32, %arg1: i32) -> (i32, i32) {
    %c0_i32 = arith.constant 0 : i32
    %c0_i32_0 = arith.constant 0 : i32
    %c0_i32_1 = arith.constant 0 : i32
    return %c0_i32, %c0_i32_0 : i32, i32
  }
  func.func @transform_6(%arg0: i32, %arg1: i32) -> (i32, i32) {
    %c0_i32 = arith.constant 0 : i32
    %c0_i32_0 = arith.constant 0 : i32
    %c0_i32_1 = arith.constant 0 : i32
    return %c0_i32, %c0_i32_0 : i32, i32
  }
  func.func @transform_7(%arg0: i32, %arg1: i32) -> (i32, i32) {
    %c0_i32 = arith.constant 0 : i32
    %c0_i32_0 = arith.constant 0 : i32
    %c0_i32_1 = arith.constant 0 : i32
    return %c0_i32, %c0_i32_0 : i32, i32
  }
  func.func @transform_8(%arg0: i32, %arg1: i32) -> (i32, i32, i32) {
    %c0_i32 = arith.constant 0 : i32
    %c0_i32_0 = arith.constant 0 : i32
    %c0_i32_1 = arith.constant 0 : i32
    return %arg1, %c0_i32, %c0_i32_0 : i32, i32, i32
  }
  func.func @transform_9(%arg0: i32, %arg1: i32) -> (i32, i32, i32) {
    %c0_i32 = arith.constant 0 : i32
    %c0_i32_0 = arith.constant 0 : i32
    %c0_i32_1 = arith.constant 0 : i32
    return %arg1, %c0_i32, %c0_i32_0 : i32, i32, i32
  }
  func.func @transform_10(%arg0: i32, %arg1: i32) -> (i32, i32, i32) {
    %c0_i32 = arith.constant 0 : i32
    %c0_i32_0 = arith.constant 0 : i32
    %c0_i32_1 = arith.constant 0 : i32
    return %arg1, %c0_i32, %c0_i32_0 : i32, i32, i32
  }
  func.func @transform_11(%arg0: i32, %arg1: i32) -> (i32, i32, i32) {
    %c0_i32 = arith.constant 0 : i32
    %c0_i32_0 = arith.constant 0 : i32
    %c0_i32_1 = arith.constant 0 : i32
    return %arg1, %c0_i32, %c0_i32_0 : i32, i32, i32
  }
  func.func @transform_12(%arg0: i32, %arg1: i32) -> (i32, i32, i32) {
    %c0_i32 = arith.constant 0 : i32
    %c0_i32_0 = arith.constant 0 : i32
    %c0_i32_1 = arith.constant 0 : i32
    return %arg1, %c0_i32, %c0_i32_0 : i32, i32, i32
  }
  func.func @transform_13(%arg0: i32, %arg1: i32) -> (i32, i32, i32) {
    %c0_i32 = arith.constant 0 : i32
    %c0_i32_0 = arith.constant 0 : i32
    %c0_i32_1 = arith.constant 0 : i32
    return %arg1, %c0_i32, %c0_i32_0 : i32, i32, i32
  }
  func.func @transform_14(%arg0: i32, %arg1: i32) -> (i32, i32, i32) {
    %c0_i32 = arith.constant 0 : i32
    %c0_i32_0 = arith.constant 0 : i32
    %c0_i32_1 = arith.constant 0 : i32
    return %arg1, %c0_i32, %c0_i32_0 : i32, i32, i32
  }
  func.func @transform_15(%arg0: i32, %arg1: i32) -> (i32, i32, i32) {
    %c0_i32 = arith.constant 0 : i32
    %c0_i32_0 = arith.constant 0 : i32
    %c0_i32_1 = arith.constant 0 : i32
    return %arg1, %c0_i32, %c0_i32_0 : i32, i32, i32
  }
  func.func @transform_16(%arg0: i32, %arg1: i32) -> (i32, i32, i32) {
    %c0_i32 = arith.constant 0 : i32
    %c0_i32_0 = arith.constant 0 : i32
    %c0_i32_1 = arith.constant 0 : i32
    return %arg1, %c0_i32, %c0_i32_0 : i32, i32, i32
  }
  func.func @transform_17(%arg0: i32, %arg1: i32) -> (i32, i32, i32) {
    %c0_i32 = arith.constant 0 : i32
    %c0_i32_0 = arith.constant 0 : i32
    %c0_i32_1 = arith.constant 0 : i32
    return %arg1, %c0_i32, %c0_i32_0 : i32, i32, i32
  }
  func.func @transform_18(%arg0: i32, %arg1: i32) -> (i32, i32, i32) {
    %c0_i32 = arith.constant 0 : i32
    %c0_i32_0 = arith.constant 0 : i32
    %c0_i32_1 = arith.constant 0 : i32
    return %arg1, %c0_i32, %c0_i32_0 : i32, i32, i32
  }
  func.func @transform_19(%arg0: i32, %arg1: i32) -> (i32, i32, i32) {
    %c0_i32 = arith.constant 0 : i32
    %c0_i32_0 = arith.constant 0 : i32
    %c0_i32_1 = arith.constant 0 : i32
    return %arg1, %c0_i32, %c0_i32_0 : i32, i32, i32
  }
  func.func @transform_20(%arg0: i32, %arg1: i32) -> (i32, i32, i32) {
    %c0_i32 = arith.constant 0 : i32
    %c0_i32_0 = arith.constant 0 : i32
    %c0_i32_1 = arith.constant 0 : i32
    return %arg1, %c0_i32, %c0_i32_0 : i32, i32, i32
  }
  func.func @transform_21(%arg0: i32, %arg1: i32) -> (i32, i32) {
    %c0_i32 = arith.constant 0 : i32
    %c0_i32_0 = arith.constant 0 : i32
    %c0_i32_1 = arith.constant 0 : i32
    return %c0_i32, %c0_i32_0 : i32, i32
  }
  func.func @transform_22(%arg0: i32, %arg1: i32) -> (i32, i32) {
    %c0_i32 = arith.constant 0 : i32
    %c0_i32_0 = arith.constant 0 : i32
    %c0_i32_1 = arith.constant 0 : i32
    return %c0_i32, %c0_i32_0 : i32, i32
  }
  func.func @transform_23(%arg0: i32, %arg1: i32) -> (i32, i32) {
    %c0_i32 = arith.constant 0 : i32
    %c0_i32_0 = arith.constant 0 : i32
    %c0_i32_1 = arith.constant 0 : i32
    return %c0_i32, %c0_i32_0 : i32, i32
  }
  func.func @transform_24(%arg0: i32, %arg1: i32) -> (i32, i32, i32) {
    %c0_i32 = arith.constant 0 : i32
    %c0_i32_0 = arith.constant 0 : i32
    %c0_i32_1 = arith.constant 0 : i32
    return %arg0, %c0_i32, %c0_i32_0 : i32, i32, i32
  }
}

</mosaic_0001>

<bundles_post_ra>
// kernel: tpu_custom_call.1
= control target key start
LH: loop header
LB: loop body
LE: loop exit
PB: predicated region body
PF: predicated region fallthrough
CT: control target
= control target key end

     0   :  { %s15929_s0 = inlined_call_operand.vmem [shape: s32[2,16,1], index: 0, kind: input, shape index: {}]   ;;  %s15930_s1 = inlined_call_operand.hbm [shape: f32[2,1,16], index: 1, kind: input, shape index: {}]   ;;  %s15931_s2 = inlined_call_operand.vmem [shape: f32[2,16,12], index: 2, kind: input, shape index: {}]   ;;  %s15932_s3 = inlined_call_operand.hbm [shape: f32[21,128], index: 3, kind: input, shape index: {}]   ;;  %s15933_s4 = inlined_call_operand.hbm [shape: f32[12,128], index: 4, kind: input, shape index: {}]   ;;  %s15934_s5 = inlined_call_operand.hbm [shape: f32[16,128], index: 5, kind: input, shape index: {}]   ;;  %s15935_s6 = inlined_call_operand.hbm [shape: f32[1,128], index: 6, kind: input, shape index: {}]   ;;  %s15936_s7 = inlined_call_operand.hbm [shape: f32[1,128], index: 7, kind: input, shape index: {}]   ;;  %s15937_s8 = inlined_call_operand.hbm [shape: bf16[2,128,128], index: 8, kind: input, shape index: {}]   ;;  %s15938_s9 = inlined_call_operand.hbm [shape: bf16[2,128,128], index: 9, kind: input, shape index: {}]   ;;  %s15939_s10 = inlined_call_operand.hbm [shape: bf16[2,128,128], index: 10, kind: input, shape index: {}]   ;;  %s15940_s11 = inlined_call_operand.hbm [shape: bf16[2,128,128], index: 11, kind: input, shape index: {}]   ;;  %s15941_s12 = inlined_call_operand.hbm [shape: f32[2,1,128], index: 12, kind: input, shape index: {}]   ;;  %s15942_s13 = inlined_call_operand.hbm [shape: f32[2,1,128], index: 13, kind: input, shape index: {}]   ;;  %s15943_s14 = inlined_call_operand.hbm [shape: f32[2,1,128], index: 14, kind: input, shape index: {}]   ;;  %s15944_s15 = inlined_call_operand.hbm [shape: bf16[2,128,256], index: 15, kind: input, shape index: {}]   ;;  %s15945_s16 = inlined_call_operand.hbm [shape: f32[2,1,256], index: 16, kind: input, shape index: {}]   ;;  %s15946_s17 = inlined_call_operand.hbm [shape: bf16[2,256,128], index: 17, kind: input, shape index: {}]   ;;  %s15947_s18 = inlined_call_operand.hbm [shape: f32[2,1,128], index: 18, kind: input, shape index: {}]   ;;  %s15948_s19 = inlined_call_operand.hbm [shape: f32[2,1,128], index: 19, kind: input, shape index: {}]   ;;  %s15949_s20 = inlined_call_operand.hbm [shape: f32[2,1,128], index: 20, kind: input, shape index: {}]   ;;  %s15950_s21 = inlined_call_operand.vmem [shape: bf16[128,256], index: 21, kind: input, shape index: {}]   ;;  %s15951_s22 = inlined_call_operand.hbm [shape: bf16[256,512], index: 22, kind: input, shape index: {}]   ;;  %s15952_s23 = inlined_call_operand.hbm [shape: bf16[512,128], index: 23, kind: input, shape index: {}]   ;;  %s15953_s24 = inlined_call_operand.hbm [shape: f32[2,16,128], index: 24, kind: output, shape index: {}]  }
   0x1   :  { %16061 = sst [smem:[#allocation83_spill]] %s15929_s0 }
   0x2   :  { %16062 = sst [smem:[#allocation84_spill]] %s15930_s1 }
   0x3   :  { %16063 = sst [smem:[#allocation85_spill]] %s15931_s2 }
   0x4   :  { %16064 = sst [smem:[#allocation86_spill]] %s15932_s3 }
   0x5   :  { %16065 = sst [smem:[#allocation87_spill]] %s15933_s4 }
   0x6   :  { %16066 = sst [smem:[#allocation88_spill]] %s15934_s5 }
   0x7   :  { %16067 = sst [smem:[#allocation89_spill]] %s15935_s6 }
   0x8   :  { %16068 = sst [smem:[#allocation90_spill]] %s15936_s7 }
   0x9   :  { %16069 = sst [smem:[#allocation91_spill]] %s15937_s8 }
   0xa   :  { %16070 = sst [smem:[#allocation92_spill]] %s15938_s9 }
   0xb   :  { %16071 = sst [smem:[#allocation93_spill]] %s15939_s10 }
   0xc   :  { %16072 = sst [smem:[#allocation94_spill]] %s15940_s11 }
   0xd   :  { %16073 = sst [smem:[#allocation95_spill]] %s15941_s12 }
   0xe   :  { %16074 = sst [smem:[#allocation96_spill]] %s15942_s13 }
   0xf   :  { %16075 = sst [smem:[#allocation97_spill]] %s15945_s16 }
  0x10   :  { %16076 = sst [smem:[#allocation98_spill]] %s15946_s17 }
  0x11   :  { %16077 = sst [smem:[#allocation99_spill]] %s15947_s18 }
  0x12   :  { %16078 = sst [smem:[#allocation100_spill]] %s15948_s19 }
  0x13   :  { %16079 = sst [smem:[#allocation101_spill]] %s15949_s20 }
  0x14   :  { %16080 = sst [smem:[#allocation102_spill]] %s15950_s21 }
  0x15   :  { %16081 = sst [smem:[#allocation103_spill]] %s15951_s22 }
  0x16   :  { %16082 = sst [smem:[#allocation104_spill]] %s15952_s23 }
  0x17   :  { %16083 = sst [smem:[#allocation105_spill]] %s15953_s24 }
  0x18   :  { %29 = vsyncpa [#allocation4], 0 }
  0x19   :  { %31 = vsyncpa [#allocation4 + $0x1], 0 }
  0x1a   :  { %32 = vsyncpa [#allocation7], 0 }
  0x1b   :  { %33 = vsyncpa [#allocation10], 0 }
  0x1c   :  { %34 = vsyncpa [#allocation13], 0 }
  0x1d   :  { %35 = vsyncpa [#allocation5], 0 }
  0x1e   :  { %37 = vsyncpa [#allocation5 + $0x1], 0  ;;  %s13006_s5 = smov 0   ;;  %s13008_s26 = smov 0  }
  0x1f   :  { %s13010_s27 = smov 0   ;;  %s13012_s28 = smov 0  }
  0x20   :  { %s13014_s6 = smov 0   ;;  %s13016_s2 = smov 0  }
  0x21   :  { %s13018_s29 = smov 0   ;;  %s13020_s0 = smov 0  }
  0x22   :  { %s13022_s7 = smov 0   ;;  %s13024_s30 = smov 0  }
  0x23   :  { %s13026_s3 = smov 0  }
  0x24 LB: > { %16084 = sst [smem:[#allocation38_spill]] %s12800_s26  ;;  %s13062_s25 = sadd.s32 4294967295, %s12836_s3   ;;  %s12836_s3 = sphi %s13026_s3, %s43_s3   ;;  %s12832_s30 = sphi %s13024_s30, %s16404_s30   ;;  %s12828_s7 = sphi %s13022_s7, %s16403_s7   ;;  %s12824_s0 = sphi %s13020_s0, %s16402_s0   ;;  %s12820_s29 = sphi %s13018_s29, %s16401_s29   ;;  %s12816_s2 = sphi %s13016_s2, %s16400_s2   ;;  %s12812_s6 = sphi %s13014_s6, %s16399_s6   ;;  %s12808_s28 = sphi %s13012_s28, %s16393_s28   ;;  %s12804_s27 = sphi %s13010_s27, %s16398_s27   ;;  %s12800_s26 = sphi %s13008_s26, %s16397_s26   ;;  %s12796_s5 = sphi %s13006_s5, %s16391_s5  }
  0x25   : > { %16085 = sst [smem:[#allocation39_spill]] %s12808_s28  ;;  %s11108_s8 = sadd.s32 4294967294, %s12836_s3  }
  0x26   : > { %16086 = sst [smem:[#allocation40_spill]] %s12812_s6  ;;  %s52_s4 = sadd.s32 1, %s12828_s7 }
  0x27   : > { %16087 = sst [smem:[#allocation41_spill]] %s12820_s29  ;;  %s55_s1 = sadd.s32 1, %s12832_s30 }
  0x28   : > { %16088 = sst [smem:[#allocation42_spill]] %s12824_s0  ;;  %p53_p0 = scmp.ge.s32.totalorder %s52_s4, 2 }
  0x29   : > { %16089 = sst [smem:[#allocation43_spill]] %s13062_s25  ;;  %s88_s24 = sadd.s32 1, %s12816_s2 }
  0x2a   : > { %p15962_p1 = scmp.ne.s32.totalorder %s12816_s2, %s12812_s6  ;;  %p96_p2 = scmp.eq.s32.totalorder %s12836_s3, 0 }
  0x2b   : > { %s16406_s4 = smov (%p53_p0, %s52_s4), 0  ;;  %s16408_s1 = smov (!%p53_p0, %s55_s1), %s12832_s30 }
  0x2c   : > { %16090 = sst [smem:[#allocation44_spill]] %s16406_s4  ;;  %p13079_p3 = por %p96_p2, %p15962_p1 }
  0x2d   : > { %p15961_p4 = scmp.ne.s32.totalorder %s12812_s6, %s12808_s28  ;;  %p57_p5 = scmp.ge.s32.totalorder %s16408_s1, 2 }
  0x2e   : > { %s16091_s21 = scalar_select %p13079_p3, 1, 0 }
  0x2f   : > { %p15967_p6 = scmp.eq.s32.totalorder %s13062_s25, 0  ;;  %s242_s29 = ssub.s32 %s12828_s7, %s16406_s4 }
  0x30   : > { %s245_s0 = sadd.s32 1, %s12804_s27  ;;  %s16410_s1 = smov (%p57_p5, %s16408_s1), 0 }
  0x31   : > { %16092 = sst [smem:[#allocation45_spill]] %s16410_s1  ;;  %p13096_p7 = por %p15967_p6, %p15961_p4 }
  0x32   : > { %p243_p8 = scmp.eq.s32.totalorder %s242_s29, 0  ;;  %s85_s19 = ssub.s32 %s12832_s30, %s16410_s1 }
  0x33   : > { %s16093_s20 = scalar_select %p13096_p7, 1, 0 }
  0x34   : > { %p252_p9 = scmp.ne.s32.totalorder %s12804_s27, %s12800_s26  ;;  %p86_p10 = scmp.eq.s32.totalorder %s85_s19, 0 }
  0x35   : > { %16094 = sst [smem:[#allocation46_spill]] %s16093_s20  ;;  %p258_p11 = scmp.ne.s32.totalorder %s12800_s26, %s12796_s5 }
  0x36   : > { %s13107_s4 = scalar_select %p243_p8, %s12804_s27, %s245_s0  }
  0x37   : > { %s13110_s18 = scalar_select %p86_p10, %s12816_s2, %s88_s24  }
  0x38   : > { %16095 = sst [smem:[#allocation47_spill]] %s13107_s4  ;;  %p13114_p12 = por %p252_p9, %p96_p2 }
  0x39   : > { %16096 = sst [smem:[#allocation48_spill]] %s13110_s18  ;;  %p13120_p13 = por %p258_p11, %p15967_p6 }
  0x3a   : > { %s16097_s17 = scalar_select %p13114_p12, 1, 0 }
  0x3b   : > { %s16098_s16 = scalar_select %p13120_p13, 1, 0 }
  0x3c   : > { %p657_p0 = scmp.eq.s32.totalorder %s13062_s25, 3  ;;  %p663_p5 = scmp.eq.s32.totalorder %s11108_s8, 3 }
  0x3d   : > { %16099 = sst [smem:[#allocation49_spill]] %s16098_s16  ;;  %p11109_p4 = scmp.ge.s32.totalorder %s12836_s3, 1 }
  0x3e   : > { %p670_p1 = scmp.lt.s32.totalorder %s12836_s3, 5  ;;  %p16100_p7 = scmp.ne.s32.totalorder %s12816_s2, %s12812_s6 }
  0x3f   : > { %p16103_p8 = scmp.ne.s32.totalorder %s12812_s6, %s12808_s28  ;;  %s12838_s29 = smov [#allocation6]  }
  0x40   : > { %p13130_p3 = por %p657_p0, %p16100_p7  ;;  %p13141_p2 = pnand %p11109_p4, %p670_p1 }
  0x41   : > { %p13137_p10 = por %p663_p5, %p16103_p8  ;;  %s682_s0 = sshll.u32 %s12838_s29, 4  ;;  %s683_s0 = int_to_ptr.vmem [resolvable:$true] %s682_s0 }
  0x42   : > { %s16101_s19 = scalar_select %p13130_p3, 1, 0 }
  0x43   : > { %s16104_s24 = scalar_select %p13137_p10, 1, 0 }
  0x44   : > { %16102 = sst [smem:[#allocation50_spill]] %s16101_s19  ;;  %p11729_p9 = pneg %p13141_p2 }
  0x45   : > { %16105 = sst [smem:[#allocation51_spill]] %s16104_s24  ;;  %s12839_s1 = smov [#allocation9]  }
  0x46   : > { %s16106_s5 = scalar_select %p13141_p2, 1, 0 }
  0x47   : > { %p13149_p7 = pnand %p11729_p9, %p15967_p6  ;;  %s708_s18 = sshll.u32 %s12839_s1, 4  ;;  %s709_s18 = int_to_ptr.vmem [resolvable:$true] %s708_s18 }
  0x48   : > { %s12157_s24 = scalar_lea.vmem %s683_s0, 384  ;;  %p12165_p5 = scmp.lt.s32.totalorder %s683_s0, %s683_s0 }
  0x49   : > { %p13155_p1 = pneg %p13149_p7  ;;  %p12158_p4 = scmp.ne.s32.totalorder %s683_s0, %s12157_s24 }
  0x4a   : > { %p12166_p8 = scmp.lt.s32.totalorder %s12157_s24, %s12157_s24 }
  0x4b   : > { %p12160_p11 = pnand %p12158_p4, %p13155_p1 }
  0x4c   : > { %p12167_p9 = por %p12166_p8, %p12165_p5 }
  0x4d   : > { %p12161_p0 = pneg %p12160_p11 }
  0x4f   : > { %p12168_p6 = pnand %p12167_p9, %p12161_p0 }
  0x51   : > { %12171 = shalt.err (!%p12168_p6)
}
  0x52   : > { %s12840_s29 = smov 128   ;;  %s12841_s1 = smov 8  }
  0x53   : > { %s16109_s16 = sld [smem:[#allocation86_spill]]  ;;  %s12183_s26 = scalar_lea.vmem %s709_s18, 256 }
  0x54   : > { %p12184_p4 = scmp.ne.s32.totalorder %s709_s18, %s12183_s26  ;;  %p12191_p5 = scmp.lt.s32.totalorder %s709_s18, %s709_s18 }
  0x55   : > { %p12192_p0 = scmp.lt.s32.totalorder %s12183_s26, %s12183_s26 }
  0x56   : > { %p12186_p11 = pnand %p12184_p4, %p13155_p1 }
  0x57   : > { %p12193_p6 = por %p12192_p0, %p12191_p5 }
  0x58   : > { %p12187_p10 = pneg %p12186_p11 }
  0x59   : > { %11732 = dma.hbm_to_vmem [thread:$0]  (!%p13149_p7), %s16109_s16, 384, %s683_s0, [#allocation7], %s12840_s29, %s12840_s29, %s12841_s1  }
  0x5a   : > { %p12194_p8 = pnand %p12193_p6, %p12187_p10 }
  0x5c   : > { %12197 = shalt.err (!%p12194_p8)
}
  0x5d   : > { %s16110_s6 = sld [smem:[#allocation88_spill]]  ;;  %s12842_s16 = smov [#allocation8]  }
  0x5e   : > { %s695_s28 = sshll.u32 %s12842_s16, 4  ;;  %s12843_s19 = smov [#allocation11]   ;;  %s696_s28 = int_to_ptr.vmem [resolvable:$true] %s695_s28 }
  0x5f   : > { %s722_s0 = sshll.u32 %s12843_s19, 4  ;;  %s12209_s25 = scalar_lea.vmem %s696_s28, 256  ;;  %s723_s0 = int_to_ptr.vmem [resolvable:$true] %s722_s0 }
  0x60   : > { %p12210_p9 = scmp.ne.s32.totalorder %s696_s28, %s12209_s25  ;;  %p12217_p11 = scmp.lt.s32.totalorder %s696_s28, %s696_s28 }
  0x61   : > { %p12218_p5 = scmp.lt.s32.totalorder %s12209_s25, %s12209_s25 }
  0x62   : > { %p12212_p10 = pnand %p12210_p9, %p13155_p1 }
  0x63   : > { %11738 = dma.hbm_to_vmem [thread:$0]  (!%p13149_p7), %s16110_s6, 256, %s709_s18, [#allocation10], %s12840_s29, %s12840_s29, %s12841_s1  }
  0x64   : > { %p12213_p4 = pneg %p12212_p10  ;;  %p12219_p0 = por %p12218_p5, %p12217_p11 }
  0x66   : > { %p12220_p6 = pnand %p12219_p0, %p12213_p4 }
  0x68   : > { %12223 = shalt.err (!%p12220_p6)
}
  0x69   : > { %s16111_s26 = sld [smem:[#allocation87_spill]]  ;;  %s12235_s6 = scalar_lea.vmem %s723_s0, 16 }
  0x6a   : > { %p12236_p8 = scmp.ne.s32.totalorder %s723_s0, %s12235_s6  ;;  %s12242_s25 = scalar_lea.vmem %s723_s0, 32 }
  0x6b   : > { %p12243_p11 = scmp.lt.s32.totalorder %s723_s0, %s723_s0  ;;  %p12244_p4 = scmp.lt.s32.totalorder %s12242_s25, %s12235_s6 }
  0x6c   : > { %p12238_p9 = pnand %p12236_p8, %p13155_p1 }
  0x6d   : > { %p12245_p5 = por %p12244_p4, %p12243_p11 }
  0x6e   : > { %p12239_p10 = pneg %p12238_p9 }
  0x6f   : > { %11735 = dma.hbm_to_vmem [thread:$0]  (!%p13149_p7), %s16111_s26, 256, %s696_s28, [#allocation7], %s12840_s29, %s12840_s29, %s12841_s1  }
  0x70   : > { %p12246_p0 = pnand %p12245_p5, %p12239_p10 }
  0x72   : > { %12249 = shalt.err (!%p12246_p0)
}
  0x73   : > { %s16112_s19 = sld [smem:[#allocation89_spill]]  ;;  %s12844_s29 = smov [#allocation12]  }
  0x74   : > { %s733_s1 = sshll.u32 %s12844_s29, 4  ;;  %s12845_s28 = smov [#allocation27]   ;;  %s734_s1 = int_to_ptr.vmem [resolvable:$true] %s733_s1 }
  0x75   : > { %s746_s18 = sshll.u32 %s12845_s28, 4  ;;  %s12261_s20 = scalar_lea.vmem %s734_s1, 16  ;;  %s747_s18 = int_to_ptr.vmem [resolvable:$true] %s746_s18 }
  0x76   : > { %p12262_p6 = scmp.ne.s32.totalorder %s734_s1, %s12261_s20  ;;  %s12268_s26 = scalar_lea.vmem %s734_s1, 32 }
  0x77   : > { %p12269_p10 = scmp.lt.s32.totalorder %s734_s1, %s734_s1  ;;  %p12270_p11 = scmp.lt.s32.totalorder %s12268_s26, %s12261_s20 }
  0x78   : > { %p12264_p8 = pnand %p12262_p6, %p13155_p1 }
  0x79   : > { %11741 = dma.hbm_to_vmem [thread:$0]  (!%p13149_p7), %s16112_s19, 16, %s723_s0, [#allocation10]  }
  0x7a   : > { %p12265_p9 = pneg %p12264_p8  ;;  %p12271_p4 = por %p12270_p11, %p12269_p10 }
  0x7c   : > { %p12272_p5 = pnand %p12271_p4, %p12265_p9 }
  0x7e   : > { %12275 = shalt.err (!%p12272_p5)
}
  0x7f   : > { %s16113_s25 = sld [smem:[#allocation90_spill]]  ;;  %s12287_s24 = scalar_lea.vmem %s747_s18, 8192 }
  0x80   : > { %p12288_p0 = scmp.ne.s32.totalorder %s747_s18, %s12287_s24  ;;  %p12295_p8 = scmp.lt.s32.totalorder %s747_s18, %s747_s18 }
  0x81   : > { %p12296_p13 = scmp.lt.s32.totalorder %s12287_s24, %s12287_s24 }
  0x82   : > { %p12290_p3 = pnand %p12288_p0, %p13155_p1 }
  0x83   : > { %p12297_p2 = por %p12296_p13, %p12295_p8 }
  0x84   : > { %p12291_p6 = pneg %p12290_p3 }
  0x85   : > { %11744 = dma.hbm_to_vmem [thread:$0]  (!%p13149_p7), %s16113_s25, 16, %s734_s1, [#allocation13]  }
  0x86   : > { %p12298_p12 = pnand %p12297_p2, %p12291_p6 }
  0x88   : > { %12301 = shalt.err (!%p12298_p12)
}
  0x89   : > { %s12846_s16 = smov 256   ;;  %s12847_s19 = smov 16  }
  0x8a   : > { %s16114_s22 = sld [smem:[#allocation103_spill]]  ;;  %s12848_s1 = smov [#allocation28]  }
  0x8b   : > { %s759_s20 = sshll.u32 %s12848_s1, 4  ;;  %s760_s20 = int_to_ptr.vmem [resolvable:$true] %s759_s20 }
  0x8c   : > { %s12313_s26 = scalar_lea.vmem %s760_s20, 4096  ;;  %p12321_p13 = scmp.lt.s32.totalorder %s760_s20, %s760_s20 }
  0x8d   : > { %p12314_p9 = scmp.ne.s32.totalorder %s760_s20, %s12313_s26  ;;  %p12322_p2 = scmp.lt.s32.totalorder %s12313_s26, %s12313_s26 }
  0x8f   : > { %p12316_p3 = pnand %p12314_p9, %p13155_p1  ;;  %p12323_p12 = por %p12322_p2, %p12321_p13 }
  0x90   : > { %11747 = dma.hbm_to_vmem [thread:$0]  (!%p13149_p7), %s16114_s22, 8192, %s747_s18, [#allocation7], %s12846_s16, %s12846_s16, %s12847_s19  }
  0x91   : > { %p12317_p10 = pneg %p12316_p3 }
  0x93   : > { %p12324_p11 = pnand %p12323_p12, %p12317_p10 }
  0x95   : > { %12327 = shalt.err (!%p12324_p11)
}
  0x96   : > { %s12849_s6 = smov 64   ;;  %s12850_s0 = smov 4  }
  0x97   : > { %s16115_s23 = sld [smem:[#allocation104_spill]]  ;;  %p11117_p4 = scmp.ge.s32.totalorder %s12836_s3, 4 }
  0x98   : > { %s781_s4 = sand.u32 (!%p11117_p4), 1, %s12836_s3   ;;  %s783_s18 = sand.u32 (!%p11117_p4), 1, %s12816_s2  }
  0x99   : > { %769 = sbr.rel (%p11117_p4) target bundleno = 348 (0x15c), region = 48  ;;  %s11118_s16 = sshll.u32 (!%p11117_p4), %s12832_s30, 4 }
  0x9a   : > { %s784_s19 = scalar_lea.vmem (!%p11117_p4), [#allocation3], %s783_s18  ;;  %s16116_s26 = sld [smem:[#allocation84_spill]] (!%p11117_p4) }
  0x9b   : > { %s791_s29 = sshll.u32 (!%p11117_p4), %s784_s19, 4  ;;  %s13224_s22 = scalar_lea.sflag (!%p11117_p4), [#allocation4], %s781_s4  ;;  %s792_s29 = int_to_ptr.vmem [resolvable:$true] %s791_s29 }
  0x9c   : > { %p16117_p1 = scmp.ne.s32.totalorder (!%p11117_p4), %s16091_s21, 0 }
  0x9d   : > { %11750 = dma.hbm_to_vmem [thread:$0]  (!%p13149_p7), %s16115_s23, 4096, %s760_s20, [#allocation10], %s12849_s6, %s12849_s6, %s12850_s0  }
  0x9e   : > { %s12340_s20 = scalar_lea.vmem %s792_s29, 16  ;;  %s12851_s6 = smov [#allocation3]  }
  0x9f   : > { %p12341_p7 = scmp.ne.s32.totalorder %s792_s29, %s12340_s20  ;;  %s12344_s0 = sshll.u32 %s12851_s6, 4  ;;  %s12345_s0 = int_to_ptr.vmem [resolvable:$false] %s12344_s0 }
  0xa0   : > { %s789_s8 = scalar_lea.hbm %s16116_s26, %s11118_s16  ;;  %s12346_s25 = scalar_lea.vmem %s12345_s0, 32 }
  0xa1   : > { %p12342_p5 = pnand %p12341_p7, %p16117_p1  ;;  %p12347_p6 = scmp.lt.s32.totalorder %s792_s29, %s12345_s0 }
  0xa2   : > { %p12348_p8 = scmp.lt.s32.totalorder %s12346_s25, %s12340_s20 }
  0xa3   : > { %p12343_p0 = pneg %p12342_p5 }
  0xa4   : > { %p12349_p9 = por %p12348_p8, %p12347_p6 }
  0xa6   : > { %p12350_p3 = pnand %p12349_p9, %p12343_p0 }
  0xa8   : > { %12353 = shalt.err (!%p12350_p3)
}
  0xa9   : > { %11685 = dma.hbm_to_vmem [thread:$0]  (%p16117_p1), %s789_s8, 16, %s792_s29, %s13224_s22  }
  0xaa   : > { %s13232_s24 = sand.u32 1, %s12804_s27   ;;  %s13235_s4 = sshll.u32 %s12828_s7, 10 }
  0xab   : > { %s13238_s18 = sshll.u32 %s13232_s24, 6  ;;  %s16118_s28 = sld [smem:[#allocation91_spill]] }
  0xac   : > { %s810_s26 = scalar_lea.vmem [#allocation14], %s13238_s18  ;;  %p16119_p13 = scmp.ne.s32.totalorder %s16097_s17, 0 }
  0xad   : > { %s817_s21 = sshll.u32 %s810_s26, 4  ;;  %s12852_s29 = smov [#allocation14]   ;;  %s818_s21 = int_to_ptr.vmem [resolvable:$true] %s817_s21 }
  0xae   : > { %s12366_s20 = scalar_lea.vmem %s818_s21, 1024  ;;  %s12370_s8 = sshll.u32 %s12852_s29, 4  ;;  %s12371_s8 = int_to_ptr.vmem [resolvable:$false] %s12370_s8 }
  0xaf   : > { %p12367_p10 = scmp.ne.s32.totalorder %s818_s21, %s12366_s20  ;;  %s12372_s6 = scalar_lea.vmem %s12371_s8, 2048 }
  0xb0   : > { %p12373_p11 = scmp.lt.s32.totalorder %s818_s21, %s12371_s8  ;;  %p12374_p4 = scmp.lt.s32.totalorder %s12372_s6, %s12366_s20 }
  0xb1   : > { %s816_s1 = scalar_lea.hbm %s16118_s28, %s13235_s4  ;;  %p12368_p2 = pnand %p12367_p10, %p16119_p13 }
  0xb2   : > { %p12375_p7 = por %p12374_p4, %p12373_p11 }
  0xb3   : > { %p12369_p12 = pneg %p12368_p2 }
  0xb5   : > { %p12376_p1 = pnand %p12375_p7, %p12369_p12 }
  0xb7   : > { %12379 = shalt.err (!%p12376_p1)
}
  0xb8   : > { %s15983_s0 = smov 64   ;;  %s15984_s25 = smov 4  }
  0xb9   : > { %11686 = dma.hbm_to_vmem [thread:$0]  (%p16119_p13), %s816_s1, 1024, %s818_s21, %s13224_s22, %s15983_s0, %s15983_s0, %s15984_s25  }
  0xba   : > { %s16120_s9 = sld [smem:[#allocation92_spill]]  ;;  %s831_s26 = scalar_lea.vmem [#allocation15], %s13238_s18 }
  0xbb   : > { %s838_s20 = sshll.u32 %s831_s26, 4  ;;  %s12855_s8 = smov [#allocation15]   ;;  %s839_s20 = int_to_ptr.vmem [resolvable:$true] %s838_s20 }
  0xbc   : > { %s12392_s29 = scalar_lea.vmem %s839_s20, 1024  ;;  %s12396_s6 = sshll.u32 %s12855_s8, 4  ;;  %s12397_s6 = int_to_ptr.vmem [resolvable:$false] %s12396_s6 }
  0xbd   : > { %p12393_p5 = scmp.ne.s32.totalorder %s839_s20, %s12392_s29  ;;  %s12398_s23 = scalar_lea.vmem %s12397_s6, 2048 }
  0xbe   : > { %p12399_p8 = scmp.lt.s32.totalorder %s839_s20, %s12397_s6  ;;  %p12400_p9 = scmp.lt.s32.totalorder %s12398_s23, %s12392_s29 }
  0xbf   : > { %p12394_p0 = pnand %p12393_p5, %p16119_p13 }
  0xc0   : > { %s837_s28 = scalar_lea.hbm %s16120_s9, %s13235_s4  ;;  %p12401_p3 = por %p12400_p9, %p12399_p8 }
  0xc1   : > { %p12395_p6 = pneg %p12394_p0 }
  0xc3   : > { %p12402_p10 = pnand %p12401_p3, %p12395_p6 }
  0xc5   : > { %12405 = shalt.err (!%p12402_p10)
}
  0xc6   : > { %11687 = dma.hbm_to_vmem [thread:$0]  (%p16119_p13), %s837_s28, 1024, %s839_s20, %s13224_s22, %s15983_s0, %s15983_s0, %s15984_s25  }
  0xc7   : > { %s16121_s10 = sld [smem:[#allocation93_spill]]  ;;  %s852_s19 = scalar_lea.vmem [#allocation16], %s13238_s18 }
  0xc8   : > { %s859_s26 = sshll.u32 %s852_s19, 4  ;;  %s12856_s29 = smov [#allocation16]   ;;  %s860_s26 = int_to_ptr.vmem [resolvable:$true] %s859_s26 }
  0xc9   : > { %s12418_s23 = scalar_lea.vmem %s860_s26, 1024  ;;  %s12422_s8 = sshll.u32 %s12856_s29, 4  ;;  %s12423_s8 = int_to_ptr.vmem [resolvable:$false] %s12422_s8 }
  0xca   : > { %p12419_p2 = scmp.ne.s32.totalorder %s860_s26, %s12418_s23  ;;  %s12424_s6 = scalar_lea.vmem %s12423_s8, 2048 }
  0xcb   : > { %p12425_p4 = scmp.lt.s32.totalorder %s860_s26, %s12423_s8  ;;  %p12426_p7 = scmp.lt.s32.totalorder %s12424_s6, %s12418_s23 }
  0xcc   : > { %p12420_p12 = pnand %p12419_p2, %p16119_p13 }
  0xcd   : > { %s858_s16 = scalar_lea.hbm %s16121_s10, %s13235_s4  ;;  %p12427_p1 = por %p12426_p7, %p12425_p4 }
  0xce   : > { %p12421_p11 = pneg %p12420_p12 }
  0xd0   : > { %p12428_p5 = pnand %p12427_p1, %p12421_p11 }
  0xd2   : > { %12431 = shalt.err (!%p12428_p5)
}
  0xd3   : > { %11688 = dma.hbm_to_vmem [thread:$0]  (%p16119_p13), %s858_s16, 1024, %s860_s26, %s13224_s22, %s15983_s0, %s15983_s0, %s15984_s25  }
  0xd4   : > { %s16122_s11 = sld [smem:[#allocation94_spill]]  ;;  %s873_s21 = scalar_lea.vmem [#allocation17], %s13238_s18 }
  0xd5   : > { %s880_s19 = sshll.u32 %s873_s21, 4  ;;  %s12857_s29 = smov [#allocation17]   ;;  %s881_s19 = int_to_ptr.vmem [resolvable:$true] %s880_s19 }
  0xd6   : > { %s12444_s23 = scalar_lea.vmem %s881_s19, 1024  ;;  %s12448_s8 = sshll.u32 %s12857_s29, 4  ;;  %s12449_s8 = int_to_ptr.vmem [resolvable:$false] %s12448_s8 }
  0xd7   : > { %p12445_p0 = scmp.ne.s32.totalorder %s881_s19, %s12444_s23  ;;  %s12450_s6 = scalar_lea.vmem %s12449_s8, 2048 }
  0xd8   : > { %p12451_p9 = scmp.lt.s32.totalorder %s881_s19, %s12449_s8  ;;  %p12452_p3 = scmp.lt.s32.totalorder %s12450_s6, %s12444_s23 }
  0xd9   : > { %p12446_p6 = pnand %p12445_p0, %p16119_p13 }
  0xda   : > { %s879_s1 = scalar_lea.hbm %s16122_s11, %s13235_s4  ;;  %p12453_p10 = por %p12452_p3, %p12451_p9 }
  0xdb   : > { %p12447_p8 = pneg %p12446_p6 }
  0xdd   : > { %p12454_p2 = pnand %p12453_p10, %p12447_p8 }
  0xdf   : > { %12457 = shalt.err (!%p12454_p2)
}
  0xe0   : > { %11689 = dma.hbm_to_vmem [thread:$0]  (%p16119_p13), %s879_s1, 1024, %s881_s19, %s13224_s22, %s15983_s0, %s15983_s0, %s15984_s25  }
  0xe1   : > { %s13293_s4 = sshll.u32 %s12828_s7, 4  ;;  %s893_s18 = scalar_lea.vmem [#allocation18], %s13232_s24 }
  0xe2   : > { %s900_s16 = sshll.u32 %s893_s18, 4  ;;  %s16123_s12 = sld [smem:[#allocation95_spill]]  ;;  %s901_s16 = int_to_ptr.vmem [resolvable:$true] %s900_s16 }
  0xe3   : > { %s12470_s21 = scalar_lea.vmem %s901_s16, 16  ;;  %s12858_s23 = smov [#allocation18]  }
  0xe4   : > { %p12471_p12 = scmp.ne.s32.totalorder %s901_s16, %s12470_s21  ;;  %s12474_s29 = sshll.u32 %s12858_s23, 4  ;;  %s12475_s29 = int_to_ptr.vmem [resolvable:$false] %s12474_s29 }
  0xe5   : > { %s12476_s8 = scalar_lea.vmem %s12475_s29, 32  ;;  %p12477_p7 = scmp.lt.s32.totalorder %s901_s16, %s12475_s29 }
  0xe6   : > { %p12472_p11 = pnand %p12471_p12, %p16119_p13  ;;  %p12478_p1 = scmp.lt.s32.totalorder %s12476_s8, %s12470_s21 }
  0xe8   : > { %s898_s20 = scalar_lea.hbm %s16123_s12, %s13293_s4  ;;  %p12473_p4 = pneg %p12472_p11 }
  0xe9   : > { %p12479_p5 = por %p12478_p1, %p12477_p7 }
  0xeb   : > { %p12480_p0 = pnand %p12479_p5, %p12473_p4 }
  0xed   : > { %12483 = shalt.err (!%p12480_p0)
}
  0xee   : > { %11690 = dma.hbm_to_vmem [thread:$0]  (%p16119_p13), %s898_s20, 16, %s901_s16, %s13224_s22  }
  0xef   : > { %s16124_s13 = sld [smem:[#allocation96_spill]]  ;;  %s910_s18 = scalar_lea.vmem [#allocation19], %s13232_s24 }
  0xf0   : > { %s917_s26 = sshll.u32 %s910_s18, 4  ;;  %s932_s23 = scalar_lea.hbm %s15943_s14, %s13293_s4  ;;  %s918_s26 = int_to_ptr.vmem [resolvable:$true] %s917_s26 }
  0xf1   : > { %s12496_s29 = scalar_lea.vmem %s918_s26, 16  ;;  %s12859_s8 = smov [#allocation19]  }
  0xf2   : > { %p12497_p6 = scmp.ne.s32.totalorder %s918_s26, %s12496_s29  ;;  %s12500_s0 = sshll.u32 %s12859_s8, 4  ;;  %s12501_s0 = int_to_ptr.vmem [resolvable:$false] %s12500_s0 }
  0xf3   : > { %s12502_s16 = scalar_lea.vmem %s12501_s0, 32  ;;  %p12503_p3 = scmp.lt.s32.totalorder %s918_s26, %s12501_s0 }
  0xf4   : > { %p12498_p8 = pnand %p12497_p6, %p16119_p13  ;;  %p12504_p10 = scmp.lt.s32.totalorder %s12502_s16, %s12496_s29 }
  0xf5   : > { %s915_s6 = scalar_lea.hbm %s16124_s13, %s13293_s4 }
  0xf6   : > { %p12499_p9 = pneg %p12498_p8  ;;  %p12505_p2 = por %p12504_p10, %p12503_p3 }
  0xf8   : > { %p12506_p12 = pnand %p12505_p2, %p12499_p9 }
  0xfa   : > { %12509 = shalt.err (!%p12506_p12)
}
  0xfb   : > { %11691 = dma.hbm_to_vmem [thread:$0]  (%p16119_p13), %s915_s6, 16, %s918_s26, %s13224_s22  }
  0xfc   : > { %s927_s20 = scalar_lea.vmem [#allocation20], %s13232_s24  ;;  %s15985_s19 = sshll.u32 %s13232_s24, 7 }
  0xfd   : > { %s934_s1 = sshll.u32 %s927_s20, 4  ;;  %s12860_s0 = smov [#allocation20]   ;;  %s935_s1 = int_to_ptr.vmem [resolvable:$true] %s934_s1 }
  0xfe   : > { %s12522_s18 = scalar_lea.vmem %s935_s1, 16  ;;  %s12526_s28 = sshll.u32 %s12860_s0, 4  ;;  %s12527_s28 = int_to_ptr.vmem [resolvable:$false] %s12526_s28 }
  0xff   : > { %p12523_p11 = scmp.ne.s32.totalorder %s935_s1, %s12522_s18  ;;  %s12528_s21 = scalar_lea.vmem %s12527_s28, 32 }
 0x100   : > { %p12529_p1 = scmp.lt.s32.totalorder %s935_s1, %s12527_s28  ;;  %p12530_p5 = scmp.lt.s32.totalorder %s12528_s21, %s12522_s18 }
 0x101   : > { %p12524_p4 = pnand %p12523_p11, %p16119_p13 }
 0x102   : > { %p12531_p0 = por %p12530_p5, %p12529_p1 }
 0x103   : > { %p12525_p7 = pneg %p12524_p4 }
 0x105   : > { %p12532_p6 = pnand %p12531_p0, %p12525_p7 }
 0x107   : > { %12535 = shalt.err (!%p12532_p6)
}
 0x108   : > { %11692 = dma.hbm_to_vmem [thread:$0]  (%p16119_p13), %s932_s23, 16, %s935_s1, %s13224_s22  }
 0x109   : > { %s11392_s29 = sshll.u32 %s12828_s7, 11  ;;  %s945_s8 = scalar_lea.vmem [#allocation21], %s15985_s19 }
 0x10a   : > { %s952_s16 = sshll.u32 %s945_s8, 4  ;;  %s951_s0 = scalar_lea.hbm %s15944_s15, %s11392_s29  ;;  %s953_s16 = int_to_ptr.vmem [resolvable:$true] %s952_s16 }
 0x10b   : > { %s12548_s28 = scalar_lea.vmem %s953_s16, 2048  ;;  %s12861_s21 = smov [#allocation21]  }
 0x10c   : > { %p12549_p8 = scmp.ne.s32.totalorder %s953_s16, %s12548_s28  ;;  %s12552_s6 = sshll.u32 %s12861_s21, 4  ;;  %s12553_s6 = int_to_ptr.vmem [resolvable:$false] %s12552_s6 }
 0x10d   : > { %s12554_s26 = scalar_lea.vmem %s12553_s6, 4096  ;;  %p12555_p10 = scmp.lt.s32.totalorder %s953_s16, %s12553_s6 }
 0x10e   : > { %p12550_p9 = pnand %p12549_p8, %p16119_p13  ;;  %p12556_p2 = scmp.lt.s32.totalorder %s12554_s26, %s12548_s28 }
 0x110   : > { %p12551_p3 = pneg %p12550_p9  ;;  %p12557_p12 = por %p12556_p2, %p12555_p10 }
 0x112   : > { %p12558_p11 = pnand %p12557_p12, %p12551_p3 }
 0x114   : > { %12561 = shalt.err (!%p12558_p11)
}
 0x115   : > { %s12862_s23 = smov 128   ;;  %s12863_s1 = smov 8  }
 0x116   : > { %11693 = dma.hbm_to_vmem [thread:$0]  (%p16119_p13), %s951_s0, 2048, %s953_s16, %s13224_s22, %s12862_s23, %s12862_s23, %s12863_s1  }
 0x117   : > { %s11137_s8 = sshll.u32 %s13232_s24, 1  ;;  %s11393_s20 = sshll.u32 %s12828_s7, 5 }
 0x118   : > { %s16125_s25 = sld [smem:[#allocation97_spill]]  ;;  %s966_s6 = scalar_lea.vmem [#allocation22], %s11137_s8 }
 0x119   : > { %s974_s28 = sshll.u32 %s966_s6, 4  ;;  %s16126_s10 = sld [smem:[#allocation98_spill]]  ;;  %s975_s28 = int_to_ptr.vmem [resolvable:$true] %s974_s28 }
 0x11a   : > { %s12574_s12 = scalar_lea.vmem %s975_s28, 32  ;;  %s12864_s16 = smov [#allocation22]  }
 0x11b   : > { %p12575_p4 = scmp.ne.s32.totalorder %s975_s28, %s12574_s12  ;;  %s12578_s0 = sshll.u32 %s12864_s16, 4  ;;  %s12579_s0 = int_to_ptr.vmem [resolvable:$false] %s12578_s0 }
 0x11c   : > { %s12580_s23 = scalar_lea.vmem %s12579_s0, 64  ;;  %p12581_p5 = scmp.lt.s32.totalorder %s975_s28, %s12579_s0 }
 0x11d   : > { %p12576_p7 = pnand %p12575_p4, %p16119_p13  ;;  %p12582_p0 = scmp.lt.s32.totalorder %s12580_s23, %s12574_s12 }
 0x11e   : > { %s972_s19 = scalar_lea.hbm %s16125_s25, %s11393_s20 }
 0x11f   : > { %s13350_s11 = scalar_lea.hbm %s16126_s10, %s11392_s29  ;;  %p12577_p1 = pneg %p12576_p7 }
 0x120   : > { %p12583_p6 = por %p12582_p0, %p12581_p5 }
 0x122   : > { %p12584_p8 = pnand %p12583_p6, %p12577_p1 }
 0x124   : > { %12587 = shalt.err (!%p12584_p8)
}
 0x125   : > { %11694 = dma.hbm_to_vmem [thread:$0]  (%p16119_p13), %s972_s19, 32, %s975_s28, %s13224_s22  }
 0x126   : > { %s16127_s9 = sshll.u32 %s13232_s24, 7  ;;  %s16128_s8 = sld [smem:[#allocation99_spill]] }
 0x127   : > { %s985_s10 = scalar_lea.vmem [#allocation23], %s16127_s9  ;;  %s12865_s12 = smov [#allocation23]  }
 0x128   : > { %s992_s25 = sshll.u32 %s985_s10, 4  ;;  %s12604_s21 = sshll.u32 %s12865_s12, 4  ;;  %s993_s25 = int_to_ptr.vmem [resolvable:$true] %s992_s25  ;;  %s12605_s21 = int_to_ptr.vmem [resolvable:$false] %s12604_s21 }
 0x129   : > { %s12600_s18 = scalar_lea.vmem %s993_s25, 2048  ;;  %s12606_s6 = scalar_lea.vmem %s12605_s21, 4096 }
 0x12a   : > { %p12601_p9 = scmp.ne.s32.totalorder %s993_s25, %s12600_s18  ;;  %p12607_p2 = scmp.lt.s32.totalorder %s993_s25, %s12605_s21 }
 0x12b   : > { %p12608_p12 = scmp.lt.s32.totalorder %s12606_s6, %s12600_s18 }
 0x12c   : > { %s1010_s20 = scalar_lea.hbm %s16128_s8, %s13293_s4  ;;  %p12602_p3 = pnand %p12601_p9, %p16119_p13 }
 0x12d   : > { %p12609_p11 = por %p12608_p12, %p12607_p2 }
 0x12e   : > { %p12603_p10 = pneg %p12602_p3 }
 0x130   : > { %p12610_p4 = pnand %p12609_p11, %p12603_p10 }
 0x132   : > { %12613 = shalt.err (!%p12610_p4)
}
 0x133   : > { %s16129_s19 = smov 4   ;;  %s16130_s28 = smov 64  }
 0x134   : > { %11695 = dma.hbm_to_vmem [thread:$0]  (%p16119_p13), %s13350_s11, 2048, %s993_s25, %s13224_s22, %s16130_s28, %s16130_s28, %s16129_s19  }
 0x135   : > { %s1005_s26 = scalar_lea.vmem [#allocation24], %s13232_s24  ;;  %s16131_s9 = sld [smem:[#allocation100_spill]] }
 0x136   : > { %s1012_s16 = sshll.u32 %s1005_s26, 4  ;;  %s12866_s1 = smov [#allocation24]   ;;  %s1013_s16 = int_to_ptr.vmem [resolvable:$true] %s1012_s16 }
 0x137   : > { %s12626_s29 = scalar_lea.vmem %s1013_s16, 16  ;;  %s12630_s18 = sshll.u32 %s12866_s1, 4  ;;  %s12631_s18 = int_to_ptr.vmem [resolvable:$false] %s12630_s18 }
 0x138   : > { %p12627_p7 = scmp.ne.s32.totalorder %s1013_s16, %s12626_s29  ;;  %s12632_s12 = scalar_lea.vmem %s12631_s18, 32 }
 0x139   : > { %p12633_p0 = scmp.lt.s32.totalorder %s1013_s16, %s12631_s18  ;;  %p12634_p6 = scmp.lt.s32.totalorder %s12632_s12, %s12626_s29 }
 0x13a   : > { %p12628_p1 = pnand %p12627_p7, %p16119_p13 }
 0x13b   : > { %s1027_s10 = scalar_lea.hbm %s16131_s9, %s13293_s4  ;;  %p12635_p8 = por %p12634_p6, %p12633_p0 }
 0x13c   : > { %p12629_p5 = pneg %p12628_p1 }
 0x13e   : > { %p12636_p9 = pnand %p12635_p8, %p12629_p5 }
 0x140   : > { %12639 = shalt.err (!%p12636_p9)
}
 0x141   : > { %11696 = dma.hbm_to_vmem [thread:$0]  (%p16119_p13), %s1010_s20, 16, %s1013_s16, %s13224_s22  }
 0x142   : > { %s1022_s21 = scalar_lea.vmem [#allocation25], %s13232_s24  ;;  %s16132_s26 = sld [smem:[#allocation101_spill]] }
 0x143   : > { %s1029_s6 = sshll.u32 %s1022_s21, 4  ;;  %s12867_s1 = smov [#allocation25]   ;;  %s1030_s6 = int_to_ptr.vmem [resolvable:$true] %s1029_s6 }
 0x144   : > { %s12652_s29 = scalar_lea.vmem %s1030_s6, 16  ;;  %s12656_s18 = sshll.u32 %s12867_s1, 4  ;;  %s12657_s18 = int_to_ptr.vmem [resolvable:$false] %s12656_s18 }
 0x145   : > { %p12653_p3 = scmp.ne.s32.totalorder %s1030_s6, %s12652_s29  ;;  %s12658_s12 = scalar_lea.vmem %s12657_s18, 32 }
 0x146   : > { %p12659_p12 = scmp.lt.s32.totalorder %s1030_s6, %s12657_s18  ;;  %p12660_p11 = scmp.lt.s32.totalorder %s12658_s12, %s12652_s29 }
 0x147   : > { %p12654_p10 = pnand %p12653_p3, %p16119_p13 }
 0x148   : > { %s1044_s0 = scalar_lea.hbm %s16132_s26, %s13293_s4  ;;  %p12661_p4 = por %p12660_p11, %p12659_p12 }
 0x149   : > { %p12655_p2 = pneg %p12654_p10 }
 0x14b   : > { %p12662_p7 = pnand %p12661_p4, %p12655_p2 }
 0x14d   : > { %12665 = shalt.err (!%p12662_p7)
}
 0x14e   : > { %11697 = dma.hbm_to_vmem [thread:$0]  (%p16119_p13), %s1027_s10, 16, %s1030_s6, %s13224_s22  }
 0x14f   : > { %s1039_s11 = scalar_lea.vmem [#allocation26], %s13232_s24  ;;  %s12868_s19 = smov [#allocation26]  }
 0x150   : > { %s1046_s25 = sshll.u32 %s1039_s11, 4  ;;  %s12682_s28 = sshll.u32 %s12868_s19, 4  ;;  %s1047_s25 = int_to_ptr.vmem [resolvable:$true] %s1046_s25  ;;  %s12683_s28 = int_to_ptr.vmem [resolvable:$false] %s12682_s28 }
 0x151   : > { %s12678_s21 = scalar_lea.vmem %s1047_s25, 16  ;;  %s12684_s26 = scalar_lea.vmem %s12683_s28, 32 }
 0x152   : > { %p12679_p1 = scmp.ne.s32.totalorder %s1047_s25, %s12678_s21  ;;  %p12685_p6 = scmp.lt.s32.totalorder %s1047_s25, %s12683_s28 }
 0x153   : > { %p12686_p8 = scmp.lt.s32.totalorder %s12684_s26, %s12678_s21 }
 0x154   : > { %p12680_p5 = pnand %p12679_p1, %p16119_p13 }
 0x155   : > { %p12687_p9 = por %p12686_p8, %p12685_p6 }
 0x156   : > { %p12681_p0 = pneg %p12680_p5 }
 0x158   : > { %p12688_p3 = pnand %p12687_p9, %p12681_p0 }
 0x15a   : > { %12691 = shalt.err (!%p12688_p3)
}
 0x15b   : > { %11698 = dma.hbm_to_vmem [thread:$0]  (%p16119_p13), %s1044_s0, 16, %s1047_s25, %s13224_s22  }
 0x15c PF: > { %p16134_p10 = scmp.ne.s32.totalorder %s16106_s5, 0 }
 0x15e   : > { %1055 = sbr.rel (%p16134_p10) target bundleno = 4938 (0x134a), region = 116 }
 0x163   : > { %s16135_s6 = sld [smem:[#allocation43_spill]] }
 0x164   : > { %s16136_s29 = sld [smem:[#allocation40_spill]] }
 0x165   : > { %s16137_s1 = sld [smem:[#allocation46_spill]] }
 0x169   : > { %s1057_s18 = sand.u32 1, %s16135_s6  }
 0x16a   : > { %s13417_s12 = sand.u32 1, %s16136_s29   ;;  %s1058_s20 = scalar_lea.sflag [#allocation4], %s1057_s18 }
 0x16b   : > { %p16138_p2 = scmp.ne.s32.totalorder %s16137_s1, 0 }
 0x16d   : > { %12763 = dma.done.wait (%p16138_p2), %s1058_s20, 16  }
 0x16e   : > { %12765 = vsyncadd (%p16138_p2), %s1058_s20, 4294967280  ;;  %p16139_p13 = scmp.eq.s32.totalorder %s16135_s6, 0 }
 0x170   : > { %12767 = dma.done.wait (%p16139_p13), [#allocation7], 640   ;;  %p16140_p12 = pmov %p16139_p13 }
 0x172   : > { %12769 = vsyncadd (%p16140_p12), [#allocation7], 4294966656  ;;  %p16141_p11 = pmov %p16140_p12 }
 0x174   : > { %12771 = dma.done.wait (%p16141_p11), [#allocation10], 272   ;;  %p16142_p4 = pmov %p16141_p11 }
 0x176   : > { %12773 = vsyncadd (%p16142_p4), [#allocation10], 4294967024  ;;  %p16143_p7 = pmov %p16142_p4 }
 0x177   : > { %p16144_p1 = pmov %p16142_p4 }
 0x178   : > { %12775 = dma.done.wait (%p16143_p7), [#allocation13], 16  }
 0x179   : > { %12777 = vsyncadd (%p16144_p1), [#allocation13], 4294967280  ;;  %s16145_s22 = sld [smem:[#allocation38_spill]] }
 0x17a   : > { %s16146_s5 = sld [smem:[#allocation49_spill]] }
 0x17f   : > { %s13437_s4 = sand.u32 1, %s16145_s22  }
 0x180   : > { %s11152_s0 = sshll.u32 %s13437_s4, 6  ;;  %p16147_p5 = scmp.ne.s32.totalorder %s16146_s5, 0 }
 0x181   : > { %s13440_s16 = scalar_lea.vmem [#allocation14], %s11152_s0 }
 0x182   : > { %12779 = dma.done.wait (%p16147_p5), %s1058_s20, 8320  }
 0x183   : > { %12781 = vsyncadd (%p16147_p5), %s1058_s20, 4294958976  ;;  %s11156_s11 = sshll.u32 %s13437_s4, 7  ;;  %s11157_s25 = sshll.u32 %s13437_s4, 1 }
 0x184   : > { %s13448_s21 = scalar_lea.vmem [#allocation15], %s11152_s0  ;;  %s13450_s19 = scalar_lea.vmem [#allocation16], %s11152_s0 }
 0x185   : > { %s13452_s28 = scalar_lea.vmem [#allocation17], %s11152_s0  ;;  %s13457_s29 = scalar_lea.vmem [#allocation21], %s11156_s11 }
 0x186   : > { %s13459_s1 = scalar_lea.vmem [#allocation22], %s11157_s25  ;;  %s13461_s18 = scalar_lea.vmem [#allocation23], %s11156_s11 }
 0x187   : > { %p16148_p0 = pmov %p16144_p1 }
 0x189   : > { %12783 = dma.done.wait (%p16148_p0), [#allocation7], 8192   ;;  %p16149_p6 = pmov %p16148_p0 }
 0x18a   : > { %p16150_p8 = pmov %p16148_p0 }
 0x18b   : > { %12785 = vsyncadd (%p16149_p6), [#allocation7], 4294959104 }
 0x18c   : > { %12787 = dma.done.wait (%p16150_p8), [#allocation10], 4096   ;;  %p16151_p9 = pmov %p16148_p0 }
 0x18d   : > { %s16152_s0 = sld [smem:[#allocation42_spill]]  ;;  %s11161_s25 = sshll.u32 %s13417_s12, 4 }
 0x18e   : > { %12789 = vsyncadd (%p16151_p9), [#allocation10], 4294963200  ;;  %s16153_s20 = sld [smem:[#allocation83_spill]]  ;;  %s13483_s9 = scalar_lea.vmem [#allocation29], %s11161_s25 }
 0x18f   : > { %s16154_s17 = sld [smem:[#allocation85_spill]] }
 0x190   : > { %s16155_s13 = sld [smem:[#allocation41_spill]] }
 0x193   : > { %p1332_p3 = scmp.lt.s32.totalorder %s16152_s0, 1 }
 0x195   : > { %s16412_s0 = smov (!%p1332_p3, %s16152_s0), 1 }
 0x196   : > { %s11395_s11 = sshll.u32 %s16412_s0, 4  ;;  %p11166_p10 = scmp.ne.s32.totalorder %s16155_s13, 0 }
 0x197   : > { %s1336_s10 = scalar_lea.vmem %s16153_s20, %s11395_s11  ;;  %s1341_s8 = scalar_lea.vmem %s16154_s17, %s11395_s11 }
 0x198   : > { %1346 = sbr.rel (%p11166_p10) target bundleno = 1057 (0x421), region = 204 }
 0x19d   : > { %v1347_v0 = vld [vmem:[%s1336_s10] sm:$0xff]  ;;  %v1369_v1 = vld [vmem:[#allocation8 + $0x8] sm:$0xf]  ;;  %vm1377_vm0 = vcmask 1043456   ;;  %v12869_v2 = vmov 0   ;;  %vm1463_vm1 = vcmask 1044480   ;;  %v1349_v10 = vlaneseq }
 0x19e   : > { %11886 = vset.pattern.permute.xlu0 %v12869_v2  ;;  %11529 = vmatprep.subr.msk.mxu0 %vm1377_vm0, %v1369_v1  ;;  %v1365_v3 = vld [vmem:[#allocation6 + $0x10] sm:$0x1f]  ;;  %v1368_v4 = vld [vmem:[#allocation8] sm:$0xff]  ;;  %v1364_v5 = vld [vmem:[#allocation6 + $0x8] sm:$0xff]  ;;  %vm1370_vm2 = vcmask 97280   ;;  %vm1456_vm3 = vcmask 171008  }
 0x19f   : > { %1352 = vperm.xlu0 %11886, %v1347_v0   ;;  %11536 = vmatprep.subr.msk.mxu1 %vm1463_vm1, %v1365_v3  ;;  %v1366_v6 = vld [vmem:[%s1341_s8] sm:$0xff]  ;;  %v1348_v7 = vld [vmem:[%s1336_s10 + $0x8] sm:$0xff]  ;;  %v1363_v9 = vld [vmem:[#allocation6] sm:$0xff]  ;;  %v1350_v11 = vand.u32 127, %v1349_v10  ;;  %v12870_v13 = vmov 0.0  }
 0x1a0   : > { %11530 = vmatpush3.msk.msra.mxu0 %vm1377_vm0, %v1369_v1  ;;  %11537 = vmatpush3.msk.msra.mxu1 %vm1463_vm1, %v1365_v3  ;;  %v1367_v8 = vld [vmem:[%s1341_s8 + $0x8] sm:$0xff]  ;;  %v1542_v21 = vld [vmem:[#allocation9] sm:$0xff] }
 0x1a1   : > { %11531 = vmatprep.subr.mxu0 %v1368_v4  ;;  %11538 = vmatprep.subr.mxu1 %v1364_v5  ;;  %v1543_v24 = vld [vmem:[#allocation9 + $0x8] sm:$0xff]  ;;  %v11175_v44 = vld [vmem:[#allocation11] ss:$0 sm:$0xff]  ;;  %v11176_v46 = vld [vmem:[#allocation12] ss:$0 sm:$0xff] }
 0x1a2   : > { %11532 = vmatpush3.msra.mxu0 %v1368_v4  ;;  %11533 = vmatprep.mubr.msk.f32.mxu0 %vm1370_vm2, %v1366_v6 }
 0x1a3   : > { %1355 = vperm.xlu0 %11886, %v1348_v7   ;;  %11539 = vmatpush3.msra.mxu1 %v1364_v5 }
 0x1a4   : > { %11534 = vmatmul.mubr.msk.f32.vlgmr.msra.gmra.mxu0 %vm1370_vm2, %v1367_v8  ;;  %11540 = vmatprep.subr.mxu1 %v1363_v9 }
 0x1a5   : > { %11541 = vmatpush3.msra.mxu1 %v1363_v9 }
 0x21a   : > { %v1353_v12 = vpop.permute.xlu0 %1352 }
 0x21b   : > { %vm1357_vm4 = vcmp.eq.s32.totalorder %v1353_v12, %v1350_v11 }
 0x21c   : > { %v11167_v14 = vsel %vm1357_vm4, 1.0, %v12870_v13 }
 0x21d   : > { %11542 = vmatprep.mubr.msk.f32.mxu1 %vm1456_vm3, %v11167_v14 }
 0x21e   : > { %v1356_v15 = vpop.permute.xlu0 %1355 }
 0x21f   : > { %vm1358_vm5 = vcmp.eq.s32.totalorder %v1356_v15, %v1350_v11 }
 0x220   : > { %v11168_v16 = vsel %vm1358_vm5, 1.0, %v12870_v13 }
 0x221   : > { %11543 = vmatmul.mubr.msk.f32.vlgmr.msra.gmra.mxu1 %vm1456_vm3, %v11168_v16 }
 0x264   : > { %v11535_v17 = vpop.f32.mrf.mxu0 }
 0x266   : > { %v1447_v19 = vpop.f32.mrf.mxu0 }
 0x2e1   : > { %v11544_v18 = vpop.f32.mrf.mxu1 }
 0x2e2   : > { %v1539_v22 = vadd.f32 %v11544_v18, %v11535_v17 }
 0x2e3   : > { %v1533_v20 = vpop.f32.mrf.mxu1 }
 0x2e4   : > { %v1534_v23 = vadd.f32 %v1533_v20, %v1447_v19  ;;  %v1545_v27 = vadd.f32 %v1543_v24, %v1539_v22 }
 0x2e6   : > { %v1544_v25 = vadd.f32 %v1542_v21, %v1534_v23  ;;  %v1547_v28 = vmul.f32 11.313708, %v1545_v27 }
 0x2e8   : > { %v1546_v26 = vmul.f32 11.313708, %v1544_v25 }
 0x2ea   : > { %1550 = vadd.xlane.f32.xlu1 %v1546_v26 }
 0x2ee   : > { %1552 = vadd.xlane.f32.xlu1 %v1547_v28 }
 0x373   : > { %v1551_v29 = vpop.xlane.xlu1 %1550 }
 0x374   : > { %v1555_v30 = vmul.f32 0.0078125, %v1551_v29 }
 0x376   : > { %v1557_v31 = vsub.f32 %v1546_v26, %v1555_v30 }
 0x377   : > { %v1553_v32 = vpop.xlane.xlu1 %1552 }
 0x378   : > { %v1556_v33 = vmul.f32 0.0078125, %v1553_v32  ;;  %v1559_v34 = vmul.f32 %v1557_v31, %v1557_v31 }
 0x37a   : > { %v1558_v35 = vsub.f32 %v1547_v28, %v1556_v33  ;;  %1561 = vadd.xlane.f32.xlu0 %v1559_v34 }
 0x37c   : > { %v1560_v36 = vmul.f32 %v1558_v35, %v1558_v35 }
 0x37e   : > { %1563 = vadd.xlane.f32.xlu1 %v1560_v36 }
 0x403   : > { %v1562_v37 = vpop.xlane.xlu0 %1561 }
 0x404   : > { %v1565_v38 = vmul.f32 0.0078125, %v1562_v37 }
 0x406   : > { %v1567_v39 = vadd.f32 1e-06, %v1565_v38 }
 0x407   : > { %v1564_v40 = vpop.xlane.xlu1 %1563 }
 0x408   : > { %11887 = vrsqrt.f32 %v1567_v39  ;;  %v1566_v41 = vmul.f32 0.0078125, %v1564_v40 }
 0x40a   : > { %v1568_v42 = vadd.f32 1e-06, %v1566_v41 }
 0x40c   : > { %11889 = vrsqrt.f32 %v1568_v42 }
 0x415   : > { %v11888_v43 = vpop.eup %11887 }
 0x416   : > { %v1571_v45 = vmul.f32 %v11888_v43, %v1557_v31 }
 0x418   : > { %v1579_v47 = vmul.f32 %v11175_v44, %v1571_v45 }
 0x419   : > { %v11890_v48 = vpop.eup %11889 }
 0x41a   : > { %v1587_v49 = vadd.f32 %v11176_v46, %v1579_v47  ;;  %v1572_v50 = vmul.f32 %v11890_v48, %v1558_v35 }
 0x41c   : > { %1589 = vst [vmem:[#allocation2] sm:$0xff] %v1587_v49  ;;  %v1580_v51 = vmul.f32 %v11175_v44, %v1572_v50 }
 0x41e   : > { %v1588_v52 = vadd.f32 %v11176_v46, %v1580_v51 }
 0x420   : > { %1590 = vst [vmem:[#allocation2 + $0x8] sm:$0xff] %v1588_v52 }
 0x421 PF: > { %v11896_v53 = vld [vmem:[%s13440_s16 + $0x38] sm:$0xff]   ;;  %v15988_v54 = vmov 0.0   ;;  %v11898_v56 = vld [vmem:[%s13440_s16 + $0x30] sm:$0xff]   ;;  %vm12872_vm6 = vmmov 0   ;;  %v11900_v58 = vld [vmem:[%s13440_s16 + $0x28] sm:$0xff]   ;;  %s12873_s13 = smov 64   ;;  %v1712_v31 = vlaneseq }
 0x422   : > { %11545 = vmatprep.subr.bf16.mxu0 %v15988_v54  ;;  %11565 = vmatprep.subr.bf16.mxu1 %v15988_v54  ;;  %v11897_v55 = vld [vmem:[%s13448_s21 + $0x38] sm:$0xff]   ;;  %v11899_v57 = vld [vmem:[%s13448_s21 + $0x30] sm:$0xff]   ;;  %v11901_v59 = vld [vmem:[%s13448_s21 + $0x28] sm:$0xff]   ;;  %v12874_v29 = vmov 1983009808   ;;  %vm5514_vm7 = vcmask 523264  }
 0x423   : > { %11546 = vmatpush3.bf16.msra.mxu0 %v11896_v53  ;;  %11561 = vmatprep.mubr.msk.bf16.mxu0 %vm12872_vm6, %v15988_v54  ;;  %v11902_v60 = vld [vmem:[%s13440_s16 + $0x20] sm:$0xff]   ;;  %v11904_v62 = vld [vmem:[%s13440_s16 + $0x18] sm:$0xff]   ;;  %v11906_v0 = vld [vmem:[%s13440_s16 + $0x10] sm:$0xff]   ;;  %v1710_v30 = vunpack.c.l.s4 %v12874_v29  ;;  %v13559_v33 = vshrl.u32 %v1712_v31, 7  ;;  %v12875_v34 = vmov 1934713408  }
 0x424   : > { %11566 = vmatpush3.bf16.msra.mxu1 %v11897_v55  ;;  %11547 = vmatprep.subr.bf16.mxu0 %v15988_v54  ;;  %v11903_v61 = vld [vmem:[%s13448_s21 + $0x20] sm:$0xff]   ;;  %v11905_v63 = vld [vmem:[%s13448_s21 + $0x18] sm:$0xff]   ;;  %v11907_v1 = vld [vmem:[%s13448_s21 + $0x10] sm:$0xff]   ;;  %v1741_v35 = vunpack.c.l.s4 %v12875_v34  ;;  %s16364_s8 = scalar_lea.vmem [#allocation3], %s13417_s12  ;;  %vm5617_vm8 = vcmask 130048   ;;  %s16373_s6 = scalar_lea.vmem [#allocation18], %s13437_s4 }
 0x425   : > { %11567 = vmatprep.subr.bf16.mxu1 %v15988_v54  ;;  %11581 = vmatprep.mubr.msk.bf16.mxu1 %vm12872_vm6, %v15988_v54  ;;  %v11908_v2 = vld [vmem:[%s13440_s16 + $0x8] sm:$0xff]   ;;  %v11910_v4 = vld [vmem:[%s13440_s16] sm:$0xff]   ;;  %v1591_v5 = vld [vmem:[#allocation2] sm:$0xff]  ;;  %v1711_v32 = vunpack.c.0.s8 %v1710_v30  ;;  %16158 = vst [vmem:[#allocation54_spill] sm:$0xff] %v13559_v33  ;;  %s16374_s17 = scalar_lea.vmem [#allocation19], %s13437_s4  ;;  %s16375_s16 = scalar_lea.vmem [#allocation20], %s13437_s4 }
 0x426   : > { %v11909_v3 = vld [vmem:[%s13448_s21 + $0x8] sm:$0xff]   ;;  %v11911_v7 = vld [vmem:[%s13448_s21] sm:$0xff]   ;;  %v11912_v8 = vld [vmem:[%s13450_s19 + $0x38] sm:$0xff]   ;;  %v1742_v37 = vunpack.c.0.s8 %v1741_v35  ;;  %s16377_s21 = scalar_lea.vmem [#allocation24], %s13437_s4  ;;  %s16380_s26 = sld [smem:[#allocation41_spill]] }
 0x427   : > { %11548 = vmatpush3.bf16.msra.mxu0 %v11898_v56  ;;  %v1592_v6 = vld [vmem:[#allocation2 + $0x8] sm:$0xff]  ;;  %v11913_v10 = vld [vmem:[%s13450_s19 + $0x30] sm:$0xff]   ;;  %v11914_v11 = vld [vmem:[%s13450_s19 + $0x28] sm:$0xff]   ;;  %v13562_v36 = vsub.s32 %v1711_v32, %v13559_v33 }
 0x428   : > { %11568 = vmatpush3.bf16.msra.mxu1 %v11899_v57  ;;  %11549 = vmatprep.subr.bf16.mxu0 %v15988_v54  ;;  %v1593_v9 = vpack.c.bf16 %v1592_v6, %v1591_v5  ;;  %v11915_v12 = vld [vmem:[%s13450_s19 + $0x20] sm:$0xff]   ;;  %v11916_v13 = vld [vmem:[%s13450_s19 + $0x18] sm:$0xff]   ;;  %v11917_v14 = vld [vmem:[%s13450_s19 + $0x10] sm:$0xff]   ;;  %v13571_v46 = vsub.s32 %v1742_v37, %v13559_v33 }
 0x429   : > { %11569 = vmatprep.subr.bf16.mxu1 %v15988_v54  ;;  %v11918_v15 = vld [vmem:[%s13450_s19 + $0x8] sm:$0xff]   ;;  %v11919_v16 = vld [vmem:[%s13450_s19] sm:$0xff]   ;;  %16159 = vst [vmem:[#allocation55_spill] sm:$0xff] %v13562_v36  ;;  %s16378_s19 = scalar_lea.vmem [#allocation25], %s13437_s4 }
 0x42b   : > { %11550 = vmatpush3.bf16.msra.mxu0 %v11900_v58 }
 0x42c   : > { %11570 = vmatpush3.bf16.msra.mxu1 %v11901_v59  ;;  %11551 = vmatprep.subr.bf16.mxu0 %v15988_v54  ;;  %p11270_p2 = scmp.ne.s32.totalorder %s16380_s26, 1 }
 0x42d   : > { %11571 = vmatprep.subr.bf16.mxu1 %v15988_v54 }
 0x42f   : > { %11552 = vmatpush3.bf16.msra.mxu0 %v11902_v60 }
 0x430   : > { %11572 = vmatpush3.bf16.msra.mxu1 %v11903_v61  ;;  %11553 = vmatprep.subr.bf16.mxu0 %v15988_v54 }
 0x431   : > { %11573 = vmatprep.subr.bf16.mxu1 %v15988_v54 }
 0x433   : > { %11554 = vmatpush3.bf16.msra.mxu0 %v11904_v62 }
 0x434   : > { %11574 = vmatpush3.bf16.msra.mxu1 %v11905_v63  ;;  %11555 = vmatprep.subr.bf16.mxu0 %v15988_v54 }
 0x435   : > { %11575 = vmatprep.subr.bf16.mxu1 %v15988_v54 }
 0x437   : > { %11556 = vmatpush3.bf16.msra.mxu0 %v11906_v0 }
 0x438   : > { %11576 = vmatpush3.bf16.msra.mxu1 %v11907_v1  ;;  %11557 = vmatprep.subr.bf16.mxu0 %v15988_v54 }
 0x439   : > { %11577 = vmatprep.subr.bf16.mxu1 %v15988_v54 }
 0x43b   : > { %11558 = vmatpush3.bf16.msra.mxu0 %v11908_v2 }
 0x43c   : > { %11578 = vmatpush3.bf16.msra.mxu1 %v11909_v3  ;;  %11559 = vmatprep.subr.bf16.mxu0 %v15988_v54 }
 0x43d   : > { %11579 = vmatprep.subr.bf16.mxu1 %v15988_v54 }
 0x43f   : > { %11560 = vmatpush3.bf16.msra.mxu0 %v11910_v4 }
 0x440   : > { %11580 = vmatpush3.bf16.msra.mxu1 %v11911_v7  ;;  %11585 = vmatprep.subr.bf16.mxu0 %v15988_v54 }
 0x441   : > { %11605 = vmatprep.subr.bf16.mxu1 %v15988_v54 }
 0x442   : > { %11562 = vmatmul.mubr.bf16.vlgmr.msra.gmra.mxu0 %v1593_v9 }
 0x443   : > { %11582 = vmatmul.mubr.bf16.vlgmr.msra.gmra.mxu1 %v1593_v9  ;;  %11586 = vmatpush3.bf16.msra.mxu0 %v11912_v8 }
 0x444   : > { %11587 = vmatprep.subr.bf16.mxu0 %v15988_v54  ;;  %11601 = vmatprep.mubr.msk.bf16.mxu0 %vm12872_vm6, %v15988_v54 }
 0x445   : > { %11613 = vmatprep.mubr.msk.bf16.mxu1 %vm12872_vm6, %v15988_v54 }
 0x447   : > { %11588 = vmatpush3.bf16.msra.mxu0 %v11913_v10 }
 0x448   : > { %11589 = vmatprep.subr.bf16.mxu0 %v15988_v54 }
 0x44b   : > { %11590 = vmatpush3.bf16.msra.mxu0 %v11914_v11 }
 0x44c   : > { %11591 = vmatprep.subr.bf16.mxu0 %v15988_v54 }
 0x44f   : > { %11592 = vmatpush3.bf16.msra.mxu0 %v11915_v12 }
 0x450   : > { %11593 = vmatprep.subr.bf16.mxu0 %v15988_v54 }
 0x453   : > { %11594 = vmatpush3.bf16.msra.mxu0 %v11916_v13 }
 0x454   : > { %11595 = vmatprep.subr.bf16.mxu0 %v15988_v54 }
 0x457   : > { %11596 = vmatpush3.bf16.msra.mxu0 %v11917_v14 }
 0x458   : > { %11597 = vmatprep.subr.bf16.mxu0 %v15988_v54 }
 0x45b   : > { %11598 = vmatpush3.bf16.msra.mxu0 %v11918_v15 }
 0x45c   : > { %11599 = vmatprep.subr.bf16.mxu0 %v15988_v54 }
 0x45f   : > { %11600 = vmatpush3.bf16.msra.mxu0 %v11919_v16 }
 0x460   : > { %11649 = vmatprep.subr.bf16.mxu0 %v15988_v54 }
 0x462   : > { %11602 = vmatmul.mubr.bf16.vlgmr.msra.gmra.mxu0 %v1593_v9 }
 0x463   : > { %11665 = vmatprep.mubr.msk.bf16.mxu0 %vm12872_vm6, %v15988_v54 }
 0x502   : > { %v1693_v17 = vpop.f32.mrf.mxu0 }
 0x503   : > { %v1938_v18 = vpop.f32.mrf.mxu1  ;;  %1702 = vrot.lane.b32.xlu1 %v1693_v17, %s12873_s13  ;;  %v1708_v38 = vcombine.high %v1693_v17, %v15988_v54  ;;  %v1715_v40 = vrot.slane %v1693_v17, %v13562_v36 }
 0x504   : > { %1947 = vrot.lane.b32.xlu0 %v1938_v18, %s12873_s13  ;;  %v11563_v19 = vpop.f32.mrf.mxu0  ;;  %v1960_v44 = vrot.slane %v1938_v18, %v13562_v36  ;;  %v1953_v53 = vcombine.high %v1938_v18, %v15988_v54 }
 0x505   : > { %v11583_v20 = vpop.f32.mrf.mxu1  ;;  %v1722_v47 = vrot.slane %v1708_v38, %v13562_v36 }
 0x506   : > { %v1696_v21 = vpop.f32.mrf.mxu0  ;;  %v1967_v3 = vrot.slane %v1953_v53, %v13562_v36 }
 0x507   : > { %v13548_v22 = vpop.f32.mrf.mxu1  ;;  %v1774_v1 = vcombine.high %v1696_v21, %v15988_v54  ;;  %v1781_v8 = vrot.slane %v1696_v21, %v13562_v36 }
 0x508   : > { %1949 = vrot.lane.b32.xlu0 %v13548_v22, %s12873_s13  ;;  %v11564_v23 = vpop.f32.mrf.mxu0 }
 0x509   : > { %v11584_v24 = vpop.f32.mrf.mxu1  ;;  %v1788_v16 = vrot.slane %v1774_v1, %v13562_v36 }
 0x50c   : > { %1704 = vrot.lane.b32.xlu0 %v1696_v21, %s12873_s13 }
 0x522   : > { %v13553_v25 = vpop.f32.mrf.mxu0 }
 0x523   : > { %16156 = vst [vmem:[#allocation52_spill] sm:$0xff] %v13553_v25  ;;  %2192 = vrot.lane.b32.xlu0 %v13553_v25, %s12873_s13 }
 0x524   : > { %v11603_v26 = vpop.f32.mrf.mxu0 }
 0x526   : > { %v13557_v27 = vpop.f32.mrf.mxu0 }
 0x527   : > { %16157 = vst [vmem:[#allocation53_spill] sm:$0xff] %v13557_v27 }
 0x528   : > { %v11604_v28 = vpop.f32.mrf.mxu0 }
 0x575   : > { %v1703_v39 = vpop.permute.xlu1 %1702 }
 0x576   : > { %v1948_v41 = vpop.permute.xlu0 %1947  ;;  %v1723_v42 = vcombine.high %v1703_v39, %v15988_v54  ;;  %v1730_v43 = vrot.slane %v1703_v39, %v13562_v36 }
 0x577   : > { %v1975_v45 = vrot.slane %v1948_v41, %v13562_v36  ;;  %v1968_v55 = vcombine.high %v1948_v41, %v15988_v54 }
 0x578   : > { %v1737_v48 = vrot.slane %v1723_v42, %v13562_v36  ;;  %v1738_v49 = vcombine.low %v1715_v40, %v1730_v43  ;;  %v1739_v50 = vcombine.high %v1715_v40, %v1730_v43 }
 0x579   : > { %v1983_v51 = vcombine.low %v1960_v44, %v1975_v45  ;;  %v1984_v52 = vcombine.high %v1960_v44, %v1975_v45  ;;  %v1982_v4 = vrot.slane %v1968_v55, %v13562_v36 }
 0x57a   : > { %v1754_v56 = vcombine.low %v1722_v47, %v1737_v48  ;;  %v1755_v57 = vcombine.high %v1722_v47, %v1737_v48  ;;  %v13577_v58 = vpop.permute.xlu0 %1949  ;;  %v1746_v61 = vrot.slane %v1738_v49, %v13571_v46  ;;  %v1753_v62 = vrot.slane %v1739_v50, %v13571_v46 }
 0x57b   : > { %v1991_v59 = vrot.slane %v1983_v51, %v13571_v46  ;;  %v13581_v60 = vrot.slane %v1984_v52, %v13571_v46  ;;  %v1999_v23 = vcombine.low %v1967_v3, %v1982_v4  ;;  %v2000_v1 = vcombine.high %v1967_v3, %v1982_v4 }
 0x57c   : > { %v1762_v63 = vrot.slane %v1754_v56, %v13571_v46  ;;  %v1769_v0 = vrot.slane %v1755_v57, %v13571_v46  ;;  %v1770_v12 = vcombine.high %v1746_v61, %v15988_v54  ;;  %v1771_v13 = vcombine.high %v1753_v62, %v15988_v54 }
 0x57d   : > { %v2346_v2 = vpack.c.bf16 %v1991_v59, %v1991_v59  ;;  %v2348_v11 = vpack.c.bf16 %v13581_v60, %v13581_v60  ;;  %v2007_v32 = vrot.slane %v1999_v23, %v13571_v46  ;;  %v2015_v37 = vcombine.high %v1991_v59, %v15988_v54 }
 0x57e   : > { %v1772_v5 = vcombine.high %v1762_v63, %v15988_v54  ;;  %v1773_v6 = vcombine.high %v1769_v0, %v15988_v54  ;;  %v1705_v7 = vpop.permute.xlu0 %1704  ;;  %v11201_v14 = vpack.c.bf16 %v1762_v63, %v1746_v61  ;;  %v11202_v15 = vpack.c.bf16 %v1769_v0, %v1753_v62 }
 0x57f   : > { %v1789_v9 = vcombine.high %v1705_v7, %v15988_v54  ;;  %v1796_v10 = vrot.slane %v1705_v7, %v13562_v36  ;;  %2466 = vxpose.xlu1.c.b16.start.end [1/1] (short) (narrow) %v2346_v2, 64  ;;  %2498 = vxpose.xlu0.c.b16.start.end [1/1] (short) (narrow) %v2348_v11, 64  ;;  %v2017_v48 = vcombine.high %v2007_v32, %v15988_v54 }
 0x580   : > { %v11205_v20 = vpack.c.bf16 %v1772_v5, %v1770_v12  ;;  %v11206_v21 = vpack.c.bf16 %v1773_v6, %v1771_v13  ;;  %v2369_v30 = vrot.slane %v11201_v14, %v13562_v36  ;;  %v2377_v31 = vrot.slane %v11202_v15, %v13562_v36 }
 0x581   : > { %v1803_v17 = vrot.slane %v1789_v9, %v13562_v36  ;;  %v1804_v18 = vcombine.low %v1781_v8, %v1796_v10  ;;  %v1805_v19 = vcombine.high %v1781_v8, %v1796_v10  ;;  %v2347_v53 = vpack.c.bf16 %v2015_v37, %v2015_v37 }
 0x582   : > { %v2418_v38 = vrot.slane %v11205_v20, %v13562_v36  ;;  %v2426_v39 = vrot.slane %v11206_v21, %v13562_v36  ;;  %v2394_v47 = vcombine.low %v2369_v30, %v2377_v31  ;;  %v2351_v61 = vpack.c.bf16 %v2017_v48, %v2017_v48 }
 0x583   : > { %v1812_v24 = vrot.slane %v1804_v18, %v13571_v46  ;;  %v1819_v26 = vrot.slane %v1805_v19, %v13571_v46  ;;  %v1820_v28 = vcombine.low %v1788_v16, %v1803_v17  ;;  %v1821_v29 = vcombine.high %v1788_v16, %v1803_v17 }
 0x584   : > { %v2443_v55 = vcombine.low %v2418_v38, %v2426_v39  ;;  %v2401_v62 = vrot.slane %v2394_v47, %v13571_v46  ;;  %v2014_v7 = vrot.slane %v2000_v1, %v13571_v46  ;;  %v2016_v9 = vcombine.high %v13581_v60, %v15988_v54 }
 0x585   : > { %v1828_v34 = vrot.slane %v1820_v28, %v13571_v46  ;;  %v1835_v35 = vrot.slane %v1821_v29, %v13571_v46  ;;  %v1836_v40 = vcombine.high %v1812_v24, %v15988_v54  ;;  %v1837_v41 = vcombine.high %v1819_v26, %v15988_v54 }
 0x586   : > { %v2450_v5 = vrot.slane %v2443_v55, %v13571_v46  ;;  %v2018_v4 = vcombine.high %v2014_v7, %v15988_v54  ;;  %v2041_v13 = vrot.slane %v13577_v58, %v13562_v36  ;;  %v2349_v14 = vpack.c.bf16 %v2016_v9, %v2016_v9 }
 0x587   : > { %v1838_v42 = vcombine.high %v1828_v34, %v15988_v54  ;;  %v1839_v43 = vcombine.high %v1835_v35, %v15988_v54  ;;  %v11203_v44 = vpack.c.bf16 %v1828_v34, %v1812_v24  ;;  %v11204_v45 = vpack.c.bf16 %v1835_v35, %v1819_v26 }
 0x588   : > { %v2026_v15 = vrot.slane %v13548_v22, %v13562_v36  ;;  %v2353_v60 = vpack.c.bf16 %v2018_v4, %v2018_v4  ;;  %v2350_v19 = vpack.c.bf16 %v2007_v32, %v2007_v32  ;;  %v2034_v24 = vcombine.high %v13577_v58, %v15988_v54 }
 0x589   : > { %v2385_v49 = vrot.slane %v11203_v44, %v13562_v36  ;;  %v2393_v50 = vrot.slane %v11204_v45, %v13562_v36  ;;  %v11207_v51 = vpack.c.bf16 %v1838_v42, %v1836_v40  ;;  %v11208_v52 = vpack.c.bf16 %v1839_v43, %v1837_v41 }
 0x58a   : > { %v2049_v16 = vcombine.low %v2026_v15, %v2041_v13  ;;  %v2050_v21 = vcombine.high %v2026_v15, %v2041_v13  ;;  %v2019_v26 = vcombine.high %v13548_v22, %v15988_v54  ;;  %v2048_v29 = vrot.slane %v2034_v24, %v13562_v36 }
 0x58b   : > { %v2402_v56 = vcombine.low %v2385_v49, %v2393_v50  ;;  %v2434_v57 = vrot.slane %v11207_v51, %v13562_v36  ;;  %v2442_v59 = vrot.slane %v11208_v52, %v13562_v36  ;;  %v2352_v30 = vpack.c.bf16 %v2014_v7, %v2014_v7 }
 0x58c   : > { %2482 = vxpose.xlu1.c.b16.start.end [1/1] (short) (narrow) %v2347_v53, 64  ;;  %2546 = vxpose.xlu0.c.b16.start.end [1/1] (short) (narrow) %v2351_v61, 64  ;;  %v2057_v17 = vrot.slane %v2049_v16, %v13571_v46  ;;  %v2064_v23 = vrot.slane %v2050_v21, %v13571_v46  ;;  %v2033_v31 = vrot.slane %v2019_v26, %v13562_v36 }
 0x58d   : > { %v2409_v63 = vrot.slane %v2402_v56, %v13571_v46  ;;  %v2451_v0 = vcombine.low %v2434_v57, %v2442_v59 }
 0x58e   : > { %v2081_v18 = vcombine.high %v2057_v17, %v15988_v54  ;;  %v2082_v28 = vcombine.high %v2064_v23, %v15988_v54  ;;  %v2065_v34 = vcombine.low %v2033_v31, %v2048_v29  ;;  %v2354_v38 = vpack.c.bf16 %v2057_v17, %v2057_v17 }
 0x58f   : > { %v13622_v2 = vcombine.low %v2401_v62, %v2409_v63  ;;  %v2458_v6 = vrot.slane %v2451_v0, %v13571_v46  ;;  %v2066_v39 = vcombine.high %v2033_v31, %v2048_v29  ;;  %v2356_v41 = vpack.c.bf16 %v2064_v23, %v2064_v23 }
 0x590   : > { %v2355_v20 = vpack.c.bf16 %v2081_v18, %v2081_v18  ;;  %v2357_v32 = vpack.c.bf16 %v2082_v28, %v2082_v28  ;;  %v2073_v35 = vrot.slane %v2065_v34, %v13571_v46 }
 0x591   : > { %16160 = vst [vmem:[#allocation56_spill] sm:$0xff] %v13622_v2  ;;  %v13627_v8 = vcombine.low %v2450_v5, %v2458_v6  ;;  %v2463_v11 = vshrl.u32 %v13622_v2, 16  ;;  %v2080_v22 = vrot.slane %v2066_v39, %v13571_v46 }
 0x592   : > { %v2083_v37 = vcombine.high %v2073_v35, %v15988_v54  ;;  %v2358_v43 = vpack.c.bf16 %v2073_v35, %v2073_v35 }
 0x593   : > { %16161 = vst [vmem:[#allocation57_spill] sm:$0xff] %v13627_v8  ;;  %v2464_v3 = vshrl.u32 %v13627_v8, 16  ;;  %v2084_v40 = vcombine.high %v2080_v22, %v15988_v54  ;;  %v2360_v49 = vpack.c.bf16 %v2080_v22, %v2080_v22 }
 0x594   : > { %v2359_v58 = vpack.c.bf16 %v2083_v37, %v2083_v37 }
 0x595   : > { %v13636_v12 = vpack.i.b16 %v2464_v3, %v2463_v11  ;;  %v2361_v42 = vpack.c.bf16 %v2084_v40, %v2084_v40  ;;  %v13656_v44 = vpop.permute.xlu0 %2192 }
 0x596   : > { %16163 = vst [vmem:[#allocation59_spill] sm:$0xff] %v13656_v44 }
 0x597   : > { %16162 = vst [vmem:[#allocation58_spill] sm:$0xff] %v13636_v12 }
 0x599   : > { %2514 = vxpose.xlu1.c.b16.start.end [1/1] (short) (narrow) %v2349_v14, 64  ;;  %2578 = vxpose.xlu0.c.b16.start.end [1/1] (short) (narrow) %v2353_v60, 64 }
 0x5a6   : > { %2530 = vxpose.xlu1.c.b16.start.end [1/1] (short) (narrow) %v2350_v19, 64  ;;  %2610 = vxpose.xlu0.c.b16.start.end [1/1] (short) (narrow) %v2355_v20, 64 }
 0x5b3   : > { %2562 = vxpose.xlu1.c.b16.start.end [1/1] (short) (narrow) %v2352_v30, 64  ;;  %2642 = vxpose.xlu0.c.b16.start.end [1/1] (short) (narrow) %v2357_v32, 64 }
 0x5c0   : > { %2594 = vxpose.xlu1.c.b16.start.end [1/1] (short) (narrow) %v2354_v38, 64  ;;  %2674 = vxpose.xlu0.c.b16.start.end [1/1] (short) (narrow) %v2359_v58, 64 }
 0x5cd   : > { %2626 = vxpose.xlu1.c.b16.start.end [1/1] (short) (narrow) %v2356_v41, 64  ;;  %2706 = vxpose.xlu0.c.b16.start.end [1/1] (short) (narrow) %v2361_v42, 64 }
 0x5da   : > { %2658 = vxpose.xlu1.c.b16.start.end [1/1] (short) (narrow) %v2358_v43, 64 }
 0x5e1   : > { %v13658_v45 = vpop.trf.xlu1  ;;  %v13660_v47 = vpop.trf.xlu0 }
 0x5e5   : > { %v13662_v48 = vpop.trf.xlu1  ;;  %v13664_v50 = vpop.trf.xlu0 }
 0x5e7   : > { %2690 = vxpose.xlu1.c.b16.start.end [1/1] (short) (narrow) %v2360_v49, 64 }
 0x5e9   : > { %v13666_v51 = vpop.trf.xlu1  ;;  %v13668_v52 = vpop.trf.xlu0 }
 0x5ed   : > { %v13670_v53 = vpop.trf.xlu1  ;;  %v13672_v55 = vpop.trf.xlu0 }
 0x5f1   : > { %v2490_v56 = vpop.trf.xlu1  ;;  %v2554_v57 = vpop.trf.xlu0 }
 0x5f2   : > { %v2858_v31 = vcombine.low %v2490_v56, %v2554_v57  ;;  %v2859_v32 = vcombine.high %v2490_v56, %v2554_v57 }
 0x5f4   : > { %v2866_v42 = vrot.slane %v2858_v31, %v13562_v36  ;;  %v2873_v43 = vrot.slane %v2859_v32, %v13562_v36 }
 0x5f5   : > { %v2491_v59 = vpop.trf.xlu1  ;;  %v2555_v61 = vpop.trf.xlu0 }
 0x5f6   : > { %v3130_v37 = vcombine.low %v2491_v59, %v2555_v61  ;;  %v3131_v22 = vcombine.high %v2491_v59, %v2555_v61 }
 0x5f9   : > { %v2492_v62 = vpop.trf.xlu1  ;;  %v2556_v63 = vpop.trf.xlu0 }
 0x5fa   : > { %v3403_v49 = vcombine.high %v2492_v62, %v2556_v63  ;;  %v3402_v56 = vcombine.low %v2492_v62, %v2556_v63 }
 0x5fc   : > { %v3410_v32 = vrot.slane %v3402_v56, %v13562_v36 }
 0x5fd   : > { %v2493_v0 = vpop.trf.xlu1  ;;  %v2557_v1 = vpop.trf.xlu0 }
 0x5fe   : > { %v3674_v57 = vcombine.low %v2493_v0, %v2557_v1 }
 0x601   : > { %v2522_v5 = vpop.trf.xlu1  ;;  %v2586_v6 = vpop.trf.xlu0 }
 0x602   : > { %v2874_v28 = vcombine.low %v2522_v5, %v2586_v6  ;;  %v2875_v29 = vcombine.high %v2522_v5, %v2586_v6  ;;  %v3675_v6 = vcombine.high %v2493_v0, %v2557_v1  ;;  %v3417_v1 = vrot.slane %v3403_v49, %v13562_v36 }
 0x604   : > { %v2882_v38 = vrot.slane %v2874_v28, %v13562_v36  ;;  %v2889_v40 = vrot.slane %v2875_v29, %v13562_v36  ;;  %v13721_v28 = vrot.slane %v3131_v22, %v13562_v36 }
 0x605   : > { %v2523_v7 = vpop.trf.xlu1  ;;  %v2587_v9 = vpop.trf.xlu0 }
 0x606   : > { %v3146_v34 = vcombine.low %v2523_v7, %v2587_v9  ;;  %v3147_v58 = vcombine.high %v2523_v7, %v2587_v9  ;;  %v3138_v7 = vrot.slane %v3130_v37, %v13562_v36  ;;  %v2922_v9 = vcombine.low %v2866_v42, %v2882_v38  ;;  %16165 = vst [vmem:[#allocation61_spill] sm:$0xff] %v13721_v28 }
 0x607   : > { %v2939_v29 = vcombine.high %v2873_v43, %v2889_v40  ;;  %v2923_v0 = vcombine.high %v2866_v42, %v2882_v38  ;;  %v2938_v31 = vcombine.low %v2873_v43, %v2889_v40  ;;  %v3689_v37 = vrot.slane %v3675_v6, %v13562_v36 }
 0x608   : > { %v3154_v10 = vrot.slane %v3146_v34, %v13562_v36  ;;  %v13717_v59 = vrot.slane %v3147_v58, %v13562_v36  ;;  %v3682_v34 = vrot.slane %v3674_v57, %v13562_v36  ;;  %v13737_v38 = vrot.slane %v2922_v9, %v13571_v46 }
 0x609   : > { %v2524_v11 = vpop.trf.xlu1  ;;  %v2588_v3 = vpop.trf.xlu0  ;;  %v13745_v40 = vrot.slane %v2923_v0, %v13571_v46  ;;  %v13748_v43 = vrot.slane %v2939_v29, %v13571_v46 }
 0x60a   : > { %v3419_v39 = vcombine.high %v2524_v11, %v2588_v3  ;;  %v3418_v5 = vcombine.low %v2524_v11, %v2588_v3  ;;  %16164 = vst [vmem:[#allocation60_spill] sm:$0xff] %v13717_v59  ;;  %v3195_v42 = vcombine.high %v3138_v7, %v3154_v10  ;;  %v3210_v49 = vcombine.low %v13721_v28, %v13717_v59 }
 0x60c   : > { %v3433_v61 = vrot.slane %v3419_v39, %v13562_v36  ;;  %v3426_v11 = vrot.slane %v3418_v5, %v13562_v36  ;;  %v3194_v39 = vcombine.low %v3138_v7, %v3154_v10  ;;  %v13752_v10 = vrot.slane %v2938_v31, %v13571_v46 }
 0x60d   : > { %v13674_v4 = vpop.trf.xlu1  ;;  %v13676_v13 = vpop.trf.xlu0 }
 0x60e   : > { %v3690_v62 = vcombine.low %v13674_v4, %v13676_v13  ;;  %v3691_v3 = vcombine.high %v13674_v4, %v13676_v13  ;;  %v3482_v22 = vcombine.low %v3417_v1, %v3433_v61  ;;  %v3483_v5 = vcombine.high %v3417_v1, %v3433_v61 }
 0x60f   : > { %v3466_v56 = vcombine.low %v3410_v32, %v3426_v11  ;;  %v3467_v57 = vcombine.high %v3410_v32, %v3426_v11  ;;  %v13771_v11 = vrot.slane %v3195_v42, %v13571_v46 }
 0x610   : > { %v3698_v4 = vrot.slane %v3690_v62, %v13562_v36  ;;  %v3705_v6 = vrot.slane %v3691_v3, %v13562_v36  ;;  %v13761_v62 = vrot.slane %v3194_v39, %v13571_v46  ;;  %v13766_v0 = vrot.slane %v3482_v22, %v13571_v46 }
 0x611   : > { %v13678_v14 = vpop.trf.xlu1  ;;  %v13680_v15 = vpop.trf.xlu0  ;;  %v13774_v3 = vrot.slane %v3210_v49, %v13571_v46  ;;  %v13784_v33 = vrot.slane %v3466_v56, %v13571_v46  ;;  %v13787_v42 = vrot.slane %v3467_v57, %v13571_v46 }
 0x612   : > { %v2722_v7 = vcombine.low %v13658_v45, %v13678_v14  ;;  %v2723_v61 = vcombine.high %v13658_v45, %v13678_v14  ;;  %v13777_v45 = vrot.slane %v3483_v5, %v13571_v46  ;;  %v3738_v14 = vcombine.low %v3682_v34, %v3698_v4 }
 0x613   : > { %v3739_v31 = vcombine.high %v3682_v34, %v3698_v4  ;;  %v3754_v22 = vcombine.low %v3689_v37, %v3705_v6  ;;  %v3755_v29 = vcombine.high %v3689_v37, %v3705_v6 }
 0x614   : > { %v2730_v49 = vrot.slane %v2722_v7, %v13562_v36  ;;  %v2737_v5 = vrot.slane %v2723_v61, %v13562_v36  ;;  %v13805_v6 = vrot.slane %v3738_v14, %v13571_v46 }
 0x615   : > { %v13682_v60 = vpop.trf.xlu1  ;;  %v13684_v16 = vpop.trf.xlu0  ;;  %v13808_v7 = vrot.slane %v3739_v31, %v13571_v46 }
 0x616   : > { %v2994_v34 = vcombine.low %v13662_v48, %v13682_v60  ;;  %v2995_v37 = vcombine.high %v13662_v48, %v13682_v60  ;;  %v13816_v60 = vrot.slane %v3754_v22, %v13571_v46 }
 0x618   : > { %v3002_v14 = vrot.slane %v2994_v34, %v13562_v36  ;;  %v3009_v34 = vrot.slane %v2995_v37, %v13562_v36 }
 0x619   : > { %v13686_v17 = vpop.trf.xlu1  ;;  %v13688_v18 = vpop.trf.xlu0 }
 0x61a   : > { %v3266_v61 = vcombine.low %v13666_v51, %v13686_v17 }
 0x61d   : > { %v13690_v19 = vpop.trf.xlu1  ;;  %v13692_v20 = vpop.trf.xlu0 }
 0x61e   : > { %v3539_v31 = vcombine.high %v13670_v53, %v13690_v19 }
 0x621   : > { %v13694_v21 = vpop.trf.xlu1  ;;  %v13696_v23 = vpop.trf.xlu0 }
 0x622   : > { %v2738_v1 = vcombine.low %v13660_v47, %v13694_v21  ;;  %v2739_v32 = vcombine.high %v13660_v47, %v13694_v21 }
 0x624   : > { %v2746_v4 = vrot.slane %v2738_v1, %v13562_v36  ;;  %v2753_v12 = vrot.slane %v2739_v32, %v13562_v36  ;;  %v3538_v1 = vcombine.low %v13670_v53, %v13690_v19  ;;  %v13840_v53 = vrot.slane %v3266_v61, %v13562_v36 }
 0x625   : > { %v13698_v24 = vpop.trf.xlu1  ;;  %v13700_v26 = vpop.trf.xlu0 }
 0x626   : > { %v3010_v47 = vcombine.low %v13664_v50, %v13698_v24  ;;  %v3011_v56 = vcombine.high %v13664_v50, %v13698_v24  ;;  %v13819_v50 = vrot.slane %v3755_v29, %v13571_v46  ;;  %v3267_v24 = vcombine.high %v13666_v51, %v13686_v17 }
 0x627   : > { %v2786_v2 = vcombine.low %v2730_v49, %v2746_v4  ;;  %v2803_v19 = vcombine.high %v2737_v5, %v2753_v12  ;;  %v13848_v27 = vrot.slane %v3538_v1, %v13562_v36  ;;  %v2787_v51 = vcombine.high %v2730_v49, %v2746_v4 }
 0x628   : > { %v3018_v32 = vrot.slane %v3010_v47, %v13562_v36  ;;  %v3025_v29 = vrot.slane %v3011_v56, %v13562_v36  ;;  %v3281_v56 = vrot.slane %v3267_v24, %v13562_v36  ;;  %v2802_v25 = vcombine.low %v2737_v5, %v2753_v12 }
 0x629   : > { %v13702_v30 = vpop.trf.xlu1  ;;  %v13704_v35 = vpop.trf.xlu0  ;;  %v13851_v17 = vrot.slane %v3539_v31, %v13562_v36  ;;  %v13868_v4 = vrot.slane %v2803_v19, %v13571_v46  ;;  %v13874_v31 = vrot.slane %v2787_v51, %v13571_v46 }
 0x62a   : > { %v3283_v22 = vcombine.high %v13668_v52, %v13702_v30  ;;  %v3282_v47 = vcombine.low %v13668_v52, %v13702_v30  ;;  %v3058_v44 = vcombine.low %v3002_v14, %v3018_v32  ;;  %v3059_v59 = vcombine.high %v3002_v14, %v3018_v32 }
 0x62b   : > { %v13856_v52 = vrot.slane %v2786_v2, %v13571_v46  ;;  %v3074_v30 = vcombine.low %v3009_v34, %v3025_v29  ;;  %v3075_v24 = vcombine.high %v3009_v34, %v3025_v29  ;;  %16166 = vst [vmem:[#allocation62_spill] sm:$0xff] %v13868_v4  ;;  %v13877_v32 = vrot.slane %v2802_v25, %v13571_v46 }
 0x62c   : > { %v3297_v37 = vrot.slane %v3283_v22, %v13562_v36  ;;  %v13859_v1 = vrot.slane %v3282_v47, %v13562_v36  ;;  %v13883_v47 = vrot.slane %v3058_v44, %v13571_v46  ;;  %v13886_v19 = vrot.slane %v3059_v59, %v13571_v46 }
 0x62d   : > { %v13708_v41 = vpop.trf.xlu1  ;;  %v13713_v54 = vpop.trf.xlu0  ;;  %v13894_v25 = vrot.slane %v3075_v24, %v13571_v46 }
 0x62e   : > { %v3554_v12 = vcombine.low %v13672_v55, %v13708_v41  ;;  %v3555_v2 = vcombine.high %v13672_v55, %v13708_v41  ;;  %v3346_v22 = vcombine.low %v3281_v56, %v3297_v37  ;;  %16167 = vst [vmem:[#allocation63_spill] sm:$0xff] %v13886_v19  ;;  %v3347_v55 = vcombine.high %v3281_v56, %v3297_v37 }
 0x62f   : > { %v13891_v41 = vrot.slane %v3074_v30, %v13571_v46  ;;  %16169 = vst [vmem:[#allocation65_spill] sm:$0xff] %v13894_v25  ;;  %v3330_v56 = vcombine.low %v13840_v53, %v13859_v1 }
 0x630   : > { %v13917_v25 = vrot.slane %v3346_v22, %v13571_v46  ;;  %v13923_v19 = vrot.slane %v3347_v55, %v13571_v46 }
 0x631   : > { %v13725_v63 = vpop.trf.xlu1  ;;  %v13734_v58 = vpop.trf.xlu0  ;;  %16168 = vst [vmem:[#allocation64_spill] sm:$0xff] %v13891_v41 }
 0x632   : > { %v2890_v49 = vcombine.low %v13680_v15, %v13734_v58  ;;  %16170 = vst [vmem:[#allocation66_spill] sm:$0xff] %v13917_v25  ;;  %16171 = vst [vmem:[#allocation67_spill] sm:$0xff] %v13923_v19 }
 0x634   : > { %v2898_v51 = vrot.slane %v2890_v49, %v13562_v36 }
 0x635   : > { %v13742_v13 = vpop.trf.xlu1  ;;  %v13758_v9 = vpop.trf.xlu0 }
 0x636   : > { %v3162_v30 = vcombine.low %v13684_v16, %v13758_v9 }
 0x639   : > { %v13781_v39 = vpop.trf.xlu1  ;;  %v13795_v21 = vpop.trf.xlu0 }
 0x63a   : > { %v3434_v44 = vcombine.low %v13688_v18, %v13795_v21  ;;  %v16172_v22 = vcombine.high %v13688_v18, %v13795_v21  ;;  %v13948_v18 = vrot.slane %v3162_v30, %v13562_v36 }
 0x63d   : > { %v13813_v48 = vpop.trf.xlu1  ;;  %v13831_v57 = vpop.trf.xlu0 }
 0x641   : > { %v13844_v8 = vpop.trf.xlu1  ;;  %v2714_v61 = vpop.trf.xlu0 }
 0x642   : > { %v2906_v28 = vcombine.low %v13696_v23, %v2714_v61  ;;  %v2907_v14 = vcombine.high %v13696_v23, %v2714_v61  ;;  %v2891_v23 = vcombine.high %v13680_v15, %v13734_v58  ;;  %v3569_v15 = vrot.slane %v3555_v2, %v13562_v36 }
 0x643   : > { %v3331_v61 = vcombine.high %v13840_v53, %v13859_v1  ;;  %v13928_v1 = vrot.slane %v3434_v44, %v13562_v36 }
 0x644   : > { %v2914_v29 = vrot.slane %v2906_v28, %v13562_v36  ;;  %v13897_v28 = vrot.slane %v3554_v12, %v13562_v36  ;;  %v13908_v58 = vrot.slane %v2907_v14, %v13562_v36  ;;  %v2905_v2 = vrot.slane %v2891_v23, %v13562_v36 }
 0x645   : > { %v13865_v5 = vpop.trf.xlu1  ;;  %v13880_v34 = vpop.trf.xlu0  ;;  %v13937_v23 = vrot.slane %v3330_v56, %v13571_v46 }
 0x646   : > { %v3178_v37 = vcombine.low %v13700_v26, %v13880_v34  ;;  %v2954_v24 = vcombine.low %v2898_v51, %v2914_v29  ;;  %v2955_v12 = vcombine.high %v2898_v51, %v2914_v29  ;;  %v3602_v53 = vcombine.low %v13848_v27, %v13897_v28 }
 0x647   : > { %v3449_v29 = vrot.slane %v16172_v22, %v13562_v36  ;;  %16173 = vst [vmem:[#allocation68_spill] sm:$0xff] %v13937_v23  ;;  %v3603_v19 = vcombine.high %v13848_v27, %v13897_v28 }
 0x648   : > { %v13941_v55 = vrot.slane %v3178_v37, %v13562_v36  ;;  %v2962_v22 = vrot.slane %v2954_v24, %v13571_v46  ;;  %v2969_v56 = vrot.slane %v2955_v12, %v13571_v46  ;;  %v3163_v24 = vcombine.high %v13684_v16, %v13758_v9 }
 0x649   : > { %v13902_v59 = vpop.trf.xlu1  ;;  %v2716_v49 = vpop.trf.xlu0  ;;  %v16174_v12 = vcombine.low %v13692_v20, %v13831_v57  ;;  %v3179_v9 = vcombine.high %v13700_v26, %v13880_v34  ;;  %v13995_v34 = vrot.slane %v3331_v61, %v13571_v46 }
 0x64a   : > { %v3450_v14 = vcombine.low %v13704_v35, %v2716_v49  ;;  %v3451_v41 = vcombine.high %v13704_v35, %v2716_v49  ;;  %v2970_v35 = vcombine.low %v2905_v2, %v13908_v58 }
 0x64c   : > { %v3458_v49 = vrot.slane %v3450_v14, %v13562_v36  ;;  %v3465_v44 = vrot.slane %v3451_v41, %v13562_v36  ;;  %v3618_v14 = vcombine.low %v13851_v17, %v3569_v15  ;;  %v3619_v41 = vcombine.high %v13851_v17, %v3569_v15 }
 0x64d   : > { %v13934_v51 = vpop.trf.xlu1  ;;  %v2717_v21 = vpop.trf.xlu0  ;;  %v16175_v17 = vcombine.high %v13692_v20, %v13831_v57  ;;  %v2971_v15 = vcombine.high %v2905_v2, %v13908_v58 }
 0x64e   : > { %v3498_v25 = vcombine.low %v13928_v1, %v3458_v49  ;;  %v3499_v37 = vcombine.high %v13928_v1, %v3458_v49  ;;  %v3514_v23 = vcombine.low %v3449_v29, %v3465_v44  ;;  %v3515_v4 = vcombine.high %v3449_v29, %v3465_v44 }
 0x64f   : > { %v3722_v27 = vcombine.low %v13713_v54, %v2717_v21  ;;  %v3723_v28 = vcombine.high %v13713_v54, %v2717_v21  ;;  %v3714_v1 = vrot.slane %v16174_v12, %v13562_v36  ;;  %v2978_v29 = vrot.slane %v2970_v35, %v13571_v46 }
 0x650   : > { %v3226_v49 = vcombine.low %v13948_v18, %v13941_v55  ;;  %v3721_v54 = vrot.slane %v16175_v17, %v13562_v36  ;;  %v13979_v21 = vcombine.low %v13737_v38, %v2962_v22  ;;  %v13982_v35 = vcombine.high %v13737_v38, %v2962_v22 }
 0x651   : > { %v13958_v30 = vpop.trf.xlu1  ;;  %v3730_v44 = vrot.slane %v3722_v27, %v13562_v36  ;;  %v3737_v16 = vrot.slane %v3723_v28, %v13562_v36  ;;  %v13985_v12 = vcombine.low %v13745_v40, %v2969_v56  ;;  %v13988_v27 = vcombine.high %v13745_v40, %v2969_v56 }
 0x652   : > { %v13991_v28 = vcombine.low %v13752_v10, %v2978_v29  ;;  %v3234_v26 = vrot.slane %v3226_v49, %v13571_v46  ;;  %v13998_v38 = vrot.slane %v3603_v19, %v13571_v46  ;;  %v14001_v22 = vrot.slane %v3618_v14, %v13571_v46 }
 0x653   : > { %v3770_v20 = vcombine.low %v3714_v1, %v3730_v44  ;;  %v3771_v57 = vcombine.high %v3714_v1, %v3730_v44  ;;  %v3786_v17 = vcombine.low %v3721_v54, %v3737_v16  ;;  %v3787_v58 = vcombine.high %v3721_v54, %v3737_v16 }
 0x654   : > { %16176 = vst [vmem:[#allocation69_spill] sm:$0xff] %v13998_v38  ;;  %16177 = vst [vmem:[#allocation70_spill] sm:$0xff] %v14001_v22  ;;  %v14004_v1 = vrot.slane %v3602_v53, %v13571_v46  ;;  %v14007_v40 = vrot.slane %v3619_v41, %v13571_v46  ;;  %v14010_v56 = vrot.slane %v3163_v24, %v13562_v36 }
 0x655   : > { %v2667_v2 = vpop.trf.xlu1  ;;  %v14013_v49 = vrot.slane %v3179_v9, %v13562_v36  ;;  %v3522_v61 = vrot.slane %v3514_v23, %v13571_v46  ;;  %v2985_v19 = vrot.slane %v2971_v15, %v13571_v46  ;;  %v3227_v41 = vcombine.high %v13948_v18, %v13941_v55 }
 0x656   : > { %16178 = vst [vmem:[#allocation71_spill] sm:$0xff] %v14004_v1  ;;  %16179 = vst [vmem:[#allocation72_spill] sm:$0xff] %v14007_v40  ;;  %v14029_v15 = vcombine.low %v13761_v62, %v3234_v26  ;;  %v3529_v9 = vrot.slane %v3515_v4, %v13571_v46  ;;  %v2754_v53 = vcombine.low %v13725_v63, %v13958_v30 }
 0x657   : > { %v14035_v44 = vcombine.high %v13752_v10, %v2978_v29  ;;  %v3506_v55 = vrot.slane %v3498_v25, %v13571_v46  ;;  %v2755_v18 = vcombine.high %v13725_v63, %v13958_v30  ;;  %v14041_v16 = vcombine.low %v13748_v43, %v2985_v19 }
 0x658   : > { %v3513_v23 = vrot.slane %v3499_v37, %v13571_v46  ;;  %v14045_v14 = vcombine.low %v13766_v0, %v3522_v61  ;;  %v3026_v4 = vcombine.low %v13742_v13, %v2667_v2  ;;  %v3027_v24 = vcombine.high %v13742_v13, %v2667_v2 }
 0x659   : > { %v14017_v54 = vpop.trf.xlu1  ;;  %v3241_v10 = vrot.slane %v3227_v41, %v13571_v46  ;;  %v14053_v25 = vcombine.low %v13784_v33, %v3506_v55  ;;  %v14060_v30 = vcombine.high %v13784_v33, %v3506_v55  ;;  %v3785_v13 = vrot.slane %v3771_v57, %v13571_v46 }
 0x65a   : > { %v14063_v29 = vcombine.low %v13787_v42, %v3513_v23  ;;  %v2762_v2 = vrot.slane %v2754_v53, %v13562_v36  ;;  %v14069_v1 = vcombine.high %v13761_v62, %v3234_v26  ;;  %v3778_v22 = vrot.slane %v3770_v20, %v13571_v46 }
 0x65b   : > { %v3794_v38 = vrot.slane %v3786_v17, %v13571_v46  ;;  %v14079_v57 = vrot.slane %v3026_v4, %v13562_v36  ;;  %v14082_v53 = vrot.slane %v3027_v24, %v13562_v36  ;;  %v14085_v62 = vcombine.high %v13787_v42, %v3513_v23 }
 0x65c   : > { %v14089_v17 = vcombine.low %v13771_v11, %v3241_v10  ;;  %v14092_v26 = vcombine.high %v13766_v0, %v3522_v61  ;;  %v14101_v24 = vcombine.high %v13771_v11, %v3241_v10  ;;  %v14104_v42 = vcombine.high %v13777_v45, %v3529_v9 }
 0x65d   : > { %v14049_v40 = vpop.trf.xlu1  ;;  %v14107_v23 = vcombine.low %v13808_v7, %v3785_v13  ;;  %v14113_v33 = vcombine.high %v13808_v7, %v3785_v13  ;;  %v14130_v61 = vcombine.low %v13805_v6, %v3778_v22  ;;  %v14150_v7 = vcombine.high %v13805_v6, %v3778_v22 }
 0x65e   : > { %v3570_v63 = vcombine.low %v13813_v48, %v14049_v40  ;;  %v3571_v37 = vcombine.high %v13813_v48, %v14049_v40  ;;  %v14074_v48 = vrot.slane %v2755_v18, %v13562_v36  ;;  %v3801_v40 = vrot.slane %v3787_v58, %v13571_v46  ;;  %16181 = vst [vmem:[#allocation74_spill] sm:$0xff] %v14104_v42 }
 0x65f   : > { %v14095_v58 = vcombine.low %v13777_v45, %v3529_v9  ;;  %v14098_v18 = vcombine.high %v13748_v43, %v2985_v19  ;;  %v3298_v43 = vcombine.low %v13781_v39, %v14017_v54  ;;  %v3242_v45 = vcombine.low %v14010_v56, %v14013_v49  ;;  %16184 = vst [vmem:[#allocation77_spill] sm:$0xff] %v14130_v61 }
 0x660   : > { %v14120_v19 = vcombine.low %v13816_v60, %v3794_v38  ;;  %v14123_v9 = vcombine.high %v13816_v60, %v3794_v38  ;;  %v14133_v41 = vcombine.low %v13819_v50, %v3801_v40  ;;  %16186 = vst [vmem:[#allocation79_spill] sm:$0xff] %v14150_v7  ;;  %v14167_v6 = vrot.slane %v3570_v63, %v13562_v36 }
 0x661   : > { %v2698_v55 = vpop.trf.xlu1  ;;  %16180 = vst [vmem:[#allocation73_spill] sm:$0xff] %v14098_v18 }
 0x662   : > { %v2770_v20 = vcombine.low %v13844_v8, %v2698_v55  ;;  %v2771_v4 = vcombine.high %v13844_v8, %v2698_v55  ;;  %16182 = vst [vmem:[#allocation75_spill] sm:$0xff] %v14120_v19  ;;  %16183 = vst [vmem:[#allocation76_spill] sm:$0xff] %v14123_v9 }
 0x663   : > { %16185 = vst [vmem:[#allocation78_spill] sm:$0xff] %v14133_v41 }
 0x664   : > { %v2778_v0 = vrot.slane %v2770_v20, %v13562_v36  ;;  %v2785_v19 = vrot.slane %v2771_v4, %v13562_v36  ;;  %v14153_v4 = vcombine.high %v13819_v50, %v3801_v40 }
 0x665   : > { %v2699_v11 = vpop.trf.xlu1 }
 0x666   : > { %v3042_v8 = vcombine.low %v13865_v5, %v2699_v11  ;;  %v3043_v10 = vcombine.high %v13865_v5, %v2699_v11  ;;  %v2818_v55 = vcombine.low %v2762_v2, %v2778_v0  ;;  %v2819_v13 = vcombine.high %v2762_v2, %v2778_v0  ;;  %16187 = vst [vmem:[#allocation80_spill] sm:$0xff] %v14153_v4 }
 0x667   : > { %v14144_v2 = vrot.slane %v3298_v43, %v13562_v36  ;;  %v14147_v11 = vrot.slane %v3242_v45, %v13571_v46  ;;  %v2835_v43 = vcombine.high %v14074_v48, %v2785_v19 }
 0x668   : > { %v14137_v60 = vrot.slane %v3042_v8, %v13562_v36  ;;  %v14140_v38 = vrot.slane %v3043_v10, %v13562_v36  ;;  %v2826_v5 = vrot.slane %v2818_v55, %v13571_v46  ;;  %v16188_v8 = vcombine.high %v13781_v39, %v14017_v54 }
 0x669   : > { %v2700_v0 = vpop.trf.xlu1  ;;  %v2833_v45 = vrot.slane %v2819_v13, %v13571_v46  ;;  %v14173_v39 = vrot.slane %v3571_v37, %v13562_v36  ;;  %v2834_v55 = vcombine.low %v14074_v48, %v2785_v19  ;;  %v16189_v19 = vshrl.u32 %v13979_v21, 16 }
 0x66a   : > { %v14159_v10 = vrot.slane %v16188_v8, %v13562_v36  ;;  %v3314_v50 = vcombine.low %v13902_v59, %v2700_v0  ;;  %v3315_v22 = vcombine.high %v13902_v59, %v2700_v0  ;;  %v2850_v40 = vcombine.low %v13856_v52, %v2826_v5 }
 0x66b   : > { %v3090_v54 = vcombine.low %v14079_v57, %v14137_v60  ;;  %v2851_v8 = vcombine.high %v13856_v52, %v2826_v5  ;;  %v2852_v7 = vcombine.low %v13874_v31, %v2833_v45  ;;  %v2842_v61 = vrot.slane %v2834_v55, %v13571_v46 }
 0x66c   : > { %v14180_v13 = vrot.slane %v3314_v50, %v13562_v36  ;;  %v3329_v63 = vrot.slane %v3315_v22, %v13562_v36  ;;  %v3812_v59 = vpack.i.b16 %v13979_v21, %v2850_v40  ;;  %v3814_v0 = vshrl.u32 %v2850_v40, 16 }
 0x66d   : > { %v2701_v20 = vpop.trf.xlu1  ;;  %v3820_v41 = vpack.i.b16 %v13982_v35, %v2851_v8  ;;  %v3098_v9 = vrot.slane %v3090_v54, %v13571_v46  ;;  %v3091_v21 = vcombine.high %v14079_v57, %v14137_v60  ;;  %v2849_v55 = vrot.slane %v2835_v43, %v13571_v46 }
 0x66e   : > { %v3586_v37 = vcombine.low %v13934_v51, %v2701_v20  ;;  %v3587_v4 = vcombine.high %v13934_v51, %v2701_v20  ;;  %v3362_v52 = vcombine.low %v14144_v2, %v14180_v13  ;;  %v3378_v50 = vcombine.low %v14159_v10, %v3329_v63  ;;  %4066 = vxpose.xlu0.c.b16.start.end [1/1] (short) (narrow) %v3812_v59, 16 }
 0x66f   : > { %v3379_v22 = vcombine.high %v14159_v10, %v3329_v63  ;;  %v3816_v51 = vpack.i.b16 %v16189_v19, %v3814_v0  ;;  %v3822_v20 = vshrl.u32 %v2851_v8, 16  ;;  %v14212_v54 = vcombine.low %v13774_v3, %v14147_v11 }
 0x670   : > { %v3594_v40 = vrot.slane %v3586_v37, %v13562_v36  ;;  %v3601_v48 = vrot.slane %v3587_v4, %v13562_v36  ;;  %v3943_v8 = vshrl.u32 %v14053_v25, 16  ;;  %v16190_v0 = vshrl.u32 %v13982_v35, 16 }
 0x671   : > { %4082 = vxpose.xlu1.c.b16.start.end [1/1] (short) (narrow) %v3816_v51, 16  ;;  %v3830_v37 = vshrl.u32 %v2852_v7, 16  ;;  %v3122_v43 = vcombine.low %v13883_v47, %v3098_v9  ;;  %v14225_v19 = vcombine.high %v13877_v32, %v2842_v61  ;;  %v16194_v5 = vshrl.u32 %v13985_v12, 16 }
 0x672   : > { %v3634_v10 = vcombine.low %v14167_v6, %v3594_v40  ;;  %v3635_v63 = vcombine.high %v14167_v6, %v3594_v40  ;;  %v3650_v59 = vcombine.low %v14173_v39, %v3601_v48  ;;  %v3651_v4 = vcombine.high %v14173_v39, %v3601_v48  ;;  %4098 = vxpose.xlu0.c.b16.start.end [1/1] (short) (narrow) %v3820_v41, 16 }
 0x673   : > { %v3824_v6 = vpack.i.b16 %v16190_v0, %v3822_v20  ;;  %v2853_v40 = vcombine.high %v13874_v31, %v2833_v45  ;;  %v3828_v48 = vpack.i.b16 %v13985_v12, %v2852_v7  ;;  %v2854_v41 = vcombine.low %v13877_v32, %v2842_v61  ;;  %16191 = vst [vmem:[#allocation81_spill] sm:$0xff] %v14225_v19  ;;  %v16192_v45 = vld [vmem:[#allocation62_spill] sm:$0xff] }
 0x674   : > { %v14230_v51 = vcombine.low %v16192_v45, %v2849_v55  ;;  %v3105_v7 = vrot.slane %v3091_v21, %v13571_v46  ;;  %v3832_v32 = vpack.i.b16 %v16194_v5, %v3830_v37  ;;  %v14239_v60 = vcombine.high %v16192_v45, %v2849_v55 }
 0x675   : > { %4114 = vxpose.xlu1.c.b16.start.end [1/1] (short) (narrow) %v3824_v6, 16  ;;  %v3386_v6 = vrot.slane %v3378_v50, %v13571_v46  ;;  %v3838_v61 = vshrl.u32 %v2853_v40, 16  ;;  %v3836_v31 = vpack.i.b16 %v13988_v27, %v2853_v40  ;;  %v3844_v57 = vpack.i.b16 %v13991_v28, %v2854_v41  ;;  %v16197_v40 = vld [vmem:[#allocation63_spill] sm:$0xff] }
 0x676   : > { %4130 = vxpose.xlu0.c.b16.start.end [1/1] (short) (narrow) %v3828_v48, 16  ;;  %16193 = vst [vmem:[#allocation62_spill] sm:$0xff] %v14230_v51  ;;  %16195 = vst [vmem:[#allocation82_spill] sm:$0xff] %v14239_v60  ;;  %v3393_v48 = vrot.slane %v3379_v22, %v13571_v46  ;;  %v3846_v21 = vshrl.u32 %v2854_v41, 16  ;;  %v3854_v20 = vshrl.u32 %v14225_v19, 16  ;;  %v14246_v0 = vcombine.high %v13883_v47, %v3098_v9 }
 0x677   : > { %v3878_v50 = vshrl.u32 %v3122_v43, 16  ;;  %v16196_v12 = vcombine.low %v14082_v53, %v14140_v38  ;;  %v14253_v55 = vrot.slane %v3634_v10, %v13571_v46  ;;  %v3649_v22 = vrot.slane %v3635_v63, %v13571_v46 }
 0x678   : > { %v3862_v37 = vshrl.u32 %v14230_v51, 16  ;;  %v14258_v41 = vcombine.low %v16197_v40, %v3105_v7  ;;  %v16198_v47 = vshrl.u32 %v13988_v27, 16  ;;  %v3870_v45 = vshrl.u32 %v14239_v60, 16 }
 0x679   : > { %4146 = vxpose.xlu1.c.b16.start.end [1/1] (short) (narrow) %v3832_v32, 16  ;;  %v3114_v5 = vrot.slane %v16196_v12, %v13571_v46  ;;  %v14264_v32 = vcombine.high %v16197_v40, %v3105_v7  ;;  %v3370_v12 = vrot.slane %v3362_v52, %v13571_v46  ;;  %v3658_v10 = vrot.slane %v3650_v59, %v13571_v46  ;;  %v16202_v59 = vld [vmem:[#allocation64_spill] sm:$0xff] }
 0x67a   : > { %4162 = vxpose.xlu0.c.b16.start.end [1/1] (short) (narrow) %v3836_v31, 16  ;;  %v3840_v9 = vpack.i.b16 %v16198_v47, %v3838_v61  ;;  %v14269_v63 = vrot.slane %v3651_v4, %v13571_v46  ;;  %v16199_v31 = vshrl.u32 %v13991_v28, 16  ;;  %v3876_v39 = vpack.i.b16 %v14029_v15, %v3122_v43 }
 0x67b   : > { %v16200_v27 = vshrl.u32 %v14035_v44, 16  ;;  %v3884_v7 = vpack.i.b16 %v14069_v1, %v14246_v0  ;;  %v16201_v40 = vshrl.u32 %v14029_v15, 16  ;;  %v14283_v47 = vcombine.low %v16202_v59, %v3114_v5 }
 0x67c   : > { %v3848_v35 = vpack.i.b16 %v16199_v31, %v3846_v21  ;;  %v16203_v28 = vshrl.u32 %v14041_v16, 16  ;;  %v3892_v43 = vpack.i.b16 %v14089_v17, %v14258_v41  ;;  %v16204_v21 = vld [vmem:[#allocation68_spill] sm:$0xff]  ;;  %v16205_v15 = vshrl.u32 %v14098_v18, 16 }
 0x67d   : > { %4178 = vxpose.xlu1.c.b16.start.end [1/1] (short) (narrow) %v3840_v9, 16  ;;  %v3856_v61 = vpack.i.b16 %v16200_v27, %v3854_v20  ;;  %v14280_v52 = vpack.i.b16 %v16201_v40, %v3878_v50  ;;  %v14290_v9 = vcombine.low %v16204_v21, %v3370_v12  ;;  %v14293_v20 = vcombine.high %v16204_v21, %v3370_v12 }
 0x67e   : > { %4194 = vxpose.xlu0.c.b16.start.end [1/1] (short) (narrow) %v3844_v57, 16  ;;  %v3864_v4 = vpack.i.b16 %v16203_v28, %v3862_v37  ;;  %v3872_v50 = vpack.i.b16 %v16205_v15, %v3870_v45  ;;  %v14301_v27 = vcombine.high %v16202_v59, %v3114_v5  ;;  %v16206_v21 = vcombine.high %v14082_v53, %v14140_v38  ;;  %v16208_v37 = vld [vmem:[#allocation66_spill] sm:$0xff]  ;;  %v16211_v38 = vld [vmem:[#allocation67_spill] sm:$0xff] }
 0x67f   : > { %v3942_v40 = vshrl.u32 %v14290_v9, 16  ;;  %v3950_v28 = vshrl.u32 %v14293_v20, 16  ;;  %v16207_v59 = vcombine.high %v14144_v2, %v14180_v13  ;;  %v14322_v57 = vcombine.low %v16208_v37, %v3386_v6 }
 0x680   : > { %v14315_v5 = vrot.slane %v16206_v21, %v13571_v46  ;;  %v16209_v12 = vshrl.u32 %v14060_v30, 16  ;;  %v14333_v53 = vcombine.high %v16208_v37, %v3386_v6  ;;  %v14336_v21 = vcombine.low %v16211_v38, %v3393_v48 }
 0x681   : > { %4210 = vxpose.xlu1.c.b16.start.end [1/1] (short) (narrow) %v3848_v35, 16  ;;  %v3377_v15 = vrot.slane %v16207_v59, %v13571_v46  ;;  %v14326_v35 = vpack.i.b16 %v3943_v8, %v3942_v40  ;;  %v3974_v37 = vshrl.u32 %v14322_v57, 16  ;;  %v16215_v6 = vshrl.u32 %v14045_v14, 16 }
 0x682   : > { %4322 = vxpose.xlu0.c.b16.start.end [1/1] (short) (narrow) %v3876_v39, 16  ;;  %v14330_v45 = vpack.i.b16 %v16209_v12, %v3950_v28  ;;  %16210 = vst [vmem:[#allocation63_spill] sm:$0xff] %v14333_v53  ;;  %v14347_v39 = vcombine.high %v16211_v38, %v3393_v48  ;;  %v16213_v12 = vld [vmem:[#allocation69_spill] sm:$0xff]  ;;  %v3982_v8 = vshrl.u32 %v14333_v53, 16  ;;  %v16218_v48 = vshrl.u32 %v14085_v62, 16 }
 0x683   : > { %v14339_v2 = vcombine.low %v13995_v34, %v3377_v15  ;;  %v14342_v13 = vcombine.high %v13995_v34, %v3377_v15  ;;  %v14355_v28 = vcombine.low %v16213_v12, %v3649_v22  ;;  %v14367_v40 = vpack.i.b16 %v16215_v6, %v3974_v37 }
 0x684   : > { %16212 = vst [vmem:[#allocation64_spill] sm:$0xff] %v14347_v39  ;;  %v16217_v34 = vshrl.u32 %v14063_v29, 16  ;;  %v3990_v38 = vshrl.u32 %v14336_v21, 16  ;;  %v16220_v6 = vshrl.u32 %v14092_v26, 16  ;;  %v3998_v53 = vshrl.u32 %v14347_v39, 16  ;;  %v16236_v39 = vld [vmem:[#allocation80_spill] sm:$0xff] }
 0x685   : > { %16214 = vst [vmem:[#allocation68_spill] sm:$0xff] %v14355_v28  ;;  %4242 = vxpose.xlu1.c.b16.start.end [1/1] (short) (narrow) %v3856_v61, 16  ;;  %v3958_v59 = vshrl.u32 %v14339_v2, 16  ;;  %v3966_v15 = vshrl.u32 %v14342_v13, 16  ;;  %16216 = vst [vmem:[#allocation66_spill] sm:$0xff] %v14367_v40  ;;  %v16222_v61 = vld [vmem:[#allocation70_spill] sm:$0xff] }
 0x686   : > { %4354 = vxpose.xlu0.c.b16.start.end [1/1] (short) (narrow) %v3884_v7, 16  ;;  %v14381_v7 = vcombine.high %v16213_v12, %v3649_v22  ;;  %v14386_v37 = vpack.i.b16 %v16220_v6, %v3982_v8  ;;  %v14389_v40 = vcombine.low %v16222_v61, %v3658_v10  ;;  %v16223_v22 = vshrl.u32 %v14095_v58, 16 }
 0x687   : > { %v14374_v31 = vpack.i.b16 %v16217_v34, %v3958_v59  ;;  %v14378_v36 = vpack.i.b16 %v16218_v48, %v3966_v15  ;;  %v14393_v34 = vcombine.high %v16222_v61, %v3658_v10  ;;  %v16225_v48 = vld [vmem:[#allocation71_spill] sm:$0xff]  ;;  %v16227_v15 = vld [vmem:[#allocation72_spill] sm:$0xff]  ;;  %v16242_v60 = vshrl.u32 %v14069_v1, 16 }
 0x688   : > { %16221 = vst [vmem:[#allocation69_spill] sm:$0xff] %v14386_v37  ;;  %v14399_v12 = vpack.i.b16 %v16223_v22, %v3990_v38  ;;  %v14403_v8 = vcombine.low %v16225_v48, %v14253_v55  ;;  %v14407_v6 = vcombine.low %v16227_v15, %v14269_v63  ;;  %v16228_v10 = vld [vmem:[#allocation75_spill] sm:$0xff]  ;;  %v16231_v59 = vld [vmem:[#allocation76_spill] sm:$0xff]  ;;  %v14419_v22 = vcombine.high %v16225_v48, %v14253_v55 }
 0x689   : > { %16219 = vst [vmem:[#allocation67_spill] sm:$0xff] %v14378_v36  ;;  %4274 = vxpose.xlu1.c.b16.start.end [1/1] (short) (narrow) %v3864_v4, 16  ;;  %v16229_v4 = vshrl.u32 %v14104_v42, 16  ;;  %v16234_v36 = vld [vmem:[#allocation78_spill] sm:$0xff]  ;;  %v14427_v61 = vcombine.high %v16227_v15, %v14269_v63  ;;  %v16235_v42 = vld [vmem:[#allocation79_spill] sm:$0xff]  ;;  %v4023_v63 = vshrl.u32 %v14107_v23, 16 }
 0x68a   : > { %16224 = vst [vmem:[#allocation70_spill] sm:$0xff] %v14399_v12  ;;  %16226 = vst [vmem:[#allocation71_spill] sm:$0xff] %v14403_v8  ;;  %4386 = vxpose.xlu0.c.b16.start.end [1/1] (short) (narrow) %v3892_v43, 16  ;;  %v16233_v12 = vld [vmem:[#allocation77_spill] sm:$0xff]  ;;  %v4014_v38 = vshrl.u32 %v14419_v22, 16  ;;  %v4006_v55 = vshrl.u32 %v14403_v8, 16 }
 0x68b   : > { %v14413_v37 = vpack.i.b16 %v16229_v4, %v3998_v53  ;;  %16232 = vst [vmem:[#allocation75_spill] sm:$0xff] %v14419_v22  ;;  %v4015_v53 = vshrl.u32 %v16235_v42, 16  ;;  %v4007_v48 = vshrl.u32 %v16233_v12, 16  ;;  %v4022_v43 = vshrl.u32 %v14355_v28, 16 }
 0x68c   : > { %v16237_v4 = vpack.i.b16 %v14101_v24, %v14264_v32  ;;  %v4031_v8 = vshrl.u32 %v14113_v33, 16  ;;  %v4038_v28 = vshrl.u32 %v14389_v40, 16  ;;  %v4039_v15 = vshrl.u32 %v16228_v10, 16 }
 0x68d   : > { %16230 = vst [vmem:[#allocation72_spill] sm:$0xff] %v14413_v37  ;;  %4306 = vxpose.xlu1.c.b16.start.end [1/1] (short) (narrow) %v3872_v50, 16  ;;  %v14444_v22 = vpack.i.b16 %v4015_v53, %v4014_v38  ;;  %v14446_v42 = vpack.i.b16 %v4007_v48, %v4006_v55  ;;  %v4030_v50 = vshrl.u32 %v14381_v7, 16  ;;  %v14450_v37 = vpack.i.b16 %v4023_v63, %v4022_v43 }
 0x68e   : > { %4418 = vxpose.xlu0.c.b16.start.end [1/1] (short) (narrow) %v16237_v4, 16  ;;  %v4046_v53 = vshrl.u32 %v14393_v34, 16  ;;  %v4047_v4 = vshrl.u32 %v16231_v59, 16  ;;  %v14463_v43 = vpack.i.b16 %v4039_v15, %v4038_v28  ;;  %v4054_v55 = vshrl.u32 %v14407_v6, 16 }
 0x68f   : > { %v14456_v19 = vpack.i.b16 %v4031_v8, %v4030_v50  ;;  %v4055_v48 = vshrl.u32 %v16234_v36, 16  ;;  %v4062_v63 = vshrl.u32 %v14427_v61, 16  ;;  %v16239_v8 = vpack.i.b16 %v14212_v54, %v14283_v47 }
 0x690   : > { %16238 = vst [vmem:[#allocation76_spill] sm:$0xff] %v14463_v43  ;;  %v3263_v50 = vcombine.high %v13774_v3, %v14147_v11  ;;  %v16240_v38 = vcombine.high %v14010_v56, %v14013_v49  ;;  %v14477_v28 = vpack.i.b16 %v4047_v4, %v4046_v53  ;;  %v4063_v15 = vshrl.u32 %v16236_v39, 16  ;;  %v16243_v11 = vld [vmem:[#allocation65_spill] sm:$0xff]  ;;  %v16245_v49 = vld [vmem:[#allocation60_spill] sm:$0xff] }
 0x691   : > { %4338 = vxpose.xlu1.c.b16.start.end [1/1] (short) (narrow) %v14280_v52, 16  ;;  %v16241_v12 = vshrl.u32 %v14246_v0, 16  ;;  %v3894_v43 = vshrl.u32 %v14258_v41, 16  ;;  %v3128_v51 = vcombine.low %v16243_v11, %v14315_v5  ;;  %v16244_v56 = vld [vmem:[#allocation61_spill] sm:$0xff]  ;;  %v3895_v1 = vshrl.u32 %v14089_v17, 16 }
 0x692   : > { %4450 = vxpose.xlu0.c.b16.start.end [1/1] (short) (narrow) %v16239_v8, 16  ;;  %v3257_v52 = vrot.slane %v16240_v38, %v13571_v46  ;;  %v14485_v8 = vpack.i.b16 %v4055_v48, %v4054_v55  ;;  %v3916_v3 = vpack.i.b16 %v3263_v50, %v14301_v27  ;;  %v16246_v38 = vcombine.high %v16244_v56, %v16245_v49 }
 0x693   : > { %v3888_v18 = vpack.i.b16 %v16242_v60, %v16241_v12  ;;  %v14494_v4 = vpack.i.b16 %v4063_v15, %v4062_v63  ;;  %v3896_v0 = vpack.i.b16 %v3895_v1, %v3894_v43  ;;  %v3902_v41 = vshrl.u32 %v14264_v32, 16  ;;  %v16268_v1 = vld [vmem:[#allocation77_spill] sm:$0xff] }
 0x694   : > { %v3225_v53 = vrot.slane %v16246_v38, %v13571_v46  ;;  %v3129_v55 = vcombine.high %v16243_v11, %v14315_v5  ;;  %v3903_v48 = vshrl.u32 %v14101_v24, 16  ;;  %v3910_v63 = vshrl.u32 %v14283_v47, 16 }
 0x695   : > { %4370 = vxpose.xlu1.c.b16.start.end [1/1] (short) (narrow) %v3888_v18, 16  ;;  %v3911_v17 = vshrl.u32 %v14212_v54, 16  ;;  %v3918_v43 = vshrl.u32 %v14301_v27, 16  ;;  %v16247_v5 = vpack.i.b16 %v14053_v25, %v14290_v9  ;;  %v3926_v24 = vshrl.u32 %v3128_v51, 16 }
 0x696   : > { %4482 = vxpose.xlu0.c.b16.start.end [1/1] (short) (narrow) %v3916_v3, 16  ;;  %v3264_v60 = vcombine.low %v3225_v53, %v3257_v52  ;;  %v3265_v56 = vcombine.high %v3225_v53, %v3257_v52  ;;  %v3904_v15 = vpack.i.b16 %v3903_v48, %v3902_v41  ;;  %v3919_v3 = vshrl.u32 %v3263_v50, 16 }
 0x697   : > { %v3912_v32 = vpack.i.b16 %v3911_v17, %v3910_v63  ;;  %v16248_v47 = vpack.i.b16 %v14060_v30, %v14293_v20  ;;  %v3934_v54 = vshrl.u32 %v3129_v55, 16  ;;  %v16249_v27 = vpack.i.b16 %v14063_v29, %v14339_v2  ;;  %v16256_v20 = vld [vmem:[#allocation74_spill] sm:$0xff] }
 0x698   : > { %v3924_v12 = vpack.i.b16 %v3264_v60, %v3128_v51  ;;  %v3932_v18 = vpack.i.b16 %v3265_v56, %v3129_v55  ;;  %v3920_v11 = vpack.i.b16 %v3919_v3, %v3918_v43  ;;  %v3927_v52 = vshrl.u32 %v3264_v60, 16  ;;  %v16252_v51 = vld [vmem:[#allocation63_spill] sm:$0xff] }
 0x699   : > { %4402 = vxpose.xlu1.c.b16.start.end [1/1] (short) (narrow) %v3896_v0, 16  ;;  %v3935_v38 = vshrl.u32 %v3265_v56, 16  ;;  %v16250_v25 = vpack.i.b16 %v14085_v62, %v14342_v13  ;;  %v16251_v30 = vpack.i.b16 %v14045_v14, %v14322_v57  ;;  %v16253_v9 = vpack.i.b16 %v14092_v26, %v16252_v51  ;;  %v16255_v62 = vld [vmem:[#allocation67_spill] sm:$0xff]  ;;  %v16259_v14 = vld [vmem:[#allocation66_spill] sm:$0xff]  ;;  %v16260_v57 = vld [vmem:[#allocation68_spill] sm:$0xff] }
 0x69a   : > { %4514 = vxpose.xlu0.c.b16.start.end [1/1] (short) (narrow) %v3924_v12, 16  ;;  %v3928_v49 = vpack.i.b16 %v3927_v52, %v3926_v24  ;;  %v16254_v29 = vpack.i.b16 %v14095_v58, %v14336_v21  ;;  %v16262_v26 = vld [vmem:[#allocation69_spill] sm:$0xff]  ;;  %v16264_v58 = vld [vmem:[#allocation70_spill] sm:$0xff]  ;;  %v16265_v21 = vpack.i.b16 %v16228_v10, %v14389_v40  ;;  %v16266_v13 = vld [vmem:[#allocation72_spill] sm:$0xff]  ;;  %v16267_v53 = vpack.i.b16 %v16231_v59, %v14393_v34 }
 0x69b   : > { %v3936_v50 = vpack.i.b16 %v3935_v38, %v3934_v54  ;;  %v16269_v60 = vld [vmem:[#allocation71_spill] sm:$0xff]  ;;  %v16275_v55 = vpack.i.b16 %v16236_v39, %v14427_v61  ;;  %v16278_v61 = vld [vmem:[#allocation52_spill] sm:$0xff]  ;;  %v16285_v51 = vld [vmem:[#allocation82_spill] sm:$0xff] }
 0x69c   : > { %v16270_v0 = vpack.i.b16 %v16268_v1, %v16269_v60  ;;  %v16272_v12 = vld [vmem:[#allocation79_spill] sm:$0xff] }
 0x69d   : > { %4434 = vxpose.xlu1.c.b16.start.end [1/1] (short) (narrow) %v3904_v15, 16  ;;  %v16273_v40 = vld [vmem:[#allocation75_spill] sm:$0xff] }
 0x69e   : > { %4546 = vxpose.xlu0.c.b16.start.end [1/1] (short) (narrow) %v3932_v18, 16  ;;  %v16274_v10 = vpack.i.b16 %v16272_v12, %v16273_v40 }
 0x6a1   : > { %4466 = vxpose.xlu1.c.b16.start.end [1/1] (short) (narrow) %v3912_v32, 16 }
 0x6a2   : > { %4578 = vxpose.xlu0.c.b16.start.end [1/1] (short) (narrow) %v16247_v5, 16 }
 0x6a5   : > { %4498 = vxpose.xlu1.c.b16.start.end [1/1] (short) (narrow) %v3920_v11, 16 }
 0x6a6   : > { %4610 = vxpose.xlu0.c.b16.start.end [1/1] (short) (narrow) %v16248_v47, 16 }
 0x6a9   : > { %4530 = vxpose.xlu1.c.b16.start.end [1/1] (short) (narrow) %v3928_v49, 16 }
 0x6aa   : > { %4642 = vxpose.xlu0.c.b16.start.end [1/1] (short) (narrow) %v16249_v27, 16 }
 0x6ad   : > { %4562 = vxpose.xlu1.c.b16.start.end [1/1] (short) (narrow) %v3936_v50, 16 }
 0x6ae   : > { %4674 = vxpose.xlu0.c.b16.start.end [1/1] (short) (narrow) %v16250_v25, 16  ;;  %v16283_v25 = vld [vmem:[#allocation76_spill] sm:$0xff] }
 0x6b1   : > { %4594 = vxpose.xlu1.c.b16.start.end [1/1] (short) (narrow) %v14326_v35, 16  ;;  %v16257_v35 = vld [vmem:[#allocation64_spill] sm:$0xff] }
 0x6b2   : > { %4706 = vxpose.xlu0.c.b16.start.end [1/1] (short) (narrow) %v16251_v30, 16  ;;  %v16258_v2 = vpack.i.b16 %v16256_v20, %v16257_v35  ;;  %v16284_v30 = vld [vmem:[#allocation73_spill] sm:$0xff] }
 0x6b5   : > { %4626 = vxpose.xlu1.c.b16.start.end [1/1] (short) (narrow) %v14330_v45, 16  ;;  %v16261_v45 = vpack.i.b16 %v14107_v23, %v16260_v57 }
 0x6b6   : > { %4738 = vxpose.xlu0.c.b16.start.end [1/1] (short) (narrow) %v16253_v9, 16  ;;  %v16286_v9 = vpack.i.b16 %v16284_v30, %v16285_v51 }
 0x6b9   : > { %4658 = vxpose.xlu1.c.b16.start.end [1/1] (short) (narrow) %v14374_v31, 16  ;;  %v16263_v31 = vpack.i.b16 %v14113_v33, %v14381_v7  ;;  %v16271_v33 = vpack.i.b16 %v16234_v36, %v14407_v6  ;;  %v16276_v36 = vld [vmem:[#allocation55_spill] sm:$0xff] }
 0x6ba   : > { %4770 = vxpose.xlu0.c.b16.start.end [1/1] (short) (narrow) %v16254_v29, 16  ;;  %v16277_v6 = vld [vmem:[#allocation59_spill] sm:$0xff]  ;;  %v2205_v43 = vrot.slane %v16278_v61, %v16276_v36 }
 0x6bb   : > { %v2220_v63 = vrot.slane %v16277_v6, %v16276_v36 }
 0x6bd   : > { %4690 = vxpose.xlu1.c.b16.start.end [1/1] (short) (narrow) %v16255_v62, 16  ;;  %v2228_v5 = vcombine.low %v2205_v43, %v2220_v63 }
 0x6be   : > { %4802 = vxpose.xlu0.c.b16.start.end [1/1] (short) (narrow) %v16258_v2, 16  ;;  %v2229_v2 = vcombine.high %v2205_v43, %v2220_v63 }
 0x6bf   : > { %v14587_v50 = vrot.slane %v2228_v5, %v13571_v46 }
 0x6c1   : > { %4722 = vxpose.xlu1.c.b16.start.end [1/1] (short) (narrow) %v16259_v14, 16  ;;  %v5664_v62 = vpack.c.bf16 %v14587_v50, %v14587_v50 }
 0x6c2   : > { %4898 = vxpose.xlu0.c.b16.start.end [1/1] (short) (narrow) %v16261_v45, 16 }
 0x6c5   : > { %4754 = vxpose.xlu1.c.b16.start.end [1/1] (short) (narrow) %v16262_v26, 16 }
 0x6c6   : > { %4930 = vxpose.xlu0.c.b16.start.end [1/1] (short) (narrow) %v16263_v31, 16 }
 0x6c9   : > { %4786 = vxpose.xlu1.c.b16.start.end [1/1] (short) (narrow) %v16264_v58, 16 }
 0x6ca   : > { %4962 = vxpose.xlu0.c.b16.start.end [1/1] (short) (narrow) %v16265_v21, 16 }
 0x6cd   : > { %4818 = vxpose.xlu1.c.b16.start.end [1/1] (short) (narrow) %v16266_v13, 16  ;;  %v16287_v13 = vmov 0.0  }
 0x6ce   : > { %4994 = vxpose.xlu0.c.b16.start.end [1/1] (short) (narrow) %v16267_v53, 16  ;;  %v2213_v53 = vcombine.high %v16277_v6, %v16287_v13  ;;  %v2198_v60 = vcombine.high %v16278_v61, %v16287_v13 }
 0x6d0   : > { %v4074_v23 = vpop.trf.xlu0  ;;  %v2227_v12 = vrot.slane %v2213_v53, %v16276_v36 }
 0x6d1   : > { %4834 = vxpose.xlu1.c.b16.start.end [1/1] (short) (narrow) %v16270_v0, 16 }
 0x6d2   : > { %5026 = vxpose.xlu0.c.b16.start.end [1/1] (short) (narrow) %v16271_v33, 16 }
 0x6d3   : > { %v4090_v7 = vpop.trf.xlu1 }
 0x6d4   : > { %v4106_v41 = vpop.trf.xlu0 }
 0x6d5   : > { %4866 = vxpose.xlu1.c.b16.start.end [1/1] (short) (narrow) %v16274_v10, 16 }
 0x6d6   : > { %5058 = vxpose.xlu0.c.b16.start.end [1/1] (short) (narrow) %v16275_v55, 16 }
 0x6d7   : > { %v4122_v34 = vpop.trf.xlu1 }
 0x6d8   : > { %v4138_v59 = vpop.trf.xlu0 }
 0x6d9   : > { %4882 = vxpose.xlu1.c.b16.start.end [1/1] (short) (narrow) %v14444_v22, 16  ;;  %v5090_v48 = vcombine.low %v4074_v23, %v4138_v59  ;;  %v16279_v22 = vld [vmem:[#allocation81_spill] sm:$0xff] }
 0x6da   : > { %4850 = vxpose.xlu0.c.b16.start.end [1/1] (short) (narrow) %v14446_v42, 16  ;;  %v16280_v32 = vpack.i.b16 %v14035_v44, %v16279_v22  ;;  %v16281_v44 = vld [vmem:[#allocation62_spill] sm:$0xff] }
 0x6db   : > { %v4154_v56 = vpop.trf.xlu1  ;;  %v14565_v17 = vrot.slane %v5090_v48, %v16276_v36  ;;  %v16282_v54 = vpack.i.b16 %v14041_v16, %v16281_v44 }
 0x6dc   : > { %v5139_v15 = vcombine.low %v4090_v7, %v4154_v56  ;;  %v4170_v18 = vpop.trf.xlu0 }
 0x6dd   : > { %4914 = vxpose.xlu1.c.b16.start.end [1/1] (short) (narrow) %v14450_v37, 16  ;;  %v5098_v39 = vcombine.low %v4106_v41, %v4170_v18 }
 0x6de   : > { %4226 = vxpose.xlu0.c.b16.start.end [1/1] (short) (narrow) %v16280_v32, 16  ;;  %v5146_v24 = vrot.slane %v5139_v15, %v16276_v36 }
 0x6df   : > { %v14574_v42 = vrot.slane %v5098_v39, %v16276_v36  ;;  %v4186_v3 = vpop.trf.xlu1 }
 0x6e0   : > { %v5147_v11 = vcombine.low %v4122_v34, %v4186_v3  ;;  %v14577_v52 = vpop.trf.xlu0  ;;  %v2212_v34 = vrot.slane %v2198_v60, %v16276_v36 }
 0x6e1   : > { %v5122_v37 = vcombine.low %v14565_v17, %v14574_v42  ;;  %4946 = vxpose.xlu1.c.b16.start.end [1/1] (short) (narrow) %v14456_v19, 16 }
 0x6e2   : > { %v5154_v47 = vrot.slane %v5147_v11, %v16276_v36  ;;  %4258 = vxpose.xlu0.c.b16.start.end [1/1] (short) (narrow) %v16282_v54, 16  ;;  %v2244_v56 = vcombine.low %v2212_v34, %v2227_v12 }
 0x6e3   : > { %v4218_v49 = vpop.trf.xlu1 }
 0x6e4   : > { %v5171_v38 = vcombine.low %v5146_v24, %v5154_v47  ;;  %v4330_v27 = vpop.trf.xlu0  ;;  %v2252_v39 = vrot.slane %v2244_v56, %v13571_v46 }
 0x6e5   : > { %4978 = vxpose.xlu1.c.b16.start.end [1/1] (short) (narrow) %v16283_v25, 16  ;;  %v2245_v25 = vcombine.high %v2212_v34, %v2227_v12 }
 0x6e6   : > { %4290 = vxpose.xlu0.c.b16.start.end [1/1] (short) (narrow) %v16286_v9, 16  ;;  %v5178_v40 = vrot.slane %v5171_v38, %v13571_v46  ;;  %v5668_v11 = vpack.c.bf16 %v2252_v39, %v2252_v39 }
 0x6e7   : > { %v4250_v29 = vpop.trf.xlu1 }
 0x6e8   : > { %v4362_v19 = vpop.trf.xlu0 }
 0x6e9   : > { %5010 = vxpose.xlu1.c.b16.start.end [1/1] (short) (narrow) %v14477_v28, 16  ;;  %v14601_v28 = vrot.slane %v2229_v2, %v13571_v46 }
 0x6ea   : > { %5680 = vxpose.xlu0.c.b16.start.end [1/1] (short) (narrow) %v5664_v62, 64  ;;  %v2259_v62 = vrot.slane %v2245_v25, %v13571_v46 }
 0x6eb   : > { %v4282_v16 = vpop.trf.xlu1  ;;  %v5666_v41 = vpack.c.bf16 %v14601_v28, %v14601_v28  ;;  %v2261_v34 = vcombine.high %v14601_v28, %v16287_v13 }
 0x6ec   : > { %v5155_v20 = vcombine.low %v4218_v49, %v4282_v16  ;;  %v4394_v35 = vpop.trf.xlu0  ;;  %v5670_v2 = vpack.c.bf16 %v2259_v62, %v2259_v62 }
 0x6ed   : > { %5042 = vxpose.xlu1.c.b16.start.end [1/1] (short) (narrow) %v14485_v8, 16  ;;  %v5188_v14 = vcombine.low %v4330_v27, %v4394_v35 }
 0x6ee   : > { %v5162_v45 = vrot.slane %v5155_v20, %v16276_v36 }
 0x6ef   : > { %v4314_v57 = vpop.trf.xlu1  ;;  %v5195_v58 = vrot.slane %v5188_v14, %v16276_v36 }
 0x6f0   : > { %v5163_v26 = vcombine.low %v4250_v29, %v4314_v57  ;;  %v4426_v31 = vpop.trf.xlu0 }
 0x6f1   : > { %5074 = vxpose.xlu1.c.b16.start.end [1/1] (short) (narrow) %v14494_v4, 16  ;;  %v5196_v21 = vcombine.low %v4362_v19, %v4426_v31  ;;  %v16288_v4 = vld [vmem:[#allocation53_spill] sm:$0xff]  ;;  %v2260_v31 = vcombine.high %v14587_v50, %v16287_v13 }
 0x6f2   : > { %v5170_v23 = vrot.slane %v5163_v26, %v16276_v36 }
 0x6f3   : > { %v5203_v8 = vrot.slane %v5196_v21, %v16276_v36  ;;  %v4346_v1 = vpop.trf.xlu1 }
 0x6f4   : > { %v5179_v0 = vcombine.low %v5162_v45, %v5170_v23  ;;  %v4458_v33 = vpop.trf.xlu0 }
 0x6f5   : > { %v5220_v7 = vcombine.low %v5195_v58, %v5203_v8  ;;  %2194 = vrot.lane.b32.xlu1 %v16288_v4, %s12873_s13 }
 0x6f6   : > { %v5186_v10 = vrot.slane %v5179_v0, %v13571_v46 }
 0x6f7   : > { %v4378_v55 = vpop.trf.xlu1  ;;  %5712 = vxpose.xlu0.c.b16.start.end [1/1] (short) (narrow) %v5666_v41, 64  ;;  %v5227_v38 = vrot.slane %v5220_v7, %v13571_v46 }
 0x6f8   : > { %v14617_v59 = vcombine.low %v5178_v40, %v5186_v10  ;;  %v4490_v48 = vpop.trf.xlu0 }
 0x6fb   : > { %v4410_v6 = vpop.trf.xlu1 }
 0x6fc   : > { %v5237_v63 = vcombine.low %v4346_v1, %v4410_v6  ;;  %v4522_v15 = vpop.trf.xlu0  ;;  %v5665_v1 = vpack.c.bf16 %v2260_v31, %v2260_v31  ;;  %v5667_v6 = vpack.c.bf16 %v2261_v34, %v2261_v34 }
 0x6fd   : > { %v5204_v18 = vcombine.low %v4458_v33, %v4522_v15 }
 0x6fe   : > { %v5244_v43 = vrot.slane %v5237_v63, %v16276_v36 }
 0x6ff   : > { %v4442_v61 = vpop.trf.xlu1  ;;  %v5211_v3 = vrot.slane %v5204_v18, %v16276_v36 }
 0x700   : > { %v5245_v22 = vcombine.low %v4378_v55, %v4442_v61  ;;  %v4554_v32 = vpop.trf.xlu0 }
 0x701   : > { %v5212_v5 = vcombine.low %v4490_v48, %v4554_v32 }
 0x702   : > { %v5252_v24 = vrot.slane %v5245_v22, %v16276_v36  ;;  %v2262_v22 = vcombine.high %v2252_v39, %v16287_v13 }
 0x703   : > { %v5219_v47 = vrot.slane %v5212_v5, %v16276_v36  ;;  %v4474_v44 = vpop.trf.xlu1 }
 0x704   : > { %v5269_v54 = vcombine.low %v5244_v43, %v5252_v24  ;;  %v14624_v49 = vpop.trf.xlu0  ;;  %5744 = vxpose.xlu0.c.b16.start.end [1/1] (short) (narrow) %v5668_v11, 64  ;;  %v5669_v5 = vpack.c.bf16 %v2262_v22, %v2262_v22 }
 0x705   : > { %v5228_v27 = vcombine.low %v5211_v3, %v5219_v47 }
 0x706   : > { %v5276_v23 = vrot.slane %v5269_v54, %v13571_v46 }
 0x707   : > { %v5235_v30 = vrot.slane %v5228_v27, %v13571_v46  ;;  %v4506_v51 = vpop.trf.xlu1 }
 0x708   : > { %v14628_v9 = vpop.trf.xlu0 }
 0x709   : > { %v14630_v29 = vcombine.low %v5227_v38, %v5235_v30 }
 0x70b   : > { %v4538_v19 = vpop.trf.xlu1  ;;  %v5494_v7 = vshrl.u32 %v14630_v29, 16 }
 0x70c   : > { %v5253_v16 = vcombine.low %v4474_v44, %v4538_v19  ;;  %v14633_v20 = vpop.trf.xlu0  ;;  %v2263_v44 = vcombine.high %v2259_v62, %v16287_v13  ;;  %v5129_v62 = vrot.slane %v5122_v37, %v13571_v46 }
 0x70e   : > { %v5260_v14 = vrot.slane %v5253_v16, %v16276_v36  ;;  %v5671_v27 = vpack.c.bf16 %v2263_v44, %v2263_v44 }
 0x70f   : > { %v4570_v35 = vpop.trf.xlu1 }
 0x710   : > { %v5261_v57 = vcombine.low %v4506_v51, %v4570_v35  ;;  %v14636_v45 = vpop.trf.xlu0  ;;  %v5286_v35 = vcombine.low %v14624_v49, %v14633_v20 }
 0x711   : > { %5776 = vxpose.xlu0.c.b16.start.end [1/1] (short) (narrow) %v5670_v2, 64 }
 0x712   : > { %v5268_v26 = vrot.slane %v5261_v57, %v16276_v36 }
 0x713   : > { %v14641_v58 = vpop.trf.xlu1 }
 0x714   : > { %v5277_v21 = vcombine.low %v5260_v14, %v5268_v26  ;;  %v14643_v53 = vpop.trf.xlu0 }
 0x716   : > { %v5284_v8 = vrot.slane %v5277_v21, %v13571_v46 }
 0x717   : > { %v14647_v60 = vpop.trf.xlu1 }
 0x718   : > { %v14649_v0 = vcombine.low %v5276_v23, %v5284_v8  ;;  %5696 = vxpose.xlu1.c.b16.start.end [1/1] (short) (narrow) %v5665_v1, 64  ;;  %v14651_v33 = vpop.trf.xlu0  ;;  %v5487_v23 = vshrl.u32 %v14617_v59, 16 }
 0x71a   : > { %v5492_v50 = vpack.i.b16 %v14649_v0, %v14630_v29  ;;  %v5495_v41 = vshrl.u32 %v14649_v0, 16 }
 0x71b   : > { %v14657_v12 = vpop.trf.xlu1 }
 0x71c   : > { %v14659_v40 = vpop.trf.xlu0  ;;  %v14661_v10 = vpack.i.b16 %v5495_v41, %v5494_v7  ;;  %v5294_v7 = vcombine.low %v14628_v9, %v14636_v45 }
 0x71d   : > { %v5302_v17 = vcombine.low %v14643_v53, %v14659_v40 }
 0x71f   : > { %v14663_v55 = vpop.trf.xlu1 }
 0x720   : > { %v14667_v48 = vpop.trf.xlu0 }
 0x721   : > { %v5310_v42 = vcombine.low %v14651_v33, %v14667_v48 }
 0x723   : > { %v14669_v56 = vpop.trf.xlu1 }
 0x724   : > { %v4906_v63 = vpop.trf.xlu0 }
 0x725   : > { %5728 = vxpose.xlu1.c.b16.start.end [1/1] (short) (narrow) %v5667_v6, 64 }
 0x727   : > { %v4762_v15 = vpop.trf.xlu1 }
 0x728   : > { %v4938_v18 = vpop.trf.xlu0 }
 0x72b   : > { %v4794_v61 = vpop.trf.xlu1 }
 0x72c   : > { %v4970_v43 = vpop.trf.xlu0  ;;  %v5351_v41 = vcombine.low %v14669_v56, %v4794_v61  ;;  %v5301_v61 = vrot.slane %v5294_v7, %v16276_v36 }
 0x72f   : > { %v4826_v32 = vpop.trf.xlu1 }
 0x730   : > { %v5002_v3 = vpop.trf.xlu0  ;;  %v5359_v34 = vcombine.low %v4762_v15, %v4826_v32 }
 0x732   : > { %5760 = vxpose.xlu1.c.b16.start.end [1/1] (short) (narrow) %v5669_v5, 64  ;;  %v5366_v22 = vrot.slane %v5359_v34, %v16276_v36 }
 0x733   : > { %v4842_v24 = vpop.trf.xlu1 }
 0x734   : > { %v5034_v11 = vpop.trf.xlu0  ;;  %v5384_v57 = vcombine.low %v4842_v24, %v4906_v63 }
 0x735   : > { %v5400_v8 = vcombine.low %v4970_v43, %v5034_v11  ;;  %v5343_v43 = vcombine.low %v14647_v60, %v14663_v55  ;;  %v5317_v60 = vrot.slane %v5310_v42, %v16276_v36  ;;  %v5358_v55 = vrot.slane %v5351_v41, %v16276_v36 }
 0x736   : > { %v5391_v9 = vrot.slane %v5384_v57, %v16276_v36 }
 0x737   : > { %v4874_v28 = vpop.trf.xlu1  ;;  %v5407_v40 = vrot.slane %v5400_v8, %v16276_v36  ;;  %v5350_v24 = vrot.slane %v5343_v43, %v16276_v36 }
 0x738   : > { %v5066_v47 = vpop.trf.xlu0  ;;  %v5392_v1 = vcombine.low %v4874_v28, %v4938_v18  ;;  %v5335_v18 = vcombine.low %v14641_v58, %v14657_v12  ;;  %v5309_v58 = vrot.slane %v5302_v17, %v16276_v36 }
 0x739   : > { %v5408_v49 = vcombine.low %v5002_v3, %v5066_v47 }
 0x73a   : > { %v5399_v33 = vrot.slane %v5392_v1, %v16276_v36  ;;  %v5342_v5 = vrot.slane %v5335_v18, %v16276_v36  ;;  %v2271_v18 = vrot.slane %v16288_v4, %v16276_v36 }
 0x73b   : > { %v4890_v54 = vpop.trf.xlu1  ;;  %v5415_v48 = vrot.slane %v5408_v49, %v16276_v36 }
 0x73c   : > { %v4858_v38 = vpop.trf.xlu0  ;;  %v5416_v44 = vcombine.low %v5391_v9, %v5399_v33 }
 0x73f   : > { %v4922_v25 = vpop.trf.xlu1  ;;  %5792 = vxpose.xlu1.c.b16.start.end [1/1] (short) (narrow) %v5671_v27, 64 }
 0x740   : > { %v4234_v30 = vpop.trf.xlu0  ;;  %v5433_v6 = vcombine.low %v4858_v38, %v4922_v25 }
 0x742   : > { %v5440_v32 = vrot.slane %v5433_v6, %v16276_v36 }
 0x743   : > { %v4954_v51 = vpop.trf.xlu1 }
 0x744   : > { %v4266_v19 = vpop.trf.xlu0  ;;  %v5441_v63 = vcombine.low %v4890_v54, %v4954_v51  ;;  %v5424_v54 = vcombine.low %v5407_v40, %v5415_v48 }
 0x745   : > { %v5106_v39 = vcombine.low %v14577_v52, %v4266_v19  ;;  %v5293_v52 = vrot.slane %v5286_v35, %v16276_v36  ;;  %v5326_v19 = vcombine.low %v5309_v58, %v5317_v60  ;;  %v16292_v60 = vld [vmem:[#allocation56_spill] sm:$0xff] }
 0x746   : > { %v5448_v3 = vrot.slane %v5441_v63, %v16276_v36 }
 0x747   : > { %v4986_v16 = vpop.trf.xlu1  ;;  %v5113_v26 = vrot.slane %v5106_v39, %v16276_v36  ;;  %v5375_v39 = vcombine.low %v5358_v55, %v5366_v22 }
 0x748   : > { %v4298_v2 = vpop.trf.xlu0 }
 0x749   : > { %v5114_v14 = vcombine.low %v4234_v30, %v4298_v2  ;;  %v5318_v30 = vcombine.low %v5293_v52, %v5301_v61  ;;  %v5367_v2 = vcombine.low %v5342_v5, %v5350_v24 }
 0x74b   : > { %v5121_v31 = vrot.slane %v5114_v14, %v16276_v36  ;;  %v5018_v21 = vpop.trf.xlu1  ;;  %v5423_v14 = vrot.slane %v5416_v44, %v13571_v46  ;;  %v5374_v8 = vrot.slane %v5367_v2, %v13571_v46 }
 0x74c   : > { %v14684_v20 = vpop.trf.xlu0 }
 0x74d   : > { %v5130_v37 = vcombine.low %v5113_v26, %v5121_v31  ;;  %v5325_v26 = vrot.slane %v5318_v30, %v13571_v46  ;;  %v5333_v31 = vrot.slane %v5326_v19, %v13571_v46 }
 0x74f   : > { %v5137_v45 = vrot.slane %v5130_v37, %v13571_v46  ;;  %v5050_v53 = vpop.trf.xlu1  ;;  %v5334_v42 = vcombine.low %v5325_v26, %v5333_v31 }
 0x750   : > { %v5449_v56 = vcombine.low %v4986_v16, %v5050_v53  ;;  %v14702_v15 = vpop.trf.xlu0  ;;  %v5465_v16 = vcombine.low %v5440_v32, %v5448_v3 }
 0x751   : > { %v5138_v12 = vcombine.low %v5129_v62, %v5137_v45 }
 0x752   : > { %v5456_v38 = vrot.slane %v5449_v56, %v16276_v36  ;;  %v5502_v56 = vshrl.u32 %v5334_v42, 16 }
 0x753   : > { %v5082_v11 = vpop.trf.xlu1  ;;  %v5484_v28 = vpack.i.b16 %v14617_v59, %v5138_v12  ;;  %v5486_v47 = vshrl.u32 %v5138_v12, 16  ;;  %v5431_v59 = vrot.slane %v5424_v54, %v13571_v46 }
 0x754   : > { %v5457_v27 = vcombine.low %v5018_v21, %v5082_v11  ;;  %v14715_v25 = vpop.trf.xlu0  ;;  %v5382_v21 = vrot.slane %v5375_v39, %v13571_v46 }
 0x755   : > { %16289 = vst [vmem:[#allocation78_spill] sm:$0xff] %v14715_v25  ;;  %v14717_v51 = vpack.i.b16 %v5487_v23, %v5486_v47  ;;  %v5472_v23 = vrot.slane %v5465_v16, %v13571_v46  ;;  %v5432_v1 = vcombine.low %v5423_v14, %v5431_v59  ;;  %v16295_v16 = vld [vmem:[#allocation58_spill] sm:$0xff] }
 0x756   : > { %v5464_v35 = vrot.slane %v5457_v27, %v16276_v36  ;;  %v5383_v37 = vcombine.low %v5374_v8, %v5382_v21 }
 0x757   : > { %v5510_v40 = vshrl.u32 %v5432_v1, 16 }
 0x758   : > { %v5473_v62 = vcombine.low %v5456_v38, %v5464_v35  ;;  %v14722_v57 = vpop.trf.xlu0  ;;  %v5500_v34 = vpack.i.b16 %v5383_v37, %v5334_v42  ;;  %v5503_v0 = vshrl.u32 %v5383_v37, 16 }
 0x75a   : > { %v5480_v52 = vrot.slane %v5473_v62, %v13571_v46  ;;  %v5504_v3 = vpack.i.b16 %v5503_v0, %v5502_v56 }
 0x75c   : > { %v5481_v49 = vcombine.low %v5472_v23, %v5480_v52  ;;  %v14730_v7 = vpop.trf.xlu0 }
 0x75e   : > { %v5508_v17 = vpack.i.b16 %v5481_v49, %v5432_v1  ;;  %v5511_v53 = vshrl.u32 %v5481_v49, 16 }
 0x760   : > { %11606 = vmatpush3.bf16.msra.mxu1 %v5508_v17  ;;  %v14732_v41 = vpop.trf.xlu0  ;;  %v5512_v61 = vpack.i.b16 %v5511_v53, %v5510_v40 }
 0x761   : > { %11607 = vmatprep.subr.bf16.mxu1 %v16287_v13 }
 0x764   : > { %11608 = vmatpush3.bf16.msra.mxu1 %v5500_v34  ;;  %v14735_v6 = vpop.trf.xlu0 }
 0x765   : > { %16290 = vst [vmem:[#allocation80_spill] sm:$0xff] %v14735_v6  ;;  %11609 = vmatprep.subr.bf16.mxu1 %v16287_v13 }
 0x767   : > { %v2195_v63 = vpop.permute.xlu1 %2194 }
 0x768   : > { %v2286_v43 = vrot.slane %v2195_v63, %v16276_v36  ;;  %11610 = vmatpush3.bf16.msra.mxu1 %v5492_v50  ;;  %v14744_v9 = vpop.trf.xlu0  ;;  %v16291_v50 = vld [vmem:[#allocation57_spill] sm:$0xff]  ;;  %v2279_v11 = vcombine.high %v2195_v63, %v16287_v13 }
 0x769   : > { %11611 = vmatprep.subr.bf16.mxu1 %v16287_v13  ;;  %v16293_v12 = vpack.i.b16 %v16291_v50, %v16292_v60 }
 0x76a   : > { %v2294_v45 = vcombine.low %v2271_v18, %v2286_v43  ;;  %v2295_v32 = vcombine.high %v2271_v18, %v2286_v43  ;;  %v2293_v54 = vrot.slane %v2279_v11, %v16276_v36 }
 0x76c   : > { %11612 = vmatpush3.bf16.msra.mxu1 %v5484_v28  ;;  %v2302_v33 = vrot.slane %v2294_v45, %v13571_v46  ;;  %v14748_v48 = vpop.trf.xlu0  ;;  %v2309_v24 = vrot.slane %v2295_v32, %v13571_v46  ;;  %v2264_v28 = vcombine.high %v16288_v4, %v16287_v13 }
 0x76d   : > { %11617 = vmatprep.subr.bf16.mxu1 %v16287_v13 }
 0x76e   : > { %v5672_v58 = vpack.c.bf16 %v2302_v33, %v2302_v33  ;;  %v2326_v29 = vcombine.high %v2302_v33, %v16287_v13  ;;  %v2327_v44 = vcombine.high %v2309_v24, %v16287_v13  ;;  %v5674_v27 = vpack.c.bf16 %v2309_v24, %v2309_v24 }
 0x76f   : > { %11614 = vmatmul.mubr.msk.bf16.vlgmr.msra.gmra.mxu1 %vm5514_vm7, %v16293_v12  ;;  %v2278_v30 = vrot.slane %v2264_v28, %v16276_v36 }
 0x770   : > { %11618 = vmatpush3.bf16.msra.mxu1 %v5512_v61  ;;  %5808 = vxpose.xlu0.c.b16.start.end [1/1] (short) (narrow) %v5672_v58, 64  ;;  %v5673_v55 = vpack.c.bf16 %v2326_v29, %v2326_v29  ;;  %v14756_v22 = vpop.trf.xlu0  ;;  %v5675_v4 = vpack.c.bf16 %v2327_v44, %v2327_v44 }
 0x771   : > { %11619 = vmatprep.subr.bf16.mxu1 %v16287_v13  ;;  %11625 = vmatprep.mubr.msk.bf16.mxu1 %vm12872_vm6, %v16287_v13  ;;  %v2311_v49 = vcombine.high %v2278_v30, %v2293_v54 }
 0x772   : > { %5824 = vxpose.xlu1.c.b16.start.end [1/1] (short) (narrow) %v5673_v55, 64 }
 0x773   : > { %v2325_v34 = vrot.slane %v2311_v49, %v13571_v46 }
 0x774   : > { %11620 = vmatpush3.bf16.msra.mxu1 %v5504_v3  ;;  %v14761_v5 = vpop.trf.xlu0  ;;  %v5937_v3 = vcombine.high %v14684_v20, %v14748_v48 }
 0x775   : > { %16294 = vst [vmem:[#allocation65_spill] sm:$0xff] %v14761_v5  ;;  %11621 = vmatprep.subr.bf16.mxu1 %v16287_v13  ;;  %v2329_v18 = vcombine.high %v2325_v34, %v16287_v13  ;;  %v5678_v43 = vpack.c.bf16 %v2325_v34, %v2325_v34 }
 0x777   : > { %v5679_v53 = vpack.c.bf16 %v2329_v18, %v2329_v18 }
 0x778   : > { %11622 = vmatpush3.bf16.msra.mxu1 %v14661_v10  ;;  %v14769_v47 = vpop.trf.xlu0  ;;  %v2310_v10 = vcombine.low %v2278_v30, %v2293_v54 }
 0x779   : > { %11623 = vmatprep.subr.bf16.mxu1 %v16287_v13  ;;  %v6753_v26 = vcombine.high %v14722_v57, %v14769_v47 }
 0x77a   : > { %v14774_v38 = vpop.trf.xlu1  ;;  %v2318_v14 = vrot.slane %v2310_v10, %v13571_v46 }
 0x77b   : > { %v14801_v8 = vrot.slane %v6753_v26, %v16276_v36 }
 0x77c   : > { %11624 = vmatpush3.bf16.msra.mxu1 %v14717_v51  ;;  %v14778_v19 = vpop.trf.xlu0  ;;  %v2328_v62 = vcombine.high %v2318_v14, %v16287_v13  ;;  %v5676_v31 = vpack.c.bf16 %v2318_v14, %v2318_v14 }
 0x77d   : > { %5840 = vxpose.xlu0.c.b16.start.end [1/1] (short) (narrow) %v5674_v27, 64  ;;  %v5953_v37 = vcombine.high %v14730_v7, %v14778_v19 }
 0x77e   : > { %v14780_v39 = vpop.trf.xlu1  ;;  %v5677_v52 = vpack.c.bf16 %v2328_v62, %v2328_v62 }
 0x77f   : > { %11626 = vmatmul.mubr.msk.bf16.vlgmr.msra.gmra.mxu1 %vm5514_vm7, %v16295_v16  ;;  %5856 = vxpose.xlu1.c.b16.start.end [1/1] (short) (narrow) %v5675_v4, 64 }
 0x780   : > { %v14784_v35 = vpop.trf.xlu0 }
 0x782   : > { %v14786_v2 = vpop.trf.xlu1 }
 0x783   : > { %16296 = vst [vmem:[#allocation61_spill] sm:$0xff] %v14786_v2 }
 0x784   : > { %v14789_v59 = vpop.trf.xlu0 }
 0x785   : > { %16297 = vst [vmem:[#allocation60_spill] sm:$0xff] %v14789_v59 }
 0x786   : > { %v14791_v51 = vpop.trf.xlu1 }
 0x788   : > { %v14796_v21 = vpop.trf.xlu0 }
 0x789   : > { %v6769_v1 = vcombine.high %v14744_v9, %v14796_v21 }
 0x78a   : > { %v14798_v23 = vpop.trf.xlu1  ;;  %5872 = vxpose.xlu0.c.b16.start.end [1/1] (short) (narrow) %v5676_v31, 64 }
 0x78b   : > { %v14806_v17 = vrot.slane %v6769_v1, %v16276_v36 }
 0x78c   : > { %5888 = vxpose.xlu1.c.b16.start.end [1/1] (short) (narrow) %v5677_v52, 64 }
 0x78e   : > { %v14808_v42 = vpop.trf.xlu1 }
 0x792   : > { %v14813_v63 = vpop.trf.xlu1 }
 0x793   : > { %16298 = vst [vmem:[#allocation63_spill] sm:$0xff] %v14813_v63 }
 0x796   : > { %v14816_v45 = vpop.trf.xlu1 }
 0x797   : > { %5904 = vxpose.xlu0.c.b16.start.end [1/1] (short) (narrow) %v5678_v43, 64 }
 0x799   : > { %5920 = vxpose.xlu1.c.b16.start.end [1/1] (short) (narrow) %v5679_v53, 64  ;;  %v5936_v53 = vcombine.low %v14684_v20, %v14748_v48 }
 0x79a   : > { %v14818_v40 = vpop.trf.xlu1 }
 0x79e   : > { %v14820_v33 = vpop.trf.xlu1 }
 0x7a2   : > { %v14822_v56 = vpop.trf.xlu1 }
 0x7a3   : > { %16299 = vst [vmem:[#allocation67_spill] sm:$0xff] %v14822_v56 }
 0x7a6   : > { %v14824_v61 = vpop.trf.xlu1 }
 0x7a7   : > { %v6889_v50 = vcombine.high %v14791_v51, %v14824_v61 }
 0x7a9   : > { %v14839_v55 = vrot.slane %v6889_v50, %v16276_v36  ;;  %v5952_v50 = vcombine.low %v14730_v7, %v14778_v19  ;;  %v5951_v7 = vrot.slane %v5937_v3, %v16276_v36  ;;  %v5967_v19 = vrot.slane %v5953_v37, %v16276_v36 }
 0x7aa   : > { %v14826_v58 = vpop.trf.xlu1 }
 0x7ab   : > { %v5960_v20 = vrot.slane %v5952_v50, %v16276_v36 }
 0x7ae   : > { %v14828_v29 = vpop.trf.xlu1 }
 0x7b2   : > { %v14830_v0 = vpop.trf.xlu1 }
 0x7b3   : > { %16300 = vst [vmem:[#allocation74_spill] sm:$0xff] %v14830_v0 }
 0x7b6   : > { %v14834_v60 = vpop.trf.xlu1 }
 0x7b7   : > { %v6905_v12 = vcombine.high %v14816_v45, %v14834_v60 }
 0x7b9   : > { %v14842_v32 = vrot.slane %v6905_v12, %v16276_v36 }
 0x7d2   : > { %v14846_v24 = vpop.trf.xlu0 }
 0x7d4   : > { %v14848_v11 = vpop.trf.xlu1 }
 0x7d6   : > { %v14850_v28 = vpop.trf.xlu0 }
 0x7d8   : > { %v14852_v44 = vpop.trf.xlu1 }
 0x7d9   : > { %16301 = vst [vmem:[#allocation64_spill] sm:$0xff] %v14852_v44 }
 0x7da   : > { %v14854_v54 = vpop.trf.xlu0 }
 0x7db   : > { %16302 = vst [vmem:[#allocation66_spill] sm:$0xff] %v14854_v54  ;;  %v6225_v54 = vcombine.high %v14732_v41, %v14784_v35 }
 0x7dc   : > { %v14856_v27 = vpop.trf.xlu1 }
 0x7dd   : > { %16303 = vst [vmem:[#allocation68_spill] sm:$0xff] %v14856_v27  ;;  %v6224_v27 = vcombine.low %v14732_v41, %v14784_v35  ;;  %v6768_v41 = vcombine.low %v14744_v9, %v14796_v21  ;;  %v6239_v50 = vrot.slane %v6225_v54, %v16276_v36  ;;  %v6017_v21 = vcombine.high %v5951_v7, %v5967_v19 }
 0x7de   : > { %v14858_v30 = vpop.trf.xlu0 }
 0x7df   : > { %v6232_v37 = vrot.slane %v6224_v27, %v16276_v36 }
 0x7e0   : > { %v14860_v4 = vpop.trf.xlu1 }
 0x7e2   : > { %v14862_v10 = vpop.trf.xlu0 }
 0x7e4   : > { %v14864_v16 = vpop.trf.xlu1 }
 0x7e6   : > { %v14866_v14 = vpop.trf.xlu0 }
 0x7e7   : > { %16304 = vst [vmem:[#allocation69_spill] sm:$0xff] %v14866_v14 }
 0x7e8   : > { %v14868_v62 = vpop.trf.xlu1 }
 0x7e9   : > { %16305 = vst [vmem:[#allocation70_spill] sm:$0xff] %v14868_v62 }
 0x7ea   : > { %v14870_v26 = vpop.trf.xlu0 }
 0x7eb   : > { %16306 = vst [vmem:[#allocation72_spill] sm:$0xff] %v14870_v26  ;;  %v6208_v26 = vcombine.low %v14702_v15, %v14756_v22 }
 0x7ec   : > { %v14872_v31 = vpop.trf.xlu1 }
 0x7ed   : > { %16307 = vst [vmem:[#allocation77_spill] sm:$0xff] %v14872_v31  ;;  %v6209_v31 = vcombine.high %v14702_v15, %v14756_v22  ;;  %v6752_v22 = vcombine.low %v14722_v57, %v14769_v47  ;;  %v6016_v47 = vcombine.low %v5951_v7, %v5967_v19  ;;  %v6089_v7 = vcombine.high %v14798_v23, %v14826_v58 }
 0x7ee   : > { %v14874_v52 = vpop.trf.xlu0 }
 0x7ef   : > { %v6223_v3 = vrot.slane %v6209_v31, %v16276_v36  ;;  %v6760_v9 = vrot.slane %v6752_v22, %v16276_v36  ;;  %v6776_v31 = vrot.slane %v6768_v41, %v16276_v36  ;;  %v14952_v22 = vrot.slane %v6016_v47, %v13571_v46 }
 0x7f0   : > { %v14876_v1 = vpop.trf.xlu1 }
 0x7f2   : > { %v14878_v49 = vpop.trf.xlu0 }
 0x7f4   : > { %v14880_v34 = vpop.trf.xlu1 }
 0x7f6   : > { %v14882_v18 = vpop.trf.xlu0 }
 0x7f8   : > { %v14884_v43 = vpop.trf.xlu1 }
 0x7f9   : > { %16308 = vst [vmem:[#allocation71_spill] sm:$0xff] %v14884_v43  ;;  %v6288_v43 = vcombine.low %v6223_v3, %v6239_v50 }
 0x7fa   : > { %v14890_v12 = vpop.trf.xlu0 }
 0x7fb   : > { %16309 = vst [vmem:[#allocation79_spill] sm:$0xff] %v14890_v12  ;;  %v5944_v12 = vrot.slane %v5936_v53, %v16276_v36  ;;  %v6216_v53 = vrot.slane %v6208_v26, %v16276_v36  ;;  %v6496_v26 = vcombine.low %v14735_v6, %v14789_v59  ;;  %v6104_v6 = vcombine.low %v14848_v11, %v14880_v34 }
 0x7fc   : > { %v14896_v13 = vpop.trf.xlu1 }
 0x7fd   : > { %16310 = vst [vmem:[#allocation75_spill] sm:$0xff] %v14896_v13  ;;  %v6480_v13 = vcombine.low %v14715_v25, %v14761_v5  ;;  %v6000_v15 = vcombine.low %v5944_v12, %v5960_v20  ;;  %v6001_v57 = vcombine.high %v5944_v12, %v5960_v20  ;;  %v6272_v27 = vcombine.low %v6216_v53, %v6232_v37 }
 0x7fe   : > { %v14908_v48 = vpop.trf.xlu0  ;;  %v6273_v54 = vcombine.high %v6216_v53, %v6232_v37  ;;  %v6289_v5 = vcombine.high %v6223_v3, %v6239_v50  ;;  %v6088_v20 = vcombine.low %v14798_v23, %v14826_v58  ;;  %v14957_v41 = vrot.slane %v6496_v26, %v16276_v36 }
 0x7ff   : > { %v14937_v25 = vrot.slane %v6480_v13, %v16276_v36  ;;  %v14942_v12 = vrot.slane %v6000_v15, %v13571_v46  ;;  %v14949_v19 = vrot.slane %v6001_v57, %v13571_v46  ;;  %v6072_v13 = vcombine.low %v14774_v38, %v14818_v40 }
 0x800   : > { %v14920_v35 = vpop.trf.xlu1  ;;  %16312 = vst [vmem:[#allocation59_spill] sm:$0xff] %v14957_v41  ;;  %v6816_v15 = vcombine.low %v6760_v9, %v6776_v31  ;;  %v14962_v3 = vrot.slane %v6017_v21, %v13571_v46  ;;  %v6073_v23 = vcombine.high %v14774_v38, %v14818_v40  ;;  %v14967_v58 = vrot.slane %v6272_v27, %v13571_v46 }
 0x801   : > { %16311 = vst [vmem:[#allocation55_spill] sm:$0xff] %v14937_v25  ;;  %v14970_v37 = vrot.slane %v6273_v54, %v13571_v46  ;;  %v14973_v50 = vrot.slane %v6288_v43, %v13571_v46  ;;  %v6817_v57 = vcombine.high %v6760_v9, %v6776_v31  ;;  %v14980_v26 = vrot.slane %v6289_v5, %v13571_v46 }
 0x802   : > { %v14928_v14 = vpop.trf.xlu0  ;;  %v6832_v38 = vcombine.low %v14801_v8, %v14806_v17  ;;  %v16314_v40 = vcombine.high %v14801_v8, %v14806_v17  ;;  %v6096_v43 = vrot.slane %v6088_v20, %v16276_v36  ;;  %v6103_v9 = vrot.slane %v6089_v7, %v16276_v36 }
 0x803   : > { %v5984_v47 = vcombine.low %v14862_v10, %v14928_v14  ;;  %16313 = vst [vmem:[#allocation52_spill] sm:$0xff] %v14980_v26  ;;  %v6080_v54 = vrot.slane %v6072_v13, %v16276_v36  ;;  %v5968_v5 = vcombine.low %v14846_v24, %v14878_v49  ;;  %v15000_v59 = vrot.slane %v6816_v15, %v13571_v46 }
 0x804   : > { %v14934_v44 = vpop.trf.xlu1  ;;  %v14988_v27 = vrot.slane %v16314_v40, %v13571_v46  ;;  %v6087_v8 = vrot.slane %v6073_v23, %v16276_v36  ;;  %v6344_v17 = vcombine.low %v14780_v39, %v14820_v33  ;;  %v6345_v20 = vcombine.high %v14780_v39, %v14820_v33 }
 0x805   : > { %v6120_v21 = vcombine.low %v14864_v16, %v14934_v44  ;;  %16316 = vst [vmem:[#allocation62_spill] sm:$0xff] %v15000_v59  ;;  %v6360_v7 = vcombine.low %v14808_v42, %v14828_v29  ;;  %v6616_v13 = vcombine.low %v14786_v2, %v14822_v56  ;;  %v6888_v40 = vcombine.low %v14791_v51, %v14824_v61 }
 0x806   : > { %v14939_v62 = vpop.trf.xlu0  ;;  %16315 = vst [vmem:[#allocation81_spill] sm:$0xff] %v14988_v27  ;;  %v5992_v15 = vrot.slane %v5984_v47, %v16276_v36  ;;  %v6136_v41 = vcombine.low %v6080_v54, %v6096_v43  ;;  %v6137_v26 = vcombine.high %v6080_v54, %v6096_v43  ;;  %v6152_v27 = vcombine.low %v6087_v8, %v6103_v9 }
 0x807   : > { %v6128_v25 = vrot.slane %v6120_v21, %v16276_v36  ;;  %v6153_v59 = vcombine.high %v6087_v8, %v6103_v9  ;;  %v6361_v39 = vcombine.high %v14808_v42, %v14828_v29  ;;  %v5976_v33 = vrot.slane %v5968_v5, %v16276_v36 }
 0x808   : > { %v14959_v53 = vpop.trf.xlu1  ;;  %v6112_v2 = vrot.slane %v6104_v6, %v16276_v36  ;;  %v15022_v56 = vrot.slane %v6817_v57, %v13571_v46  ;;  %v15025_v51 = vrot.slane %v6344_v17, %v16276_v36  ;;  %v15028_v61 = vrot.slane %v6345_v20, %v16276_v36 }
 0x809   : > { %v15031_v47 = vrot.slane %v6360_v7, %v16276_v36  ;;  %v15034_v43 = vrot.slane %v6832_v38, %v13571_v46  ;;  %v15037_v42 = vrot.slane %v6616_v13, %v16276_v36  ;;  %v15040_v6 = vrot.slane %v6888_v40, %v16276_v36 }
 0x80a   : > { %v14992_v31 = vpop.trf.xlu0  ;;  %v6032_v29 = vcombine.low %v5976_v33, %v5992_v15  ;;  %v6168_v57 = vcombine.low %v6112_v2, %v6128_v25  ;;  %v6144_v9 = vrot.slane %v6136_v41, %v13571_v46  ;;  %v15044_v54 = vrot.slane %v6137_v26, %v13571_v46 }
 0x80b   : > { %16317 = vst [vmem:[#allocation76_spill] sm:$0xff] %v15037_v42  ;;  %v15047_v5 = vrot.slane %v6152_v27, %v13571_v46  ;;  %v15050_v8 = vrot.slane %v6153_v59, %v13571_v46  ;;  %v15053_v38 = vrot.slane %v6361_v39, %v16276_v36  ;;  %v6632_v17 = vcombine.low %v14813_v63, %v14830_v0  ;;  %v16329_v0 = vld [vmem:[#allocation68_spill] sm:$0xff] }
 0x80c   : > { %v15015_v23 = vpop.trf.xlu1  ;;  %v6408_v26 = vcombine.low %v15025_v51, %v15031_v47  ;;  %v6904_v27 = vcombine.low %v14816_v45, %v14834_v60  ;;  %v6105_v59 = vcombine.high %v14848_v11, %v14880_v34  ;;  %v16318_v13 = vcombine.low %v14858_v30, %v14908_v48 }
 0x80d   : > { %v6040_v45 = vrot.slane %v6032_v29, %v13571_v46  ;;  %v6176_v60 = vrot.slane %v6168_v57, %v13571_v46  ;;  %v6121_v11 = vcombine.high %v14864_v16, %v14934_v44  ;;  %v5985_v29 = vcombine.high %v14862_v10, %v14928_v14 }
 0x80e   : > { %v5915_v21 = vpop.trf.xlu0  ;;  %v15071_v40 = vrot.slane %v16318_v13, %v16276_v36  ;;  %v6169_v57 = vcombine.high %v6112_v2, %v6128_v25  ;;  %v6409_v10 = vcombine.high %v15025_v51, %v15031_v47  ;;  %v6912_v14 = vrot.slane %v6904_v27, %v16276_v36 }
 0x80f   : > { %v6800_v20 = vcombine.low %v14874_v52, %v5915_v21  ;;  %v6801_v7 = vcombine.high %v14874_v52, %v5915_v21  ;;  %v16319_v52 = vcombine.high %v14858_v30, %v14908_v48  ;;  %v6921_v21 = vcombine.high %v14860_v4, %v14920_v35 }
 0x810   : > { %v15059_v41 = vpop.trf.xlu1  ;;  %v5969_v48 = vcombine.high %v14846_v24, %v14878_v49  ;;  %v6064_v25 = vcombine.low %v14942_v12, %v6040_v45  ;;  %v6200_v2 = vcombine.low %v6144_v9, %v6176_v60  ;;  %v15116_v49 = vrot.slane %v6105_v59, %v16276_v36 }
 0x811   : > { %v15077_v39 = vrot.slane %v16319_v52, %v16276_v36  ;;  %v15086_v34 = vrot.slane %v6800_v20, %v16276_v36  ;;  %v15089_v13 = vrot.slane %v6801_v7, %v16276_v36  ;;  %v6937_v30 = vcombine.high %v14876_v1, %v15059_v41 }
 0x812   : > { %v6033_v52 = vcombine.high %v5976_v33, %v5992_v15  ;;  %v15106_v63 = vrot.slane %v6921_v21, %v16276_v36  ;;  %v15119_v15 = vrot.slane %v6121_v11, %v16276_v36  ;;  %v15122_v33 = vrot.slane %v5985_v29, %v16276_v36 }
 0x813   : > { %v15109_v24 = vrot.slane %v6937_v30, %v16276_v36  ;;  %v6183_v30 = vrot.slane %v6169_v57, %v13571_v46  ;;  %v7026_v20 = vpack.i.b16 %v6200_v2, %v6064_v25  ;;  %v7028_v51 = vshrl.u32 %v6064_v25, 16 }
 0x814   : > { %v6047_v21 = vrot.slane %v6033_v52, %v13571_v46  ;;  %v7029_v47 = vshrl.u32 %v6200_v2, 16  ;;  %v6065_v27 = vcombine.high %v14942_v12, %v6040_v45  ;;  %v6424_v59 = vcombine.low %v15028_v61, %v15053_v38 }
 0x815   : > { %v6425_v11 = vcombine.high %v15028_v61, %v15053_v38  ;;  %v15134_v29 = vrot.slane %v6632_v17, %v16276_v36  ;;  %v15137_v52 = vrot.slane %v5969_v48, %v16276_v36  ;;  %v6184_v57 = vcombine.low %v15116_v49, %v15119_v15  ;;  %7280 = vxpose.xlu0.c.b16.start.end [1/1] (short) (narrow) %v7026_v20, 16 }
 0x816   : > { %v7030_v25 = vpack.i.b16 %v7029_v47, %v7028_v51  ;;  %v6201_v2 = vcombine.high %v6144_v9, %v6176_v60  ;;  %v15142_v12 = vrot.slane %v6408_v26, %v13571_v46  ;;  %v6952_v45 = vcombine.low %v15040_v6, %v6912_v14 }
 0x817   : > { %16320 = vst [vmem:[#allocation73_spill] sm:$0xff] %v15134_v29  ;;  %v6048_v61 = vcombine.low %v15137_v52, %v15122_v33  ;;  %v6202_v38 = vcombine.low %v15044_v54, %v6183_v30  ;;  %v15149_v17 = vrot.slane %v6409_v10, %v13571_v46  ;;  %v7036_v7 = vshrl.u32 %v6065_v27, 16 }
 0x818   : > { %7296 = vxpose.xlu1.c.b16.start.end [1/1] (short) (narrow) %v7030_v25, 16  ;;  %v7034_v48 = vpack.i.b16 %v6201_v2, %v6065_v27  ;;  %v7037_v16 = vshrl.u32 %v6201_v2, 16  ;;  %v6066_v20 = vcombine.low %v14949_v19, %v6047_v21  ;;  %v6953_v9 = vcombine.high %v15040_v6, %v6912_v14 }
 0x819   : > { %v6968_v26 = vcombine.low %v14839_v55, %v14842_v32  ;;  %v6240_v60 = vcombine.low %v14850_v28, %v14882_v18  ;;  %v15158_v51 = vrot.slane %v6424_v59, %v13571_v46  ;;  %v6192_v10 = vrot.slane %v6184_v57, %v13571_v46 }
 0x81a   : > { %7312 = vxpose.xlu0.c.b16.start.end [1/1] (short) (narrow) %v7034_v48, 16  ;;  %v7038_v47 = vpack.i.b16 %v7037_v16, %v7036_v7  ;;  %v7045_v25 = vshrl.u32 %v6202_v38, 16  ;;  %v6203_v27 = vcombine.high %v15044_v54, %v6183_v30  ;;  %v16321_v6 = vcombine.high %v14839_v55, %v14842_v32  ;;  %v16324_v48 = vld [vmem:[#allocation64_spill] sm:$0xff] }
 0x81b   : > { %v6241_v2 = vcombine.high %v14850_v28, %v14882_v18  ;;  %v15171_v44 = vrot.slane %v6425_v11, %v13571_v46  ;;  %v15174_v59 = vrot.slane %v6952_v45, %v13571_v46  ;;  %v6056_v16 = vrot.slane %v6048_v61, %v13571_v46  ;;  %v16322_v11 = vld [vmem:[#allocation70_spill] sm:$0xff] }
 0x81c   : > { %v15166_v14 = vrot.slane %v16321_v6, %v13571_v46  ;;  %7328 = vxpose.xlu1.c.b16.start.end [1/1] (short) (narrow) %v7038_v47, 16  ;;  %v7042_v7 = vpack.i.b16 %v6202_v38, %v6066_v20  ;;  %v7044_v54 = vshrl.u32 %v6066_v20, 16  ;;  %v6067_v30 = vcombine.high %v14949_v19, %v6047_v21  ;;  %v16323_v38 = vld [vmem:[#allocation71_spill] sm:$0xff]  ;;  %v16325_v20 = vld [vmem:[#allocation69_spill] sm:$0xff] }
 0x81d   : > { %v15179_v55 = vrot.slane %v6240_v60, %v16276_v36  ;;  %v6185_v32 = vcombine.high %v15116_v49, %v15119_v15  ;;  %v15184_v28 = vrot.slane %v6953_v9, %v13571_v46  ;;  %v15187_v18 = vrot.slane %v6968_v26, %v13571_v46  ;;  %v16326_v6 = vld [vmem:[#allocation79_spill] sm:$0xff] }
 0x81e   : > { %v6392_v57 = vcombine.low %v16322_v11, %v14959_v53  ;;  %7344 = vxpose.xlu0.c.b16.start.end [1/1] (short) (narrow) %v7042_v7, 16  ;;  %v7046_v45 = vpack.i.b16 %v7045_v25, %v7044_v54  ;;  %v7053_v61 = vshrl.u32 %v6203_v27, 16  ;;  %v6204_v19 = vcombine.low %v15047_v5, %v6192_v10  ;;  %v16328_v54 = vld [vmem:[#allocation75_spill] sm:$0xff] }
 0x81f   : > { %v15193_v21 = vrot.slane %v6241_v2, %v16276_v36  ;;  %v6376_v49 = vcombine.low %v16324_v48, %v16323_v38  ;;  %v6377_v15 = vcombine.high %v16324_v48, %v16323_v38  ;;  %v6256_v9 = vcombine.low %v16325_v20, %v14939_v62  ;;  %v16327_v2 = vld [vmem:[#allocation66_spill] sm:$0xff] }
 0x820   : > { %v6049_v26 = vcombine.high %v15137_v52, %v15122_v33  ;;  %7360 = vxpose.xlu1.c.b16.start.end [1/1] (short) (narrow) %v7046_v45, 16  ;;  %v7050_v60 = vpack.i.b16 %v6203_v27, %v6067_v30  ;;  %v7052_v47 = vshrl.u32 %v6067_v30, 16  ;;  %v6068_v25 = vcombine.low %v14952_v22, %v6056_v16 }
 0x821   : > { %v6512_v7 = vcombine.low %v16327_v2, %v16326_v6  ;;  %v6648_v42 = vcombine.low %v16329_v0, %v16328_v54  ;;  %v6199_v29 = vrot.slane %v6185_v32, %v13571_v46  ;;  %v6257_v38 = vcombine.high %v16325_v20, %v14939_v62 }
 0x822   : > { %v6400_v48 = vrot.slane %v6392_v57, %v16276_v36  ;;  %7376 = vxpose.xlu0.c.b16.start.end [1/1] (short) (narrow) %v7050_v60, 16  ;;  %v7054_v33 = vpack.i.b16 %v7053_v61, %v7052_v47  ;;  %v7061_v52 = vshrl.u32 %v6204_v19, 16  ;;  %v6205_v27 = vcombine.high %v15047_v5, %v6192_v10 }
 0x823   : > { %v6384_v30 = vrot.slane %v6376_v49, %v16276_v36  ;;  %v6920_v45 = vcombine.low %v14860_v4, %v14920_v35  ;;  %v6264_v2 = vrot.slane %v6256_v9, %v16276_v36  ;;  %v6393_v32 = vcombine.high %v16322_v11, %v14959_v53 }
 0x824   : > { %v6063_v6 = vrot.slane %v6049_v26, %v13571_v46  ;;  %7392 = vxpose.xlu1.c.b16.start.end [1/1] (short) (narrow) %v7054_v33, 16  ;;  %v7058_v62 = vpack.i.b16 %v6204_v19, %v6068_v25  ;;  %v7060_v57 = vshrl.u32 %v6068_v25, 16  ;;  %v6069_v61 = vcombine.high %v14952_v22, %v6056_v16 }
 0x825   : > { %v6391_v20 = vrot.slane %v6377_v15, %v16276_v36  ;;  %v15223_v5 = vrot.slane %v6512_v7, %v16276_v36  ;;  %v15226_v10 = vrot.slane %v6648_v42, %v16276_v36  ;;  %v6271_v4 = vrot.slane %v6257_v38, %v16276_v36  ;;  %v16330_v42 = vld [vmem:[#allocation77_spill] sm:$0xff] }
 0x826   : > { %v6440_v35 = vcombine.low %v6384_v30, %v6400_v48  ;;  %7408 = vxpose.xlu0.c.b16.start.end [1/1] (short) (narrow) %v7058_v62, 16  ;;  %v7062_v53 = vpack.i.b16 %v7061_v52, %v7060_v57  ;;  %v7069_v11 = vshrl.u32 %v6205_v27, 16  ;;  %v6206_v49 = vcombine.low %v15050_v8, %v6199_v29 }
 0x827   : > { %v15233_v22 = vrot.slane %v6920_v45, %v16276_v36  ;;  %v6304_v16 = vcombine.low %v15179_v55, %v6264_v2  ;;  %v6407_v15 = vrot.slane %v6393_v32, %v16276_v36  ;;  %v6664_v9 = vcombine.low %v16330_v42, %v15015_v23 }
 0x828   : > { %v6305_v26 = vcombine.high %v15179_v55, %v6264_v2  ;;  %7424 = vxpose.xlu1.c.b16.start.end [1/1] (short) (narrow) %v7062_v53, 16  ;;  %v7066_v60 = vpack.i.b16 %v6205_v27, %v6069_v61  ;;  %v7068_v47 = vshrl.u32 %v6069_v61, 16  ;;  %v6070_v25 = vcombine.low %v14962_v3, %v6063_v6  ;;  %v16331_v53 = vld [vmem:[#allocation72_spill] sm:$0xff] }
 0x829   : > { %v6320_v38 = vcombine.low %v15193_v21, %v6271_v4  ;;  %v6321_v33 = vcombine.high %v15193_v21, %v6271_v4  ;;  %v6441_v52 = vcombine.high %v6384_v30, %v6400_v48  ;;  %v6936_v45 = vcombine.low %v14876_v1, %v15059_v41 }
 0x82a   : > { %v6448_v32 = vrot.slane %v6440_v35, %v13571_v46  ;;  %7440 = vxpose.xlu0.c.b16.start.end [1/1] (short) (narrow) %v7066_v60, 16  ;;  %v7070_v62 = vpack.i.b16 %v7069_v11, %v7068_v47  ;;  %v7077_v57 = vshrl.u32 %v6206_v49, 16  ;;  %v6207_v55 = vcombine.high %v15050_v8, %v6199_v29 }
 0x82b   : > { %v6456_v27 = vcombine.low %v6391_v20, %v6407_v15  ;;  %v6457_v61 = vcombine.high %v6391_v20, %v6407_v15  ;;  %v15252_v21 = vrot.slane %v6664_v9, %v16276_v36  ;;  %v6312_v48 = vrot.slane %v6304_v16, %v13571_v46 }
 0x82c   : > { %7456 = vxpose.xlu1.c.b16.start.end [1/1] (short) (narrow) %v7070_v62, 16  ;;  %v7074_v1 = vpack.i.b16 %v6206_v49, %v6070_v25  ;;  %v7076_v41 = vshrl.u32 %v6070_v25, 16  ;;  %v6071_v30 = vcombine.high %v14962_v3, %v6063_v6  ;;  %v6319_v8 = vrot.slane %v6305_v26, %v13571_v46  ;;  %v16347_v26 = vld [vmem:[#allocation78_spill] sm:$0xff] }
 0x82d   : > { %v15258_v29 = vrot.slane %v6320_v38, %v13571_v46  ;;  %v6455_v20 = vrot.slane %v6441_v52, %v13571_v46  ;;  %v6944_v35 = vrot.slane %v6936_v45, %v16276_v36  ;;  %v15263_v11 = vrot.slane %v6321_v33, %v13571_v46 }
 0x82e   : > { %7472 = vxpose.xlu0.c.b16.start.end [1/1] (short) (narrow) %v7074_v1, 16  ;;  %v7078_v16 = vpack.i.b16 %v7077_v57, %v7076_v41  ;;  %v7085_v15 = vshrl.u32 %v6207_v55, 16  ;;  %v6472_v49 = vcombine.low %v15142_v12, %v6448_v32  ;;  %v15267_v3 = vrot.slane %v6456_v27, %v13571_v46 }
 0x82f   : > { %v15230_v19 = vpop.f32.mrf.mxu1  ;;  %v15270_v6 = vrot.slane %v6457_v61, %v13571_v46  ;;  %v7082_v60 = vpack.i.b16 %v6207_v55, %v6071_v30  ;;  %v7084_v47 = vshrl.u32 %v6071_v30, 16  ;;  %v6336_v25 = vcombine.low %v14967_v58, %v6312_v48 }
 0x830   : > { %7488 = vxpose.xlu1.c.b16.start.end [1/1] (short) (narrow) %v7078_v16, 16  ;;  %v6473_v38 = vcombine.high %v15142_v12, %v6448_v32  ;;  %v16332_v33 = vcombine.low %v15071_v40, %v15086_v34  ;;  %v6984_v45 = vcombine.low %v15233_v22, %v6944_v35  ;;  %v6985_v62 = vcombine.high %v15233_v22, %v6944_v35 }
 0x831   : > { %v11615_v7 = vpop.f32.mrf.mxu1  ;;  %v6474_v57 = vcombine.low %v15149_v17, %v6455_v20  ;;  %v7000_v27 = vcombine.low %v15106_v63, %v15109_v24  ;;  %v7086_v55 = vpack.i.b16 %v7085_v15, %v7084_v47  ;;  %v7093_v61 = vshrl.u32 %v6472_v49, 16 }
 0x832   : > { %v6528_v7 = vcombine.low %v16331_v53, %v14992_v31  ;;  %v6856_v52 = vrot.slane %v16332_v33, %v13571_v46  ;;  %7504 = vxpose.xlu0.c.b16.start.end [1/1] (short) (narrow) %v7082_v60, 16  ;;  %v16333_v12 = vcombine.high %v15071_v40, %v15086_v34  ;;  %v16334_v1 = vcombine.low %v15077_v39, %v15089_v13 }
 0x833   : > { %v15247_v2 = vpop.f32.mrf.mxu1  ;;  %v16335_v41 = vcombine.high %v15077_v39, %v15089_v13  ;;  %v7101_v35 = vshrl.u32 %v6473_v38, 16  ;;  %v15307_v40 = vcombine.high %v14970_v37, %v6319_v8  ;;  %v6992_v34 = vrot.slane %v6984_v45, %v13571_v46 }
 0x834   : > { %v15273_v9 = vrot.slane %v6528_v7, %v16276_v36  ;;  %v6337_v7 = vcombine.high %v14967_v58, %v6312_v48  ;;  %v6863_v32 = vrot.slane %v16333_v12, %v13571_v46  ;;  %v15297_v22 = vrot.slane %v16334_v1, %v13571_v46  ;;  %7520 = vxpose.xlu1.c.b16.start.end [1/1] (short) (narrow) %v7086_v55, 16 }
 0x835   : > { %v11616_v4 = vpop.f32.mrf.mxu1  ;;  %v15303_v30 = vrot.slane %v16335_v41, %v13571_v46  ;;  %v7090_v58 = vpack.i.b16 %v6472_v49, %v6336_v25  ;;  %v7092_v48 = vshrl.u32 %v6336_v25, 16  ;;  %v6999_v16 = vrot.slane %v6985_v62, %v13571_v46 }
 0x836   : > { %v6338_v4 = vcombine.low %v14970_v37, %v6319_v8  ;;  %v7109_v15 = vshrl.u32 %v6474_v57, 16  ;;  %v6475_v60 = vcombine.high %v15149_v17, %v6455_v20  ;;  %v15313_v39 = vrot.slane %v7000_v27, %v13571_v46 }
 0x837   : > { %7536 = vxpose.xlu0.c.b16.start.end [1/1] (short) (narrow) %v7090_v58, 16  ;;  %v7094_v13 = vpack.i.b16 %v7093_v61, %v7092_v48  ;;  %v7100_v47 = vshrl.u32 %v6337_v7, 16  ;;  %v15319_v49 = vcombine.low %v15158_v51, %v15267_v3  ;;  %v16336_v37 = vcombine.high %v15106_v63, %v15109_v24  ;;  %v16337_v61 = vld [vmem:[#allocation62_spill] sm:$0xff] }
 0x838   : > { %v7098_v25 = vpack.i.b16 %v6473_v38, %v6337_v7  ;;  %v7108_v17 = vshrl.u32 %v6338_v4, 16  ;;  %v15329_v20 = vcombine.low %v14973_v50, %v15258_v29  ;;  %v7106_v62 = vpack.i.b16 %v6474_v57, %v6338_v4 }
 0x839   : > { %v15325_v8 = vrot.slane %v16336_v37, %v13571_v46  ;;  %7552 = vxpose.xlu1.c.b16.start.end [1/1] (short) (narrow) %v7094_v13, 16  ;;  %v7102_v45 = vpack.i.b16 %v7101_v35, %v7100_v47  ;;  %v7116_v27 = vshrl.u32 %v15307_v40, 16  ;;  %v15333_v12 = vcombine.low %v16337_v61, %v6856_v52 }
 0x83a   : > { %v7110_v1 = vpack.i.b16 %v7109_v15, %v7108_v17  ;;  %v7114_v63 = vpack.i.b16 %v6475_v60, %v15307_v40  ;;  %v15337_v24 = vcombine.low %v15174_v59, %v6992_v34  ;;  %v15340_v38 = vcombine.high %v16337_v61, %v6856_v52  ;;  %v16346_v52 = vld [vmem:[#allocation65_spill] sm:$0xff] }
 0x83b   : > { %7568 = vxpose.xlu0.c.b16.start.end [1/1] (short) (narrow) %v7098_v25, 16  ;;  %v7117_v7 = vshrl.u32 %v6475_v60, 16  ;;  %v7122_v57 = vpack.i.b16 %v15319_v49, %v15329_v20  ;;  %v15348_v4 = vcombine.high %v14973_v50, %v15258_v29  ;;  %v15351_v58 = vcombine.high %v15174_v59, %v6992_v34 }
 0x83c   : > { %v7124_v48 = vshrl.u32 %v15329_v20, 16  ;;  %v7220_v35 = vshrl.u32 %v15333_v12, 16  ;;  %v7221_v40 = vshrl.u32 %v15337_v24, 16  ;;  %v7228_v50 = vshrl.u32 %v15340_v38, 16 }
 0x83d   : > { %7584 = vxpose.xlu1.c.b16.start.end [1/1] (short) (narrow) %v7102_v45, 16  ;;  %v7229_v29 = vshrl.u32 %v15351_v58, 16  ;;  %v15363_v59 = vcombine.low %v15022_v56, %v6863_v32  ;;  %v7125_v34 = vshrl.u32 %v15319_v49, 16  ;;  %v15369_v47 = vcombine.low %v15184_v28, %v6999_v16 }
 0x83e   : > { %v15366_v13 = vpack.i.b16 %v7221_v40, %v7220_v35  ;;  %v15372_v37 = vcombine.high %v15022_v56, %v6863_v32  ;;  %v7118_v25 = vpack.i.b16 %v7117_v7, %v7116_v27  ;;  %v15377_v20 = vcombine.high %v15184_v28, %v6999_v16  ;;  %v16345_v32 = vld [vmem:[#allocation52_spill] sm:$0xff] }
 0x83f   : > { %v15315_v33 = vpop.f32.mrf.mxu1  ;;  %7600 = vxpose.xlu0.c.b16.start.end [1/1] (short) (narrow) %v7106_v62, 16  ;;  %v15374_v17 = vpack.i.b16 %v7229_v29, %v7228_v50  ;;  %v15381_v45 = vcombine.low %v15034_v43, %v15297_v22  ;;  %v7237_v61 = vshrl.u32 %v15369_v47, 16  ;;  %v15389_v56 = vcombine.low %v15187_v18, %v15313_v39 }
 0x840   : > { %v6477_v28 = vcombine.high %v15158_v51, %v15267_v3  ;;  %v7244_v16 = vshrl.u32 %v15372_v37, 16  ;;  %v7245_v62 = vshrl.u32 %v15377_v20, 16  ;;  %v6478_v51 = vcombine.low %v15171_v44, %v15270_v6 }
 0x841   : > { %v11627_v55 = vpop.f32.mrf.mxu1  ;;  %7616 = vxpose.xlu1.c.b16.start.end [1/1] (short) (narrow) %v7110_v1, 16  ;;  %v7252_v35 = vshrl.u32 %v15381_v45, 16  ;;  %v7253_v40 = vshrl.u32 %v15389_v56, 16  ;;  %v7126_v1 = vpack.i.b16 %v7125_v34, %v7124_v48  ;;  %v15415_v29 = vcombine.high %v15187_v18, %v15313_v39 }
 0x842   : > { %v7236_v55 = vshrl.u32 %v15363_v59, 16  ;;  %v15405_v3 = vpack.i.b16 %v7245_v62, %v7244_v16  ;;  %v7133_v48 = vshrl.u32 %v6477_v28, 16  ;;  %v15432_v18 = vcombine.high %v15166_v14, %v15325_v8 }
 0x843   : > { %v15344_v41 = vpop.f32.mrf.mxu1  ;;  %7632 = vxpose.xlu0.c.b16.start.end [1/1] (short) (narrow) %v7114_v63, 16  ;;  %v15411_v50 = vpack.i.b16 %v7253_v40, %v7252_v35  ;;  %v15423_v63 = vcombine.low %v15166_v14, %v15325_v8  ;;  %v7261_v39 = vshrl.u32 %v15415_v29, 16  ;;  %v16343_v8 = vld [vmem:[#allocation73_spill] sm:$0xff]  ;;  %v16344_v40 = vld [vmem:[#allocation76_spill] sm:$0xff]  ;;  %v7132_v16 = vshrl.u32 %v15348_v4, 16 }
 0x844   : > { %v15397_v27 = vpack.i.b16 %v7237_v61, %v7236_v55  ;;  %v16338_v55 = vld [vmem:[#allocation81_spill] sm:$0xff]  ;;  %16342 = vst [vmem:[#allocation56_spill] sm:$0xff] %v15432_v18  ;;  %v7277_v14 = vshrl.u32 %v15432_v18, 16  ;;  %v16348_v18 = vld [vmem:[#allocation59_spill] sm:$0xff] }
 0x845   : > { %v11628_v15 = vpop.f32.mrf.mxu1  ;;  %v15419_v61 = vcombine.low %v16338_v55, %v15303_v30  ;;  %16340 = vst [vmem:[#allocation53_spill] sm:$0xff] %v15423_v63  ;;  %7648 = vxpose.xlu1.c.b16.start.end [1/1] (short) (narrow) %v7118_v25, 16  ;;  %v7269_v62 = vshrl.u32 %v15423_v63, 16 }
 0x846   : > { %v15409_v15 = vcombine.high %v15034_v43, %v15297_v22  ;;  %v15428_v43 = vcombine.high %v16338_v55, %v15303_v30  ;;  %v6680_v55 = vcombine.low %v16344_v40, %v16343_v8  ;;  %v6576_v22 = vcombine.low %v15223_v5, %v15273_v9 }
 0x847   : > { %16339 = vst [vmem:[#allocation82_spill] sm:$0xff] %v15419_v61  ;;  %v7268_v25 = vshrl.u32 %v15419_v61, 16  ;;  %7664 = vxpose.xlu0.c.b16.start.end [1/1] (short) (narrow) %v7122_v57, 16  ;;  %v7130_v57 = vpack.i.b16 %v6477_v28, %v15348_v4  ;;  %v6342_v30 = vcombine.low %v16345_v32, %v15263_v11  ;;  %v16349_v61 = vld [vmem:[#allocation55_spill] sm:$0xff]  ;;  %v7134_v4 = vpack.i.b16 %v7133_v48, %v7132_v16 }
 0x848   : > { %v7260_v34 = vshrl.u32 %v15409_v15, 16  ;;  %16341 = vst [vmem:[#allocation57_spill] sm:$0xff] %v15428_v43  ;;  %v7276_v35 = vshrl.u32 %v15428_v43, 16  ;;  %v6481_v43 = vcombine.high %v16347_v26, %v16346_v52  ;;  %v6544_v63 = vcombine.low %v16349_v61, %v16348_v18 }
 0x849   : > { %7680 = vxpose.xlu1.c.b16.start.end [1/1] (short) (narrow) %v7126_v1, 16  ;;  %v15455_v49 = vpack.i.b16 %v7269_v62, %v7268_v25  ;;  %v7141_v28 = vshrl.u32 %v6478_v51, 16  ;;  %v6688_v25 = vrot.slane %v6680_v55, %v13571_v46  ;;  %v6584_v62 = vrot.slane %v6576_v22, %v13571_v46  ;;  %v16353_v55 = vld [vmem:[#allocation74_spill] sm:$0xff] }
 0x84a   : > { %v15450_v7 = vpack.i.b16 %v7261_v39, %v7260_v34  ;;  %v15457_v60 = vpack.i.b16 %v7277_v14, %v7276_v35  ;;  %v16350_v34 = vcombine.low %v15226_v10, %v15252_v21  ;;  %v6479_v39 = vcombine.high %v15171_v44, %v15270_v6 }
 0x84b   : > { %7696 = vxpose.xlu0.c.b16.start.end [1/1] (short) (narrow) %v7130_v57, 16  ;;  %v7138_v26 = vpack.i.b16 %v6478_v51, %v6342_v30  ;;  %v7140_v52 = vshrl.u32 %v6342_v30, 16  ;;  %v6343_v35 = vcombine.high %v16345_v32, %v15263_v11  ;;  %v15474_v14 = vrot.slane %v6481_v43, %v16276_v36  ;;  %v16352_v57 = vld [vmem:[#allocation80_spill] sm:$0xff]  ;;  %v16354_v11 = vld [vmem:[#allocation63_spill] sm:$0xff] }
 0x84c   : > { %v6720_v1 = vrot.slane %v16350_v34, %v13571_v46  ;;  %v16351_v34 = vld [vmem:[#allocation60_spill] sm:$0xff]  ;;  %v6665_v16 = vcombine.high %v16330_v42, %v15015_v23  ;;  %v6552_v44 = vrot.slane %v6544_v63, %v13571_v46  ;;  %v6713_v6 = vcombine.high %v15226_v10, %v15252_v21 }
 0x84d   : > { %7712 = vxpose.xlu1.c.b16.start.end [1/1] (short) (narrow) %v7134_v4, 16  ;;  %v6497_v48 = vcombine.high %v16352_v57, %v16351_v34  ;;  %v7142_v51 = vpack.i.b16 %v7141_v28, %v7140_v52  ;;  %v7149_v22 = vshrl.u32 %v6479_v39, 16  ;;  %v6633_v32 = vcombine.high %v16354_v11, %v16353_v55  ;;  %v16356_v52 = vld [vmem:[#allocation61_spill] sm:$0xff] }
 0x84e   : > { %v6744_v30 = vcombine.low %v6688_v25, %v6720_v1  ;;  %v6681_v43 = vcombine.high %v16344_v40, %v16343_v8  ;;  %v6649_v4 = vcombine.high %v16329_v0, %v16328_v54  ;;  %v6529_v23 = vcombine.high %v16331_v53, %v14992_v31  ;;  %v16357_v8 = vld [vmem:[#allocation79_spill] sm:$0xff]  ;;  %v16358_v40 = vld [vmem:[#allocation66_spill] sm:$0xff] }
 0x84f   : > { %7728 = vxpose.xlu0.c.b16.start.end [1/1] (short) (narrow) %v7138_v26, 16  ;;  %v6577_v42 = vcombine.high %v15223_v5, %v15273_v9  ;;  %v7146_v10 = vpack.i.b16 %v6479_v39, %v6343_v35  ;;  %v7148_v21 = vshrl.u32 %v6343_v35, 16  ;;  %v6608_v63 = vcombine.low %v6552_v44, %v6584_v62  ;;  %v16355_v26 = vld [vmem:[#allocation67_spill] sm:$0xff] }
 0x850   : > { %v6545_v28 = vcombine.high %v16349_v61, %v16348_v18  ;;  %v6617_v34 = vcombine.high %v16356_v52, %v16355_v26  ;;  %v6513_v57 = vcombine.high %v16358_v40, %v16357_v8  ;;  %v6679_v0 = vrot.slane %v6665_v16, %v16276_v36 }
 0x851   : > { %7744 = vxpose.xlu1.c.b16.start.end [1/1] (short) (narrow) %v7142_v51, 16  ;;  %v6727_v31 = vrot.slane %v6713_v6, %v13571_v46  ;;  %v7150_v54 = vpack.i.b16 %v7149_v22, %v7148_v21  ;;  %v7157_v5 = vshrl.u32 %v6744_v30, 16  ;;  %v6745_v53 = vcombine.high %v6688_v25, %v6720_v1 }
 0x852   : > { %v6647_v9 = vrot.slane %v6633_v32, %v16276_v36  ;;  %v6663_v39 = vrot.slane %v6649_v4, %v16276_v36  ;;  %v6543_v61 = vrot.slane %v6529_v23, %v16276_v36  ;;  %v6695_v18 = vrot.slane %v6681_v43, %v13571_v46 }
 0x853   : > { %7760 = vxpose.xlu0.c.b16.start.end [1/1] (short) (narrow) %v7146_v10, 16  ;;  %v6591_v35 = vrot.slane %v6577_v42, %v13571_v46  ;;  %v7154_v51 = vpack.i.b16 %v6744_v30, %v6608_v63  ;;  %v7156_v55 = vshrl.u32 %v6608_v63, 16  ;;  %v6609_v16 = vcombine.high %v6552_v44, %v6584_v62 }
 0x854   : > { %v6511_v6 = vrot.slane %v6497_v48, %v16276_v36  ;;  %v6631_v22 = vrot.slane %v6617_v34, %v16276_v36  ;;  %v6527_v1 = vrot.slane %v6513_v57, %v16276_v36  ;;  %v6559_v25 = vrot.slane %v6545_v28, %v13571_v46 }
 0x855   : > { %7776 = vxpose.xlu1.c.b16.start.end [1/1] (short) (narrow) %v7150_v54, 16  ;;  %v6728_v11 = vcombine.low %v6663_v39, %v6679_v0  ;;  %v7158_v32 = vpack.i.b16 %v7157_v5, %v7156_v55  ;;  %v7165_v4 = vshrl.u32 %v6745_v53, 16  ;;  %v6746_v23 = vcombine.low %v6695_v18, %v6727_v31 }
 0x856   : > { %v6696_v43 = vcombine.low %v6631_v22, %v6647_v9  ;;  %v6592_v10 = vcombine.low %v6527_v1, %v6543_v61  ;;  %v7162_v42 = vpack.i.b16 %v6745_v53, %v6609_v16  ;;  %v7164_v30 = vshrl.u32 %v6609_v16, 16 }
 0x857   : > { %7792 = vxpose.xlu0.c.b16.start.end [1/1] (short) (narrow) %v7154_v51, 16  ;;  %v6610_v21 = vcombine.low %v6559_v25, %v6591_v35  ;;  %v6560_v62 = vcombine.low %v15474_v14, %v6511_v6  ;;  %v6736_v48 = vrot.slane %v6728_v11, %v13571_v46  ;;  %v7173_v63 = vshrl.u32 %v6746_v23, 16 }
 0x858   : > { %v7166_v44 = vpack.i.b16 %v7165_v4, %v7164_v30  ;;  %v6747_v26 = vcombine.high %v6695_v18, %v6727_v31  ;;  %v6704_v28 = vrot.slane %v6696_v43, %v13571_v46  ;;  %v6600_v52 = vrot.slane %v6592_v10, %v13571_v46 }
 0x859   : > { %7808 = vxpose.xlu1.c.b16.start.end [1/1] (short) (narrow) %v7158_v32, 16  ;;  %v7170_v34 = vpack.i.b16 %v6746_v23, %v6610_v21  ;;  %v7172_v8 = vshrl.u32 %v6610_v21, 16  ;;  %v6611_v40 = vcombine.high %v6559_v25, %v6591_v35  ;;  %v6568_v57 = vrot.slane %v6560_v62, %v13571_v46 }
 0x85a   : > { %v6729_v54 = vcombine.high %v6663_v39, %v6679_v0  ;;  %v7181_v53 = vshrl.u32 %v6747_v26, 16  ;;  %v6748_v51 = vcombine.low %v6704_v28, %v6736_v48  ;;  %v6697_v55 = vcombine.high %v6631_v22, %v6647_v9 }
 0x85b   : > { %7824 = vxpose.xlu0.c.b16.start.end [1/1] (short) (narrow) %v7162_v42, 16  ;;  %v7174_v5 = vpack.i.b16 %v7173_v63, %v7172_v8  ;;  %v6593_v16 = vcombine.high %v6527_v1, %v6543_v61  ;;  %v7178_v11 = vpack.i.b16 %v6747_v26, %v6611_v40  ;;  %v7180_v31 = vshrl.u32 %v6611_v40, 16 }
 0x85c   : > { %v6612_v18 = vcombine.low %v6568_v57, %v6600_v52  ;;  %v6561_v32 = vcombine.high %v15474_v14, %v6511_v6  ;;  %v6743_v4 = vrot.slane %v6729_v54, %v13571_v46  ;;  %v7189_v35 = vshrl.u32 %v6748_v51, 16 }
 0x85d   : > { %7840 = vxpose.xlu1.c.b16.start.end [1/1] (short) (narrow) %v7166_v44, 16  ;;  %v7182_v23 = vpack.i.b16 %v7181_v53, %v7180_v31  ;;  %v6749_v25 = vcombine.high %v6704_v28, %v6736_v48  ;;  %v6711_v0 = vrot.slane %v6697_v55, %v13571_v46  ;;  %v6607_v39 = vrot.slane %v6593_v16, %v13571_v46 }
 0x85e   : > { %v7186_v43 = vpack.i.b16 %v6748_v51, %v6612_v18  ;;  %v7188_v9 = vshrl.u32 %v6612_v18, 16  ;;  %v6613_v61 = vcombine.high %v6568_v57, %v6600_v52  ;;  %v6575_v10 = vrot.slane %v6561_v32, %v13571_v46 }
 0x85f   : > { %7856 = vxpose.xlu0.c.b16.start.end [1/1] (short) (narrow) %v7170_v34, 16  ;;  %v7197_v1 = vshrl.u32 %v6749_v25, 16  ;;  %v6750_v14 = vcombine.low %v6711_v0, %v6743_v4  ;;  %v6751_v48 = vcombine.high %v6711_v0, %v6743_v4  ;;  %v16359_v57 = vpack.i.b16 %v15337_v24, %v15333_v12 }
 0x860   : > { %v7190_v22 = vpack.i.b16 %v7189_v35, %v7188_v9  ;;  %v7194_v6 = vpack.i.b16 %v6749_v25, %v6613_v61  ;;  %v7196_v42 = vshrl.u32 %v6613_v61, 16  ;;  %v6614_v30 = vcombine.low %v6575_v10, %v6607_v39 }
 0x861   : > { %7872 = vxpose.xlu1.c.b16.start.end [1/1] (short) (narrow) %v7174_v5, 16  ;;  %v7205_v62 = vshrl.u32 %v6750_v14, 16  ;;  %v6615_v26 = vcombine.high %v6575_v10, %v6607_v39  ;;  %v7213_v52 = vshrl.u32 %v6751_v48, 16  ;;  %v16360_v5 = vpack.i.b16 %v15351_v58, %v15340_v38 }
 0x862   : > { %v7198_v21 = vpack.i.b16 %v7197_v1, %v7196_v42  ;;  %v7202_v44 = vpack.i.b16 %v6750_v14, %v6614_v30  ;;  %v7204_v63 = vshrl.u32 %v6614_v30, 16  ;;  %v16361_v55 = vpack.i.b16 %v15369_v47, %v15363_v59 }
 0x863   : > { %7888 = vxpose.xlu0.c.b16.start.end [1/1] (short) (narrow) %v7178_v11, 16  ;;  %v7210_v34 = vpack.i.b16 %v6751_v48, %v6615_v26  ;;  %v7212_v8 = vshrl.u32 %v6615_v26, 16  ;;  %v16362_v24 = vpack.i.b16 %v15377_v20, %v15372_v37  ;;  %v16363_v58 = vpack.i.b16 %v15389_v56, %v15381_v45  ;;  %v11211_v11 = vld [vmem:[%s16364_s8] ss:$0 sm:$0xff] }
 0x864   : > { %v7206_v28 = vpack.i.b16 %v7205_v62, %v7204_v63  ;;  %v5603_v47 = vmul.f32 0.125, %v15230_v19  ;;  %v5604_v37 = vmul.f32 0.125, %v15247_v2  ;;  %v5606_v32 = vmul.f32 0.125, %v15344_v41 }
 0x865   : > { %7904 = vxpose.xlu1.c.b16.start.end [1/1] (short) (narrow) %v7182_v23, 16  ;;  %v7214_v40 = vpack.i.b16 %v7213_v52, %v7212_v8  ;;  %v5605_v19 = vmul.f32 0.125, %v15315_v33 }
 0x866   : > { %v15552_v0 = vadd.f32 %v11211_v11, %v5606_v32 }
 0x867   : > { %7920 = vxpose.xlu0.c.b16.start.end [1/1] (short) (narrow) %v7186_v43, 16 }
 0x868   : > { %v5627_v42 = vsel %vm5617_vm8, %v15552_v0, -inf }
 0x869   : > { %7936 = vxpose.xlu1.c.b16.start.end [1/1] (short) (narrow) %v7190_v22, 16  ;;  %v15558_v22 = vadd.f32 %v11211_v11, %v5605_v19 }
 0x86b   : > { %7952 = vxpose.xlu0.c.b16.start.end [1/1] (short) (narrow) %v7194_v6, 16  ;;  %v5624_v63 = vsel %vm5617_vm8, %v15558_v22, -inf }
 0x86d   : > { %7968 = vxpose.xlu1.c.b16.start.end [1/1] (short) (narrow) %v7198_v21, 16 }
 0x86f   : > { %7984 = vxpose.xlu0.c.b16.start.end [1/1] (short) (narrow) %v7202_v44, 16 }
 0x871   : > { %8000 = vxpose.xlu1.c.b16.start.end [1/1] (short) (narrow) %v7206_v28, 16 }
 0x873   : > { %8016 = vxpose.xlu0.c.b16.start.end [1/1] (short) (narrow) %v7210_v34, 16 }
 0x875   : > { %8032 = vxpose.xlu1.c.b16.start.end [1/1] (short) (narrow) %v7214_v40, 16 }
 0x877   : > { %8048 = vxpose.xlu0.c.b16.start.end [1/1] (short) (narrow) %v16359_v57, 16  ;;  %v7288_v54 = vpop.trf.xlu0 }
 0x879   : > { %8064 = vxpose.xlu1.c.b16.start.end [1/1] (short) (narrow) %v15366_v13, 16 }
 0x87a   : > { %v7304_v53 = vpop.trf.xlu1 }
 0x87b   : > { %8080 = vxpose.xlu0.c.b16.start.end [1/1] (short) (narrow) %v16360_v5, 16 }
 0x87c   : > { %v7320_v51 = vpop.trf.xlu0 }
 0x87d   : > { %8096 = vxpose.xlu1.c.b16.start.end [1/1] (short) (narrow) %v15374_v17, 16 }
 0x87e   : > { %v7336_v16 = vpop.trf.xlu1 }
 0x87f   : > { %8112 = vxpose.xlu0.c.b16.start.end [1/1] (short) (narrow) %v16361_v55, 16 }
 0x880   : > { %v7352_v12 = vpop.trf.xlu0 }
 0x881   : > { %8128 = vxpose.xlu1.c.b16.start.end [1/1] (short) (narrow) %v15397_v27, 16  ;;  %v8304_v31 = vcombine.low %v7288_v54, %v7352_v12 }
 0x882   : > { %v7368_v13 = vpop.trf.xlu1 }
 0x883   : > { %8144 = vxpose.xlu0.c.b16.start.end [1/1] (short) (narrow) %v16362_v24, 16  ;;  %v8353_v56 = vcombine.low %v7304_v53, %v7368_v13  ;;  %v8311_v35 = vrot.slane %v8304_v31, %v16276_v36 }
 0x884   : > { %v7384_v38 = vpop.trf.xlu0 }
 0x885   : > { %8160 = vxpose.xlu1.c.b16.start.end [1/1] (short) (narrow) %v15405_v3, 16  ;;  %v8312_v18 = vcombine.low %v7320_v51, %v7384_v38  ;;  %v15544_v3 = vadd.f32 %v11211_v11, %v5603_v47  ;;  %v8360_v43 = vrot.slane %v8353_v56, %v16276_v36 }
 0x886   : > { %v7400_v17 = vpop.trf.xlu1 }
 0x887   : > { %8176 = vxpose.xlu0.c.b16.start.end [1/1] (short) (narrow) %v16363_v58, 16  ;;  %v8361_v4 = vcombine.low %v7336_v16, %v7400_v17  ;;  %v8319_v2 = vrot.slane %v8312_v18, %v16276_v36  ;;  %v5618_v39 = vsel %vm5617_vm8, %v15544_v3, -inf }
 0x888   : > { %v7416_v59 = vpop.trf.xlu0 }
 0x889   : > { %8192 = vxpose.xlu1.c.b16.start.end [1/1] (short) (narrow) %v15411_v50, 16  ;;  %v15547_v50 = vadd.f32 %v11211_v11, %v5604_v37  ;;  %v8368_v9 = vrot.slane %v8361_v4, %v16276_v36  ;;  %v8336_v10 = vcombine.low %v8311_v35, %v8319_v2 }
 0x88a   : > { %v7432_v27 = vpop.trf.xlu1 }
 0x88b   : > { %v5621_v33 = vsel %vm5617_vm8, %v15547_v50, -inf  ;;  %v8385_v21 = vcombine.low %v8360_v43, %v8368_v9  ;;  %v8343_v28 = vrot.slane %v8336_v10, %v13571_v46 }
 0x88c   : > { %v7448_v20 = vpop.trf.xlu0 }
 0x88d   : > { %v8392_v40 = vrot.slane %v8385_v21, %v13571_v46 }
 0x88e   : > { %v7464_v45 = vpop.trf.xlu1 }
 0x890   : > { %v7480_v23 = vpop.trf.xlu0 }
 0x891   : > { %v8320_v25 = vcombine.low %v7416_v59, %v7480_v23 }
 0x892   : > { %v7496_v41 = vpop.trf.xlu1 }
 0x893   : > { %v8369_v61 = vcombine.low %v7432_v27, %v7496_v41  ;;  %v8327_v14 = vrot.slane %v8320_v25, %v16276_v36 }
 0x894   : > { %5619 = vmax.xlane.f32.xlu0 %v5618_v39  ;;  %v7512_v1 = vpop.trf.xlu0 }
 0x895   : > { %v8328_v6 = vcombine.low %v7448_v20, %v7512_v1  ;;  %v8376_v62 = vrot.slane %v8369_v61, %v16276_v36 }
 0x896   : > { %5622 = vmax.xlane.f32.xlu1 %v5621_v33  ;;  %v7528_v30 = vpop.trf.xlu1 }
 0x897   : > { %v8335_v48 = vrot.slane %v8328_v6, %v16276_v36  ;;  %v8377_v44 = vcombine.low %v7464_v45, %v7528_v30 }
 0x898   : > { %5628 = vmax.xlane.f32.xlu0 %v5627_v42 }
 0x899   : > { %v7544_v26 = vpop.trf.xlu0  ;;  %v8344_v52 = vcombine.low %v8327_v14, %v8335_v48  ;;  %v8384_v34 = vrot.slane %v8377_v44, %v16276_v36 }
 0x89a   : > { %5625 = vmax.xlane.f32.xlu1 %v5624_v63 }
 0x89b   : > { %v7560_v8 = vpop.trf.xlu1  ;;  %v8351_v57 = vrot.slane %v8344_v52, %v13571_v46  ;;  %v8393_v54 = vcombine.low %v8376_v62, %v8384_v34 }
 0x89d   : > { %v7576_v5 = vpop.trf.xlu0  ;;  %v8352_v53 = vcombine.low %v8343_v28, %v8351_v57  ;;  %v8400_v51 = vrot.slane %v8393_v54, %v13571_v46 }
 0x89f   : > { %v7592_v55 = vpop.trf.xlu1  ;;  %v8401_v16 = vcombine.low %v8392_v40, %v8400_v51  ;;  %v8699_v12 = vshrl.u32 %v8352_v53, 16 }
 0x8a1   : > { %v7608_v24 = vpop.trf.xlu0  ;;  %v8698_v38 = vpack.i.b16 %v8401_v16, %v8352_v53  ;;  %v8700_v58 = vshrl.u32 %v8401_v16, 16 }
 0x8a2   : > { %v8402_v13 = vcombine.low %v7544_v26, %v7608_v24  ;;  %v16365_v24 = vpack.i.b16 %v15415_v29, %v15409_v15 }
 0x8a3   : > { %v7624_v17 = vpop.trf.xlu1  ;;  %11631 = vmatprep.mubr.msk.bf16.mxu1 %vm5617_vm8, %v8698_v38  ;;  %v15575_v47 = vpack.i.b16 %v8700_v58, %v8699_v12 }
 0x8a4   : > { %v8451_v59 = vcombine.low %v7560_v8, %v7624_v17  ;;  %v8409_v11 = vrot.slane %v8402_v13, %v16276_v36 }
 0x8a5   : > { %v7640_v27 = vpop.trf.xlu0 }
 0x8a6   : > { %v8410_v37 = vcombine.low %v7576_v5, %v7640_v27  ;;  %v8458_v31 = vrot.slane %v8451_v59, %v16276_v36 }
 0x8a7   : > { %v7656_v20 = vpop.trf.xlu1 }
 0x8a8   : > { %v8417_v18 = vrot.slane %v8410_v37, %v16276_v36  ;;  %v8459_v32 = vcombine.low %v7592_v55, %v7656_v20 }
 0x8a9   : > { %v7672_v45 = vpop.trf.xlu0 }
 0x8aa   : > { %v8434_v56 = vcombine.low %v8409_v11, %v8417_v18  ;;  %v8466_v4 = vrot.slane %v8459_v32, %v16276_v36 }
 0x8ab   : > { %v7688_v19 = vpop.trf.xlu1 }
 0x8ac   : > { %v8483_v23 = vcombine.low %v8458_v31, %v8466_v4  ;;  %v8441_v30 = vrot.slane %v8434_v56, %v13571_v46 }
 0x8ad   : > { %v7704_v35 = vpop.trf.xlu0 }
 0x8ae   : > { %v8490_v44 = vrot.slane %v8483_v23, %v13571_v46 }
 0x8af   : > { %v7720_v2 = vpop.trf.xlu1 }
 0x8b1   : > { %v7736_v25 = vpop.trf.xlu0 }
 0x8b2   : > { %v8418_v39 = vcombine.low %v7672_v45, %v7736_v25 }
 0x8b3   : > { %v7752_v41 = vpop.trf.xlu1 }
 0x8b4   : > { %v8467_v43 = vcombine.low %v7688_v19, %v7752_v41  ;;  %v8425_v61 = vrot.slane %v8418_v39, %v16276_v36 }
 0x8b5   : > { %v7768_v9 = vpop.trf.xlu0 }
 0x8b6   : > { %v8426_v33 = vcombine.low %v7704_v35, %v7768_v9  ;;  %v8474_v10 = vrot.slane %v8467_v43, %v16276_v36 }
 0x8b7   : > { %v7784_v1 = vpop.trf.xlu1 }
 0x8b8   : > { %v8433_v14 = vrot.slane %v8426_v33, %v16276_v36  ;;  %v8475_v6 = vcombine.low %v7720_v2, %v7784_v1 }
 0x8b9   : > { %v7800_v42 = vpop.trf.xlu0 }
 0x8ba   : > { %v8442_v21 = vcombine.low %v8425_v61, %v8433_v14  ;;  %v8482_v62 = vrot.slane %v8475_v6, %v16276_v36 }
 0x8bb   : > { %v7816_v48 = vpop.trf.xlu1 }
 0x8bc   : > { %v8449_v63 = vrot.slane %v8442_v21, %v13571_v46  ;;  %v8491_v26 = vcombine.low %v8474_v10, %v8482_v62 }
 0x8bd   : > { %v7832_v28 = vpop.trf.xlu0 }
 0x8be   : > { %v15588_v52 = vcombine.low %v8441_v30, %v8449_v63  ;;  %v8498_v34 = vrot.slane %v8491_v26, %v13571_v46 }
 0x8bf   : > { %v7848_v8 = vpop.trf.xlu1 }
 0x8c0   : > { %v8705_v40 = vshrl.u32 %v15588_v52, 16  ;;  %v15592_v57 = vcombine.low %v8490_v44, %v8498_v34 }
 0x8c1   : > { %v7864_v54 = vpop.trf.xlu0 }
 0x8c2   : > { %v8704_v5 = vpack.i.b16 %v15592_v57, %v15588_v52  ;;  %v8706_v53 = vshrl.u32 %v15592_v57, 16  ;;  %v8500_v51 = vcombine.low %v7800_v42, %v7864_v54 }
 0x8c3   : > { %v7880_v55 = vpop.trf.xlu1 }
 0x8c4   : > { %v15597_v16 = vpack.i.b16 %v8706_v53, %v8705_v40  ;;  %v8549_v12 = vcombine.low %v7816_v48, %v7880_v55  ;;  %v8507_v38 = vrot.slane %v8500_v51, %v16276_v36 }
 0x8c5   : > { %8208 = vxpose.xlu0.c.b16.start.end [1/1] (short) (narrow) %v16365_v24, 16  ;;  %v7896_v13 = vpop.trf.xlu0 }
 0x8c6   : > { %v8508_v58 = vcombine.low %v7832_v28, %v7896_v13  ;;  %v8556_v59 = vrot.slane %v8549_v12, %v16276_v36 }
 0x8c7   : > { %8224 = vxpose.xlu1.c.b16.start.end [1/1] (short) (narrow) %v15450_v7, 16  ;;  %v7912_v17 = vpop.trf.xlu1 }
 0x8c8   : > { %v8515_v27 = vrot.slane %v8508_v58, %v16276_v36  ;;  %v8557_v11 = vcombine.low %v7848_v8, %v7912_v17 }
 0x8c9   : > { %v7928_v37 = vpop.trf.xlu0 }
 0x8ca   : > { %v8532_v20 = vcombine.low %v8507_v38, %v8515_v27  ;;  %v8564_v31 = vrot.slane %v8557_v11, %v16276_v36 }
 0x8cb   : > { %v7944_v18 = vpop.trf.xlu1 }
 0x8cc   : > { %v8581_v32 = vcombine.low %v8556_v59, %v8564_v31  ;;  %v8539_v9 = vrot.slane %v8532_v20, %v13571_v46 }
 0x8cd   : > { %v7960_v15 = vpop.trf.xlu0 }
 0x8ce   : > { %v8588_v10 = vrot.slane %v8581_v32, %v13571_v46 }
 0x8cf   : > { %v7976_v29 = vpop.trf.xlu1 }
 0x8d1   : > { %v7992_v45 = vpop.trf.xlu0 }
 0x8d2   : > { %v8516_v56 = vcombine.low %v7928_v37, %v7992_v45 }
 0x8d3   : > { %v8008_v4 = vpop.trf.xlu1 }
 0x8d4   : > { %v8565_v19 = vcombine.low %v7944_v18, %v8008_v4  ;;  %v8523_v7 = vrot.slane %v8516_v56, %v16276_v36 }
 0x8d5   : > { %v8024_v23 = vpop.trf.xlu0 }
 0x8d6   : > { %v8524_v35 = vcombine.low %v7960_v15, %v8024_v23  ;;  %v8572_v25 = vrot.slane %v8565_v19, %v16276_v36 }
 0x8d7   : > { %v8040_v2 = vpop.trf.xlu1 }
 0x8d8   : > { %v8531_v39 = vrot.slane %v8524_v35, %v16276_v36  ;;  %v8573_v41 = vcombine.low %v7976_v29, %v8040_v2 }
 0x8d9   : > { %v8056_v43 = vpop.trf.xlu0 }
 0x8da   : > { %v8540_v61 = vcombine.low %v8523_v7, %v8531_v39  ;;  %v8580_v33 = vrot.slane %v8573_v41, %v16276_v36 }
 0x8db   : > { %v8072_v1 = vpop.trf.xlu1 }
 0x8dc   : > { %v8547_v14 = vrot.slane %v8540_v61, %v13571_v46  ;;  %v8589_v6 = vcombine.low %v8572_v25, %v8580_v33  ;;  %v16367_v25 = vld [vmem:[#allocation82_spill] sm:$0xff] }
 0x8dd   : > { %v8088_v42 = vpop.trf.xlu0 }
 0x8de   : > { %v15614_v30 = vcombine.low %v8539_v9, %v8547_v14  ;;  %v8596_v21 = vrot.slane %v8589_v6, %v13571_v46 }
 0x8df   : > { %v8104_v62 = vpop.trf.xlu1 }
 0x8e0   : > { %v15617_v48 = vcombine.low %v8588_v10, %v8596_v21  ;;  %v8711_v44 = vshrl.u32 %v15614_v30, 16 }
 0x8e1   : > { %v8120_v63 = vpop.trf.xlu0 }
 0x8e2   : > { %v8598_v26 = vcombine.low %v8056_v43, %v8120_v63  ;;  %v8710_v28 = vpack.i.b16 %v15617_v48, %v15614_v30  ;;  %v8712_v34 = vshrl.u32 %v15617_v48, 16 }
 0x8e3   : > { %v8136_v8 = vpop.trf.xlu1 }
 0x8e4   : > { %v8647_v40 = vcombine.low %v8072_v1, %v8136_v8  ;;  %v15623_v54 = vpack.i.b16 %v8712_v34, %v8711_v44  ;;  %v15626_v51 = vrot.slane %v8598_v26, %v16276_v36 }
 0x8e5   : > { %v8152_v53 = vpop.trf.xlu0 }
 0x8e6   : > { %v8606_v55 = vcombine.low %v8088_v42, %v8152_v53  ;;  %v15629_v24 = vrot.slane %v8647_v40, %v16276_v36 }
 0x8e7   : > { %v8168_v12 = vpop.trf.xlu1 }
 0x8e8   : > { %v15632_v13 = vrot.slane %v8606_v55, %v16276_v36  ;;  %v8655_v38 = vcombine.low %v8104_v62, %v8168_v12 }
 0x8e9   : > { %v8184_v27 = vpop.trf.xlu0 }
 0x8ea   : > { %v8630_v58 = vcombine.low %v15626_v51, %v15632_v13  ;;  %v15637_v17 = vrot.slane %v8655_v38, %v16276_v36 }
 0x8eb   : > { %v15641_v11 = vpop.trf.xlu1 }
 0x8ec   : > { %v8679_v59 = vcombine.low %v15629_v24, %v15637_v17 }
 0x91d   : > { %v5620_v37 = vpop.xlane.xlu0 %5619 }
 0x91e   : > { %v5630_v20 = vsub.f32 %v15544_v3, %v5620_v37 }
 0x91f   : > { %v5623_v31 = vpop.xlane.xlu1 %5622 }
 0x920   : > { %v5634_v18 = vmul.f32 1.442695, %v5630_v20  ;;  %v5631_v32 = vsub.f32 %v15547_v50, %v5623_v31  ;;  %v16366_v50 = vld [vmem:[#allocation53_spill] sm:$0xff]  ;;  %v8686_v31 = vrot.slane %v8679_v59, %v13571_v46 }
 0x921   : > { %v5629_v23 = vpop.xlane.xlu0 %5628  ;;  %v16368_v39 = vpack.i.b16 %v16366_v50, %v16367_v25 }
 0x922   : > { %11968 = vpow2.f32 %v5634_v18  ;;  %v5636_v15 = vmul.f32 1.442695, %v5631_v32  ;;  %v5633_v3 = vsub.f32 %v15552_v0, %v5629_v23  ;;  %v16370_v0 = vld [vmem:[#allocation57_spill] sm:$0xff] }
 0x923   : > { %v5626_v19 = vpop.xlane.xlu1 %5625 }
 0x924   : > { %11970 = vpow2.f32 %v5636_v15  ;;  %v5632_v7 = vsub.f32 %v15558_v22, %v5626_v19  ;;  %v5640_v2 = vmul.f32 1.442695, %v5633_v3  ;;  %v16369_v22 = vld [vmem:[#allocation56_spill] sm:$0xff] }
 0x925   : > { %v16371_v33 = vpack.i.b16 %v16369_v22, %v16370_v0  ;;  %v11921_v22 = vld [vmem:[%s13452_s28 + $0x30] sm:$0xff]   ;;  %v16372_v0 = vmov 0.0  }
 0x926   : > { %v5638_v35 = vmul.f32 1.442695, %v5632_v7 }
 0x927   : > { %v8216_v1 = vpop.trf.xlu0 }
 0x928   : > { %11972 = vpow2.f32 %v5638_v35 }
 0x929   : > { %11974 = vpow2.f32 %v5640_v2  ;;  %v8232_v10 = vpop.trf.xlu1 }
 0x92f   : > { %v11969_v29 = vpop.eup %11968 }
 0x930   : > { %v5642_v45 = vsel %vm5617_vm8, %v11969_v29, 0.0 }
 0x931   : > { %v11971_v56 = vpop.eup %11970  ;;  %5643 = vadd.xlane.f32.xlu0 %v5642_v45 }
 0x932   : > { %v5645_v4 = vsel %vm5617_vm8, %v11971_v56, 0.0 }
 0x933   : > { %5646 = vadd.xlane.f32.xlu1 %v5645_v4 }
 0x935   : > { %v11973_v41 = vpop.eup %11972 }
 0x936   : > { %v11975_v43 = vpop.eup %11974  ;;  %v5648_v9 = vsel %vm5617_vm8, %v11973_v41, 0.0 }
 0x937   : > { %v5651_v61 = vsel %vm5617_vm8, %v11975_v43, 0.0 }
 0x95e   : > { %8240 = vxpose.xlu0.c.b16.start.end [1/1] (short) (narrow) %v16368_v39, 16 }
 0x960   : > { %8256 = vxpose.xlu1.c.b16.start.end [1/1] (short) (narrow) %v15455_v49, 16 }
 0x96b   : > { %5649 = vadd.xlane.f32.xlu0 %v5648_v9 }
 0x96d   : > { %5652 = vadd.xlane.f32.xlu1 %v5651_v61  ;;  %v11920_v61 = vld [vmem:[%s13452_s28 + $0x38] sm:$0xff]  }
 0x96e   : > { %11650 = vmatpush3.bf16.msra.mxu0 %v11920_v61 }
 0x96f   : > { %11651 = vmatprep.subr.bf16.mxu0 %v16372_v0 }
 0x972   : > { %11652 = vmatpush3.bf16.msra.mxu0 %v11921_v22 }
 0x973   : > { %11653 = vmatprep.subr.bf16.mxu0 %v16372_v0 }
 0x998   : > { %8272 = vxpose.xlu0.c.b16.start.end [1/1] (short) (narrow) %v16371_v33, 16  ;;  %v11922_v33 = vld [vmem:[%s13452_s28 + $0x28] sm:$0xff]  }
 0x999   : > { %11654 = vmatpush3.bf16.msra.mxu0 %v11922_v33 }
 0x99a   : > { %8288 = vxpose.xlu1.c.b16.start.end [1/1] (short) (narrow) %v15457_v60, 16  ;;  %11655 = vmatprep.subr.bf16.mxu0 %v16372_v0 }
 0x9ba   : > { %v5644_v14 = vpop.xlane.xlu0 %5643 }
 0x9bb   : > { %11976 = vrcp.f32 %v5644_v14  ;;  %v11925_v14 = vld [vmem:[%s13452_s28 + $0x10] sm:$0xff]  }
 0x9bc   : > { %v5647_v6 = vpop.xlane.xlu1 %5646 }
 0x9bd   : > { %11978 = vrcp.f32 %v5647_v6  ;;  %v11926_v6 = vld [vmem:[%s13452_s28 + $0x8] sm:$0xff]  }
 0x9c0   : > { %v8248_v60 = vpop.trf.xlu0 }
 0x9c1   : > { %v8614_v40 = vcombine.low %v8184_v27, %v8248_v60  ;;  %v8637_v27 = vrot.slane %v8630_v58, %v13571_v46 }
 0x9c2   : > { %v8264_v26 = vpop.trf.xlu1 }
 0x9c3   : > { %v8663_v55 = vcombine.low %v15641_v11, %v8264_v26  ;;  %v8621_v52 = vrot.slane %v8614_v40, %v16276_v36 }
 0x9c5   : > { %v8670_v30 = vrot.slane %v8663_v55, %v16276_v36 }
 0x9c8   : > { %v11977_v49 = vpop.eup %11976 }
 0x9c9   : > { %v5655_v21 = vmul.f32 %v11977_v49, %v11969_v29 }
 0x9ca   : > { %v11979_v42 = vpop.eup %11978 }
 0x9cb   : > { %v5657_v62 = vmul.f32 %v11979_v42, %v11971_v56 }
 0x9cd   : > { %v5662_v44 = vpack.c.bf16 %v5657_v62, %v5655_v21 }
 0x9cf   : > { %11669 = vmatprep.subr.msk.bf16.mxu1 %vm5617_vm8, %v5662_v44  ;;  %v8733_v63 = vsel %vm5617_vm8, %v5662_v44, 0 }
 0x9d0   : > { %11630 = vmatpush3.bf16.xpose.msra.mxu1 %v8733_v63 }
 0x9d7   : > { %11632 = vmatmul.mubr.msk.bf16.vlgmr.msra.gmra.mxu1 %vm5617_vm8, %v8704_v5 }
 0x9d8   : > { %11635 = vmatprep.mubr.msk.bf16.mxu1 %vm5617_vm8, %v8710_v28 }
 0x9f4   : > { %v5650_v34 = vpop.xlane.xlu0 %5649 }
 0x9f5   : > { %11980 = vrcp.f32 %v5650_v34 }
 0x9f6   : > { %v5653_v8 = vpop.xlane.xlu1 %5652 }
 0x9f7   : > { %11982 = vrcp.f32 %v5653_v8 }
 0x9fa   : > { %v8280_v53 = vpop.trf.xlu0 }
 0x9fb   : > { %v8622_v12 = vcombine.low %v8216_v1, %v8280_v53  ;;  %v11923_v1 = vld [vmem:[%s13452_s28 + $0x20] sm:$0xff]  }
 0x9fc   : > { %v8296_v38 = vpop.trf.xlu1  ;;  %11656 = vmatpush3.bf16.msra.mxu0 %v11923_v1 }
 0x9fd   : > { %v8629_v57 = vrot.slane %v8622_v12, %v16276_v36  ;;  %v8671_v5 = vcombine.low %v8232_v10, %v8296_v38  ;;  %v11924_v10 = vld [vmem:[%s13452_s28 + $0x18] sm:$0xff]   ;;  %11657 = vmatprep.subr.bf16.mxu0 %v16372_v0 }
 0x9ff   : > { %v8638_v48 = vcombine.low %v8621_v52, %v8629_v57  ;;  %v8678_v28 = vrot.slane %v8671_v5, %v16276_v36 }
 0xa00   : > { %11658 = vmatpush3.bf16.msra.mxu0 %v11924_v10 }
 0xa01   : > { %v8645_v37 = vrot.slane %v8638_v48, %v13571_v46  ;;  %v8687_v11 = vcombine.low %v8670_v30, %v8678_v28  ;;  %11659 = vmatprep.subr.bf16.mxu0 %v16372_v0 }
 0xa02   : > { %v11981_v20 = vpop.eup %11980 }
 0xa03   : > { %v8646_v18 = vcombine.low %v8637_v27, %v8645_v37  ;;  %v8694_v32 = vrot.slane %v8687_v11, %v13571_v46  ;;  %v5659_v45 = vmul.f32 %v11981_v20, %v11973_v41 }
 0xa04   : > { %v11983_v15 = vpop.eup %11982  ;;  %11660 = vmatpush3.bf16.msra.mxu0 %v11925_v14 }
 0xa05   : > { %v8695_v29 = vcombine.low %v8686_v31, %v8694_v32  ;;  %v5661_v56 = vmul.f32 %v11983_v15, %v11975_v43  ;;  %v8717_v51 = vshrl.u32 %v8646_v18, 16  ;;  %11661 = vmatprep.subr.bf16.mxu0 %v16372_v0 }
 0xa07   : > { %v8716_v4 = vpack.i.b16 %v8695_v29, %v8646_v18  ;;  %v5663_v19 = vpack.c.bf16 %v5661_v56, %v5659_v45  ;;  %v8718_v13 = vshrl.u32 %v8695_v29, 16 }
 0xa08   : > { %11662 = vmatpush3.bf16.msra.mxu0 %v11926_v6 }
 0xa09   : > { %11636 = vmatmul.mubr.msk.bf16.gmra.mxu1 %vm5617_vm8, %v8716_v4  ;;  %11670 = vmatprep.subr.msk.bf16.mxu1 %vm5617_vm8, %v5663_v19  ;;  %v8813_v58 = vsel %vm5617_vm8, %v5663_v19, 0  ;;  %v8719_v23 = vpack.i.b16 %v8718_v13, %v8717_v51 }
 0xa0a   : > { %11640 = vmatpush3.bf16.xpose.msra.mxu1 %v8813_v58  ;;  %11641 = vmatprep.mubr.msk.bf16.mxu1 %vm5617_vm8, %v15575_v47 }
 0xa0b   : > { %11663 = vmatprep.subr.bf16.mxu0 %v16372_v0 }
 0xa11   : > { %11642 = vmatmul.mubr.msk.bf16.vlgmr.msra.gmra.mxu1 %vm5617_vm8, %v15597_v16 }
 0xa12   : > { %11645 = vmatprep.mubr.msk.bf16.mxu1 %vm5617_vm8, %v15623_v54 }
 0xa19   : > { %11646 = vmatmul.mubr.msk.bf16.gmra.mxu1 %vm5617_vm8, %v8719_v23 }
 0xa97   : > { %v11633_v24 = vpop.f32.mrf.mxu1 }
 0xa99   : > { %v8769_v17 = vpop.f32.mrf.mxu1 }
 0xa9a   : > { %8880 = vxpose.xlu0.b32.start [1/8] (short) (narrow) %v8769_v17, 16 }
 0xa9b   : > { %v11634_v59 = vpop.f32.mrf.mxu1 }
 0xa9d   : > { %v8772_v7 = vpop.f32.mrf.mxu1 }
 0xa9e   : > { %8881 = vxpose.xlu0.b32.cont [2/8] (short) (narrow) %v8772_v7, 16 }
 0xaa2   : > { %8882 = vxpose.xlu0.b32.cont [3/8] (short) (narrow) %v11633_v24, 16 }
 0xaa6   : > { %8883 = vxpose.xlu0.b32.cont [4/8] (short) (narrow) %v11634_v59, 16 }
 0xac9   : > { %v11637_v3 = vpop.f32.mrf.mxu1 }
 0xacb   : > { %v8785_v35 = vpop.f32.mrf.mxu1 }
 0xacc   : > { %8884 = vxpose.xlu0.b32.cont [5/8] (short) (narrow) %v8785_v35, 16 }
 0xacd   : > { %v11638_v47 = vpop.f32.mrf.mxu1 }
 0xacf   : > { %v8788_v2 = vpop.f32.mrf.mxu1 }
 0xad0   : > { %8885 = vxpose.xlu0.b32.cont [6/8] (short) (narrow) %v8788_v2, 16 }
 0xad1   : > { %v11643_v16 = vpop.f32.mrf.mxu1 }
 0xad3   : > { %v8849_v50 = vpop.f32.mrf.mxu1 }
 0xad4   : > { %8886 = vxpose.xlu0.b32.cont [7/8] (short) (narrow) %v11637_v3, 16  ;;  %8912 = vxpose.xlu1.b32.start [1/8] (short) (narrow) %v8849_v50, 16 }
 0xad5   : > { %v11644_v54 = vpop.f32.mrf.mxu1 }
 0xad7   : > { %v8852_v25 = vpop.f32.mrf.mxu1 }
 0xad8   : > { %8887 = vxpose.xlu0.b32.end [8/8] (short) (narrow) %v11638_v47, 16  ;;  %8913 = vxpose.xlu1.b32.cont [2/8] (short) (narrow) %v8852_v25, 16 }
 0xad9   : > { %v11647_v39 = vpop.f32.mrf.mxu1 }
 0xadb   : > { %v8865_v41 = vpop.f32.mrf.mxu1 }
 0xadc   : > { %8914 = vxpose.xlu1.b32.cont [3/8] (short) (narrow) %v11643_v16, 16 }
 0xadd   : > { %v11648_v43 = vpop.f32.mrf.mxu1 }
 0xadf   : > { %v8868_v9 = vpop.f32.mrf.mxu1 }
 0xae0   : > { %8915 = vxpose.xlu1.b32.cont [4/8] (short) (narrow) %v11644_v54, 16 }
 0xae4   : > { %8916 = vxpose.xlu1.b32.cont [5/8] (short) (narrow) %v8865_v41, 16 }
 0xae8   : > { %8917 = vxpose.xlu1.b32.cont [6/8] (short) (narrow) %v8868_v9, 16  ;;  %v11927_v9 = vld [vmem:[%s13452_s28] sm:$0xff]   ;;  %s16379_s28 = scalar_lea.vmem [#allocation26], %s13437_s4 }
 0xae9   : > { %11664 = vmatpush3.bf16.msra.mxu0 %v11927_v9 }
 0xaec   : > { %8918 = vxpose.xlu1.b32.cont [7/8] (short) (narrow) %v11647_v39, 16 }
 0xaf0   : > { %8919 = vxpose.xlu1.b32.end [8/8] (short) (narrow) %v11648_v43, 16 }
 0xb38   : > { %v8896_v49 = vpop.trf.xlu0 }
 0xb39   : > { %v8944_v42 = vcombine.high %v8896_v49, %v16372_v0  ;;  %v8951_v21 = vrot.slane %v8896_v49, %v16276_v36 }
 0xb3b   : > { %v8958_v63 = vrot.slane %v8944_v42, %v16276_v36 }
 0xb3c   : > { %v8897_v62 = vpop.trf.xlu0 }
 0xb3d   : > { %v9010_v34 = vcombine.high %v8897_v62, %v16372_v0  ;;  %v9017_v55 = vrot.slane %v8897_v62, %v16276_v36 }
 0xb3f   : > { %v9024_v30 = vrot.slane %v9010_v34, %v16276_v36  ;;  %v11992_v34 = vld [vmem:[#allocation2] sm:$0xff] }
 0xb50   : > { %v8928_v44 = vpop.trf.xlu1 }
 0xb51   : > { %v8959_v60 = vcombine.high %v8928_v44, %v16372_v0  ;;  %v8966_v26 = vrot.slane %v8928_v44, %v16276_v36 }
 0xb53   : > { %v8973_v8 = vrot.slane %v8959_v60, %v16276_v36  ;;  %v8974_v40 = vcombine.low %v8951_v21, %v8966_v26  ;;  %v8975_v53 = vcombine.high %v8951_v21, %v8966_v26 }
 0xb54   : > { %v8929_v12 = vpop.trf.xlu1 }
 0xb55   : > { %v8982_v38 = vrot.slane %v8974_v40, %v13571_v46  ;;  %v8989_v52 = vrot.slane %v8975_v53, %v13571_v46  ;;  %v8990_v57 = vcombine.low %v8958_v63, %v8973_v8  ;;  %v8991_v5 = vcombine.high %v8958_v63, %v8973_v8  ;;  %v11224_v63 = vld [vmem:[%s16373_s6] ss:$0 sm:$0xff] }
 0xb56   : > { %v9025_v48 = vcombine.high %v8929_v12, %v16372_v0  ;;  %v9032_v28 = vrot.slane %v8929_v12, %v16276_v36  ;;  %v11993_v12 = vld [vmem:[#allocation2 + $0x8] sm:$0xff] }
 0xb57   : > { %v8998_v27 = vrot.slane %v8990_v57, %v13571_v46  ;;  %v9005_v37 = vrot.slane %v8991_v5, %v13571_v46  ;;  %v9076_v11 = vcombine.low %v8982_v38, %v8989_v52  ;;  %v11220_v20 = vcombine.high %v8982_v38, %v8989_v52  ;;  %v11928_v52 = vld [vmem:[%s13457_s29 + $0x70] ss:$8 sps:$4 sm:$0xff]   ;;  %v11930_v57 = vld [vmem:[%s13457_s29 + $0x74] ss:$8 sps:$4 sm:$0xff]  }
 0xb58   : > { %v9039_v31 = vrot.slane %v9025_v48, %v16276_v36  ;;  %v9040_v18 = vcombine.low %v9017_v55, %v9032_v28  ;;  %v9041_v32 = vcombine.high %v9017_v55, %v9032_v28  ;;  %9451 = vmatprep.subr.bf16.mxu1 %v11930_v57 }
 0xb59   : > { %v9083_v15 = vrot.slane %v9076_v11, %v16276_v36  ;;  %v9091_v29 = vrot.slane %v11220_v20, %v16276_v36  ;;  %v9092_v45 = vcombine.low %v8998_v27, %v9005_v37  ;;  %v11221_v56 = vcombine.high %v8998_v27, %v9005_v37  ;;  %9452 = vmatpush1.bf16.msra.mxu1 %v11928_v52 }
 0xb5a   : > { %v9048_v4 = vrot.slane %v9040_v18, %v13571_v46  ;;  %v9055_v19 = vrot.slane %v9041_v32, %v13571_v46  ;;  %v9056_v51 = vcombine.low %v9024_v30, %v9039_v31  ;;  %v9057_v13 = vcombine.high %v9024_v30, %v9039_v31  ;;  %v11931_v31 = vld [vmem:[%s13457_s29 + $0x60] ss:$8 sps:$4 sm:$0xff]   ;;  %v11933_v18 = vld [vmem:[%s13457_s29 + $0x64] ss:$8 sps:$4 sm:$0xff]   ;;  %v11934_v32 = vld [vmem:[%s13457_s29 + $0x50] ss:$8 sps:$4 sm:$0xff]  }
 0xb5b   : > { %v9099_v58 = vrot.slane %v9092_v45, %v16276_v36  ;;  %v9107_v23 = vrot.slane %v11221_v56, %v16276_v36  ;;  %v9108_v24 = vcombine.low %v9083_v15, %v9091_v29  ;;  %9453 = vmatprep.subr.bf16.mxu1 %v11933_v18  ;;  %v11936_v15 = vld [vmem:[%s13457_s29 + $0x54] ss:$8 sps:$4 sm:$0xff]   ;;  %v11939_v29 = vld [vmem:[%s13457_s29 + $0x44] ss:$8 sps:$4 sm:$0xff]   ;;  %v11937_v45 = vld [vmem:[%s13457_s29 + $0x40] ss:$8 sps:$4 sm:$0xff]  }
 0xb5c   : > { %v9064_v17 = vrot.slane %v9056_v51, %v13571_v46  ;;  %v9071_v59 = vrot.slane %v9057_v13, %v13571_v46  ;;  %v9126_v7 = vcombine.low %v9048_v4, %v9055_v19  ;;  %v11222_v3 = vcombine.high %v9048_v4, %v9055_v19  ;;  %v11942_v56 = vld [vmem:[%s13457_s29 + $0x34] ss:$8 sps:$4 sm:$0xff]   ;;  %v11940_v19 = vld [vmem:[%s13457_s29 + $0x30] ss:$8 sps:$4 sm:$0xff]   ;;  %v11945_v51 = vld [vmem:[%s13457_s29 + $0x24] ss:$8 sps:$4 sm:$0xff]  }
 0xb5d   : > { %v9116_v35 = vcombine.low %v9099_v58, %v9107_v23  ;;  %v9115_v54 = vrot.slane %v9108_v24, %v13571_v46  ;;  %9454 = vmatpush1.bf16.msra.mxu1 %v11931_v31  ;;  %v12876_v4 = vmov 0   ;;  %v11952_v13 = vld [vmem:[%s13461_s18 + $0x78] sm:$0xff]   ;;  %v11954_v23 = vld [vmem:[%s13461_s18 + $0x70] sm:$0xff]  }
 0xb5e   : > { %v9133_v47 = vrot.slane %v9126_v7, %v16276_v36  ;;  %v9141_v2 = vrot.slane %v11222_v3, %v16276_v36  ;;  %v9142_v16 = vcombine.low %v9064_v17, %v9071_v59  ;;  %v11223_v50 = vcombine.high %v9064_v17, %v9071_v59  ;;  %9455 = vmatprep.subr.bf16.mxu1 %v11936_v15  ;;  %v11953_v58 = vld [vmem:[%s13461_s18 + $0x38] sm:$0xff]   ;;  %v11955_v17 = vld [vmem:[%s13461_s18 + $0x30] sm:$0xff]   ;;  %v11956_v7 = vld [vmem:[%s13461_s18 + $0x68] sm:$0xff]  }
 0xb5f   : > { %v9123_v25 = vrot.slane %v9116_v35, %v13571_v46  ;;  %9483 = vmatprep.mubr.bf16.mxu1 %v12876_v4  ;;  %11463 = vmatprep.subr.bf16.mxu0 %v11952_v13  ;;  %v11943_v24 = vld [vmem:[%s13457_s29 + $0x20] ss:$8 sps:$4 sm:$0xff]   ;;  %v11948_v59 = vld [vmem:[%s13457_s29 + $0x14] ss:$8 sps:$4 sm:$0xff]   ;;  %v11946_v3 = vld [vmem:[%s13457_s29 + $0x10] ss:$8 sps:$4 sm:$0xff]  }
 0xb60   : > { %v9149_v39 = vrot.slane %v9142_v16, %v16276_v36  ;;  %v9157_v41 = vrot.slane %v11223_v50, %v16276_v36  ;;  %v9158_v43 = vcombine.low %v9133_v47, %v9141_v2  ;;  %v11957_v35 = vld [vmem:[%s13461_s18 + $0x28] sm:$0xff]   ;;  %v11958_v2 = vld [vmem:[%s13461_s18 + $0x60] sm:$0xff]  }
 0xb61   : > { %v9124_v61 = vcombine.low %v9115_v54, %v9123_v25  ;;  %v9125_v1 = vcombine.high %v9115_v54, %v9123_v25  ;;  %9456 = vmatpush1.bf16.msra.mxu1 %v11934_v32  ;;  %v11951_v47 = vld [vmem:[%s13457_s29 + $0x4] ss:$8 sps:$4 sm:$0xff]   ;;  %v11949_v16 = vld [vmem:[%s13457_s29] ss:$8 sps:$4 sm:$0xff]   ;;  %s16381_s29 = sld [smem:[#allocation102_spill]] (!%p11270_p2) }
 0xb62   : > { %v9166_v22 = vcombine.low %v9149_v39, %v9157_v41  ;;  %v9165_v0 = vrot.slane %v9158_v43, %v13571_v46  ;;  %9457 = vmatprep.subr.bf16.mxu1 %v11939_v29  ;;  %v11959_v50 = vld [vmem:[%s13461_s18 + $0x20] sm:$0xff]   ;;  %v11960_v54 = vld [vmem:[%s13461_s18 + $0x58] sm:$0xff]  }
 0xb63   : > { %v11961_v25 = vld [vmem:[%s13461_s18 + $0x18] sm:$0xff]  }
 0xb64   : > { %v9173_v33 = vrot.slane %v9166_v22, %v13571_v46 }
 0xb65   : > { %9458 = vmatpush1.bf16.msra.mxu1 %v11937_v45  ;;  %v11251_v45 = vld [vmem:[%s16377_s21] ss:$0 sm:$0xff] }
 0xb66   : > { %v9175_v10 = vcombine.high %v9165_v0, %v9173_v33  ;;  %v9174_v14 = vcombine.low %v9165_v0, %v9173_v33  ;;  %9459 = vmatprep.subr.bf16.mxu1 %v11942_v56 }
 0xb68   : > { %v11891_v6 = vpack.i.bf16 %v9175_v10, %v9125_v1  ;;  %v11233_v1 = vld [vmem:[%s16374_s17] ss:$0 sm:$0xff] }
 0xb69   : > { %9460 = vmatpush1.bf16.msra.mxu1 %v11940_v19 }
 0xb6a   : > { %11892 = vrot.lane.b32.xlu0 %v11891_v6, %s12873_s13  ;;  %9461 = vmatprep.subr.bf16.mxu1 %v11945_v51 }
 0xb6d   : > { %9462 = vmatpush1.bf16.msra.mxu1 %v11943_v24 }
 0xb6e   : > { %9463 = vmatprep.subr.bf16.mxu1 %v11948_v59 }
 0xb71   : > { %9464 = vmatpush1.bf16.msra.mxu1 %v11946_v3 }
 0xb72   : > { %9465 = vmatprep.subr.bf16.mxu1 %v11951_v47 }
 0xb75   : > { %9466 = vmatpush1.bf16.msra.mxu1 %v11949_v16 }
 0xbdc   : > { %v11893_v49 = vpop.permute.xlu0 %11892 }
 0xbdd   : > { %v11895_v42 = vunpack.i.h.bf16 %v11893_v49  ;;  %v11894_v21 = vunpack.i.l.bf16 %v11893_v49  ;;  %v11234_v49 = vld [vmem:[%s16375_s16] ss:$0 sm:$0xff] }
 0xbdf   : > { %v9184_v36 = vsel %vm5514_vm7, %v9124_v61, %v11894_v21  ;;  %v9185_v62 = vsel %vm5514_vm7, %v9174_v14, %v11895_v42 }
 0xbe0   : > { %v9186_v44 = vpack.c.bf16 %v9185_v62, %v9184_v36 }
 0xbe2   : > { %11666 = vmatmul.mubr.bf16.vlgmr.msra.gmra.mxu0 %v9186_v44  ;;  %v11962_v44 = vld [vmem:[%s13461_s18 + $0x50] sm:$0xff]  }
 0xbe3   : > { %11464 = vmatpush3.bf16.msra.mxu0 %v11953_v58 }
 0xbe4   : > { %11465 = vmatprep.subr.bf16.mxu0 %v11954_v23 }
 0xbe7   : > { %11466 = vmatpush3.bf16.msra.mxu0 %v11955_v17 }
 0xbe8   : > { %11467 = vmatprep.subr.bf16.mxu0 %v11956_v7 }
 0xbeb   : > { %11468 = vmatpush3.bf16.msra.mxu0 %v11957_v35 }
 0xbec   : > { %11469 = vmatprep.subr.bf16.mxu0 %v11958_v2 }
 0xbef   : > { %11470 = vmatpush3.bf16.msra.mxu0 %v11959_v50 }
 0xbf0   : > { %11471 = vmatprep.subr.bf16.mxu0 %v11960_v54 }
 0xbf3   : > { %11472 = vmatpush3.bf16.msra.mxu0 %v11961_v25 }
 0xbf4   : > { %11473 = vmatprep.subr.bf16.mxu0 %v11962_v44 }
 0xca2   : > { %v9292_v46 = vpop.f32.mrf.mxu0 }
 0xca3   : > { %v9293_v60 = vadd.f32 %v11224_v63, %v9292_v46  ;;  %v11964_v46 = vld [vmem:[%s13461_s18 + $0x48] sm:$0xff]  }
 0xca4   : > { %v11667_v26 = vpop.f32.mrf.mxu0 }
 0xca5   : > { %v9299_v8 = vadd.f32 %v11992_v34, %v9293_v60  ;;  %v11965_v60 = vld [vmem:[%s13461_s18 + $0x8] sm:$0xff]   ;;  %v11966_v26 = vld [vmem:[%s13461_s18 + $0x40] sm:$0xff]  }
 0xca6   : > { %v9295_v40 = vpop.f32.mrf.mxu0  ;;  %v11967_v34 = vld [vmem:[%s13461_s18] sm:$0xff]  }
 0xca7   : > { %v9296_v53 = vadd.f32 %v11224_v63, %v9295_v40  ;;  %9303 = vadd.xlane.f32.xlu1 %v9299_v8  ;;  %v11963_v63 = vld [vmem:[%s13461_s18 + $0x10] sm:$0xff]  }
 0xca8   : > { %v11668_v55 = vpop.f32.mrf.mxu0  ;;  %11474 = vmatpush3.bf16.msra.mxu0 %v11963_v63 }
 0xca9   : > { %v9300_v38 = vadd.f32 %v11993_v12, %v9296_v53  ;;  %11475 = vmatprep.subr.bf16.mxu0 %v11964_v46  ;;  %v9359_v55 = vld [vmem:[%s13459_s1] sm:$0x3]  ;;  %s16382_s1 = smov (!%p11270_p2), %s16381_s29 }
 0xcab   : > { %9305 = vadd.xlane.f32.xlu0 %v9300_v38 }
 0xcac   : > { %11476 = vmatpush3.bf16.msra.mxu0 %v11965_v60 }
 0xcad   : > { %11477 = vmatprep.subr.bf16.mxu0 %v11966_v26 }
 0xcb0   : > { %11478 = vmatpush3.bf16.msra.mxu0 %v11967_v34 }
 0xd30   : > { %v9304_v5 = vpop.xlane.xlu1 %9303 }
 0xd31   : > { %v9308_v30 = vmul.f32 0.0078125, %v9304_v5 }
 0xd33   : > { %v15748_v48 = vsub.f32 %v9299_v8, %v9308_v30  ;;  %v16376_v8 = vld [vmem:[#allocation54_spill] sm:$0xff] }
 0xd34   : > { %v9306_v28 = vpop.xlane.xlu0 %9305  ;;  %v9367_v40 = vsub.s32 1, %v16376_v8  ;;  %v9363_v53 = vsub.s32 0, %v16376_v8 }
 0xd35   : > { %v9309_v27 = vmul.f32 0.0078125, %v9306_v28  ;;  %v9312_v37 = vmul.f32 %v15748_v48, %v15748_v48 }
 0xd36   : > { %v9364_v52 = vrot.slane %v9359_v55, %v9363_v53 }
 0xd37   : > { %v15752_v11 = vsub.f32 %v9300_v38, %v9309_v27  ;;  %9314 = vadd.xlane.f32.xlu1 %v9312_v37  ;;  %v9368_v38 = vrot.slane %v9359_v55, %v9367_v40 }
 0xd39   : > { %v9313_v20 = vmul.f32 %v15752_v11, %v15752_v11 }
 0xd3b   : > { %9316 = vadd.xlane.f32.xlu1 %v9313_v20 }
 0xdc0   : > { %v9315_v39 = vpop.xlane.xlu1 %9314 }
 0xdc1   : > { %v9318_v41 = vmul.f32 0.0078125, %v9315_v39 }
 0xdc3   : > { %v9320_v43 = vadd.f32 1e-06, %v9318_v41 }
 0xdc4   : > { %v9317_v9 = vpop.xlane.xlu1 %9316 }
 0xdc5   : > { %11984 = vrsqrt.f32 %v9320_v43  ;;  %v9319_v61 = vmul.f32 0.0078125, %v9317_v9 }
 0xdc7   : > { %v9321_v22 = vadd.f32 1e-06, %v9319_v61 }
 0xdc9   : > { %11986 = vrsqrt.f32 %v9321_v22  ;;  %v11268_v22 = vld [vmem:[%s16378_s19] ss:$0 sm:$0xff] }
 0xdd2   : > { %v11985_v0 = vpop.eup %11984 }
 0xdd3   : > { %v9324_v33 = vmul.f32 %v11985_v0, %v15748_v48 }
 0xdd5   : > { %v9332_v6 = vmul.f32 %v11233_v1, %v9324_v33  ;;  %v11269_v33 = vld [vmem:[%s16379_s28] ss:$0 sm:$0xff] }
 0xdd6   : > { %v11987_v10 = vpop.eup %11986 }
 0xdd7   : > { %v9325_v14 = vmul.f32 %v11987_v10, %v15752_v11  ;;  %v9340_v21 = vadd.f32 %v11234_v49, %v9332_v6 }
 0xdd9   : > { %v9333_v42 = vmul.f32 %v11233_v1, %v9325_v14 }
 0xddb   : > { %v9341_v36 = vadd.f32 %v11234_v49, %v9333_v42 }
 0xddd   : > { %v9342_v62 = vpack.c.bf16 %v9341_v36, %v9340_v21 }
 0xddf   : > { %9484 = vmatmul.mubr.bf16.vlgmr.msra.gmra.mxu1 %v9342_v62 }
 0xe9f   : > { %v9485_v12 = vpop.f32.mrf.mxu1 }
 0xea0   : > { %v9486_v28 = vadd.f32 %v9485_v12, %v9364_v52 }
 0xea1   : > { %v9487_v57 = vpop.f32.mrf.mxu1 }
 0xea2   : > { %v9488_v30 = vadd.f32 %v9487_v57, %v9368_v38  ;;  %v9494_v18 = vmax.f32 %v9486_v28, 0.0 }
 0xea3   : > { %v9489_v5 = vpop.f32.mrf.mxu1 }
 0xea4   : > { %v9490_v48 = vadd.f32 %v9489_v5, %v9364_v52  ;;  %v9495_v20 = vmax.f32 %v9488_v30, 0.0 }
 0xea5   : > { %v9491_v27 = vpop.f32.mrf.mxu1 }
 0xea6   : > { %v9492_v37 = vadd.f32 %v9491_v27, %v9368_v38  ;;  %v9496_v11 = vmax.f32 %v9490_v48, 0.0 }
 0xea8   : > { %v9497_v31 = vmax.f32 %v9492_v37, 0.0  ;;  %v9498_v15 = vpack.c.bf16 %v9496_v11, %v9494_v18 }
 0xeaa   : > { %v9499_v32 = vpack.c.bf16 %v9497_v31, %v9495_v20 }
 0xeac   : > { %9667 = vmatprep.mubr.bf16.mxu0 %v9499_v32 }
 0xead   : > { %9668 = vmatmul.mubr.bf16.vlgmr.msra.gmra.mxu0 %v9498_v15 }
 0xf6d   : > { %v11479_v29 = vpop.f32.mrf.mxu0 }
 0xf6f   : > { %v11480_v56 = vpop.f32.mrf.mxu0 }
 0xf70   : > { %v11481_v4 = vadd.f32 %v11480_v56, %v11479_v29 }
 0xf71   : > { %v11482_v19 = vpop.f32.mrf.mxu0 }
 0xf72   : > { %v9670_v51 = vadd.f32 %v11481_v4, %v11251_v45 }
 0xf73   : > { %v11483_v13 = vpop.f32.mrf.mxu0 }
 0xf74   : > { %v11484_v58 = vadd.f32 %v11483_v13, %v11482_v19  ;;  %v9676_v23 = vadd.f32 %v9670_v51, %v9340_v21 }
 0xf76   : > { %v9673_v24 = vadd.f32 %v11484_v58, %v11251_v45  ;;  %9680 = vadd.xlane.f32.xlu1 %v9676_v23 }
 0xf78   : > { %v9677_v17 = vadd.f32 %v9673_v24, %v9341_v36 }
 0xf7a   : > { %9682 = vadd.xlane.f32.xlu1 %v9677_v17 }
 0xfff   : > { %v9681_v59 = vpop.xlane.xlu1 %9680 }
0x1000   : > { %v9684_v7 = vmul.f32 0.0078125, %v9681_v59 }
0x1002   : > { %v9686_v3 = vsub.f32 %v9676_v23, %v9684_v7 }
0x1003   : > { %v9683_v35 = vpop.xlane.xlu1 %9682 }
0x1004   : > { %v9685_v47 = vmul.f32 0.0078125, %v9683_v35  ;;  %v9688_v2 = vmul.f32 %v9686_v3, %v9686_v3 }
0x1006   : > { %v9687_v16 = vsub.f32 %v9677_v17, %v9685_v47  ;;  %9690 = vadd.xlane.f32.xlu1 %v9688_v2 }
0x1008   : > { %v9689_v50 = vmul.f32 %v9687_v16, %v9687_v16 }
0x100a   : > { %9692 = vadd.xlane.f32.xlu1 %v9689_v50 }
0x108f   : > { %v9691_v54 = vpop.xlane.xlu1 %9690 }
0x1090   : > { %v9694_v25 = vmul.f32 0.0078125, %v9691_v54 }
0x1092   : > { %v9696_v39 = vadd.f32 1e-06, %v9694_v25 }
0x1093   : > { %v9693_v41 = vpop.xlane.xlu1 %9692 }
0x1094   : > { %11988 = vrsqrt.f32 %v9696_v39  ;;  %v9695_v43 = vmul.f32 0.0078125, %v9693_v41 }
0x1096   : > { %v9697_v9 = vadd.f32 1e-06, %v9695_v43 }
0x1098   : > { %11990 = vrsqrt.f32 %v9697_v9 }
0x10a1   : > { %v11989_v61 = vpop.eup %11988 }
0x10a2   : > { %v9700_v0 = vmul.f32 %v11989_v61, %v9686_v3 }
0x10a4   : > { %v9708_v1 = vmul.f32 %v11268_v22, %v9700_v0 }
0x10a5   : > { %v11991_v10 = vpop.eup %11990 }
0x10a6   : > { %v15801_v14 = vadd.f32 %v11269_v33, %v9708_v1  ;;  %v9701_v6 = vmul.f32 %v11991_v10, %v9687_v16 }
0x10a8   : > { %9718 = vst [vmem:[#allocation2] sm:$0xff] %v15801_v14  ;;  %v9709_v49 = vmul.f32 %v11268_v22, %v9701_v6  ;;  %9723 = sbr.rel (%p11270_p2) target bundleno = 4910 (0x132e), region = 208 }
0x10aa   : > { %v15804_v42 = vadd.f32 %v11269_v33, %v9709_v49 }
0x10ac   : > { %9719 = vst [vmem:[#allocation2 + $0x8] sm:$0xff] %v15804_v42 }
0x10ad   : > { %v11994_v21 = vld [vmem:[%s16381_s29 + $0x74] ss:$8 sps:$4 sm:$0xff]   ;;  %v11996_v36 = vld [vmem:[%s16382_s1 + $0x70] ss:$8 sps:$4 sm:$0xff]   ;;  %v12877_v62 = vmov 0   ;;  %v9724_v29 = vpack.c.bf16 %v15804_v42, %v15801_v14 }
0x10ae   : > { %9853 = vmatprep.mubr.bf16.mxu0 %v12877_v62  ;;  %9821 = vmatprep.subr.bf16.mxu0 %v11994_v21  ;;  %v11997_v44 = vld [vmem:[%s16382_s1 + $0x64] ss:$8 sps:$4 sm:$0xff]   ;;  %v11999_v63 = vld [vmem:[%s16382_s1 + $0x60] ss:$8 sps:$4 sm:$0xff]   ;;  %v12000_v46 = vld [vmem:[%s16382_s1 + $0x54] ss:$8 sps:$4 sm:$0xff]  }
0x10af   : > { %9822 = vmatpush1.bf16.msra.mxu0 %v11996_v36  ;;  %v12002_v60 = vld [vmem:[%s16382_s1 + $0x50] ss:$8 sps:$4 sm:$0xff]   ;;  %v12003_v26 = vld [vmem:[%s16382_s1 + $0x44] ss:$8 sps:$4 sm:$0xff]   ;;  %v12005_v34 = vld [vmem:[%s16382_s1 + $0x40] ss:$8 sps:$4 sm:$0xff]  }
0x10b0   : > { %9823 = vmatprep.subr.bf16.mxu0 %v11997_v44  ;;  %v12018_v8 = vld [vmem:[#allocation27 + $0xe4] ss:$16 sps:$4 sm:$0xff]   ;;  %v12023_v53 = vld [vmem:[#allocation27 + $0xe0] ss:$16 sps:$4 sm:$0xff]   ;;  %v12022_v32 = vld [vmem:[#allocation27 + $0xec] ss:$16 sps:$4 sm:$0xff]  }
0x10b1   : > { %v12006_v40 = vld [vmem:[%s16382_s1 + $0x34] ss:$8 sps:$4 sm:$0xff]   ;;  %10250 = vmatprep.subr.bf16.mxu1 %v12018_v8  ;;  %v12008_v12 = vld [vmem:[%s16382_s1 + $0x30] ss:$8 sps:$4 sm:$0xff]   ;;  %v12009_v38 = vld [vmem:[%s16382_s1 + $0x24] ss:$8 sps:$4 sm:$0xff]  }
0x10b2   : > { %v12024_v55 = vld [vmem:[#allocation27 + $0xc4] ss:$16 sps:$4 sm:$0xff]   ;;  %10251 = vmatpush1.bf16.msra.mxu1 %v12023_v53  ;;  %v12029_v52 = vld [vmem:[#allocation27 + $0xc0] ss:$16 sps:$4 sm:$0xff]   ;;  %v12020_v45 = vld [vmem:[#allocation27 + $0xe8] ss:$16 sps:$4 sm:$0xff]  }
0x10b3   : > { %9824 = vmatpush1.bf16.msra.mxu0 %v11999_v63  ;;  %10252 = vmatprep.subr.bf16.mxu1 %v12024_v55  ;;  %v12030_v57 = vld [vmem:[#allocation27 + $0xa4] ss:$16 sps:$4 sm:$0xff]   ;;  %v12035_v30 = vld [vmem:[#allocation27 + $0xa0] ss:$16 sps:$4 sm:$0xff]   ;;  %v12028_v56 = vld [vmem:[#allocation27 + $0xcc] ss:$16 sps:$4 sm:$0xff]  }
0x10b4   : > { %9825 = vmatprep.subr.bf16.mxu0 %v12000_v46  ;;  %v12011_v5 = vld [vmem:[%s16382_s1 + $0x20] ss:$8 sps:$4 sm:$0xff]   ;;  %v12012_v48 = vld [vmem:[%s16382_s1 + $0x14] ss:$8 sps:$4 sm:$0xff]   ;;  %v12014_v27 = vld [vmem:[%s16382_s1 + $0x10] ss:$8 sps:$4 sm:$0xff]  }
0x10b5   : > { %v12036_v28 = vld [vmem:[#allocation27 + $0x84] ss:$16 sps:$4 sm:$0xff]   ;;  %v12041_v11 = vld [vmem:[#allocation27 + $0x80] ss:$16 sps:$4 sm:$0xff]   ;;  %v12026_v51 = vld [vmem:[#allocation27 + $0xc8] ss:$16 sps:$4 sm:$0xff]  }
0x10b6   : > { %10253 = vmatpush1.bf16.msra.mxu1 %v12029_v52  ;;  %v12015_v37 = vld [vmem:[%s16382_s1 + $0x4] ss:$8 sps:$4 sm:$0xff]   ;;  %v12017_v31 = vld [vmem:[%s16382_s1] ss:$8 sps:$4 sm:$0xff]  }
0x10b7   : > { %9826 = vmatpush1.bf16.msra.mxu0 %v12002_v60  ;;  %10254 = vmatprep.subr.bf16.mxu1 %v12030_v57  ;;  %v12042_v20 = vld [vmem:[#allocation27 + $0x64] ss:$16 sps:$4 sm:$0xff]   ;;  %v12047_v18 = vld [vmem:[#allocation27 + $0x60] ss:$16 sps:$4 sm:$0xff]   ;;  %v12034_v58 = vld [vmem:[#allocation27 + $0xac] ss:$16 sps:$4 sm:$0xff]  }
0x10b8   : > { %9827 = vmatprep.subr.bf16.mxu0 %v12003_v26  ;;  %v12048_v15 = vld [vmem:[#allocation27 + $0x44] ss:$16 sps:$4 sm:$0xff]   ;;  %v12053_v4 = vld [vmem:[#allocation27 + $0x40] ss:$16 sps:$4 sm:$0xff]   ;;  %v12032_v24 = vld [vmem:[#allocation27 + $0xa8] ss:$16 sps:$4 sm:$0xff]  }
0x10b9   : > { %v12054_v19 = vld [vmem:[#allocation27 + $0x24] ss:$16 sps:$4 sm:$0xff]   ;;  %v12059_v13 = vld [vmem:[#allocation27 + $0x20] ss:$16 sps:$4 sm:$0xff]   ;;  %v12040_v17 = vld [vmem:[#allocation27 + $0x8c] ss:$16 sps:$4 sm:$0xff]  }
0x10ba   : > { %10255 = vmatpush1.bf16.msra.mxu1 %v12035_v30  ;;  %v12060_v23 = vld [vmem:[#allocation27 + $0x4] ss:$16 sps:$4 sm:$0xff]   ;;  %v12065_v59 = vld [vmem:[#allocation27] ss:$16 sps:$4 sm:$0xff]   ;;  %v12038_v3 = vld [vmem:[#allocation27 + $0x88] ss:$16 sps:$4 sm:$0xff]  }
0x10bb   : > { %9828 = vmatpush1.bf16.msra.mxu0 %v12005_v34  ;;  %10256 = vmatprep.subr.bf16.mxu1 %v12036_v28  ;;  %v12066_v7 = vld [vmem:[#allocation27 + $0x1e4] ss:$16 sps:$4 sm:$0xff]   ;;  %v12071_v35 = vld [vmem:[#allocation27 + $0x1e0] ss:$16 sps:$4 sm:$0xff]   ;;  %v12046_v47 = vld [vmem:[#allocation27 + $0x6c] ss:$16 sps:$4 sm:$0xff]  }
0x10bc   : > { %9829 = vmatprep.subr.bf16.mxu0 %v12006_v40  ;;  %v12072_v2 = vld [vmem:[#allocation27 + $0x1c4] ss:$16 sps:$4 sm:$0xff]   ;;  %v12044_v16 = vld [vmem:[#allocation27 + $0x68] ss:$16 sps:$4 sm:$0xff]   ;;  %v12052_v50 = vld [vmem:[#allocation27 + $0x4c] ss:$16 sps:$4 sm:$0xff]  }
0x10bd   : > { %v12077_v54 = vld [vmem:[#allocation27 + $0x1c0] ss:$16 sps:$4 sm:$0xff]   ;;  %v12078_v25 = vld [vmem:[#allocation27 + $0x1a4] ss:$16 sps:$4 sm:$0xff]   ;;  %v12050_v39 = vld [vmem:[#allocation27 + $0x48] ss:$16 sps:$4 sm:$0xff]  }
0x10be   : > { %10257 = vmatpush1.bf16.msra.mxu1 %v12041_v11  ;;  %v12083_v41 = vld [vmem:[#allocation27 + $0x1a0] ss:$16 sps:$4 sm:$0xff]   ;;  %v12058_v43 = vld [vmem:[#allocation27 + $0x2c] ss:$16 sps:$4 sm:$0xff]   ;;  %v12084_v9 = vld [vmem:[#allocation27 + $0x184] ss:$16 sps:$4 sm:$0xff]  }
0x10bf   : > { %9830 = vmatpush1.bf16.msra.mxu0 %v12008_v12  ;;  %10258 = vmatprep.subr.bf16.mxu1 %v12042_v20  ;;  %v12056_v61 = vld [vmem:[#allocation27 + $0x28] ss:$16 sps:$4 sm:$0xff]   ;;  %v12089_v22 = vld [vmem:[#allocation27 + $0x180] ss:$16 sps:$4 sm:$0xff]   ;;  %v12064_v0 = vld [vmem:[#allocation27 + $0xc] ss:$16 sps:$4 sm:$0xff]  }
0x10c0   : > { %9831 = vmatprep.subr.bf16.mxu0 %v12009_v38  ;;  %v12090_v33 = vld [vmem:[#allocation27 + $0x164] ss:$16 sps:$4 sm:$0xff]   ;;  %v12062_v1 = vld [vmem:[#allocation27 + $0x8] ss:$16 sps:$4 sm:$0xff]   ;;  %v12095_v10 = vld [vmem:[#allocation27 + $0x160] ss:$16 sps:$4 sm:$0xff]  }
0x10c1   : > { %v12070_v14 = vld [vmem:[#allocation27 + $0x1ec] ss:$16 sps:$4 sm:$0xff]   ;;  %v12096_v6 = vld [vmem:[#allocation27 + $0x144] ss:$16 sps:$4 sm:$0xff]   ;;  %v12068_v49 = vld [vmem:[#allocation27 + $0x1e8] ss:$16 sps:$4 sm:$0xff]  }
0x10c2   : > { %10259 = vmatpush1.bf16.msra.mxu1 %v12047_v18  ;;  %v12101_v42 = vld [vmem:[#allocation27 + $0x140] ss:$16 sps:$4 sm:$0xff]   ;;  %v12076_v21 = vld [vmem:[#allocation27 + $0x1cc] ss:$16 sps:$4 sm:$0xff]   ;;  %v12074_v36 = vld [vmem:[#allocation27 + $0x1c8] ss:$16 sps:$4 sm:$0xff]  }
0x10c3   : > { %9832 = vmatpush1.bf16.msra.mxu0 %v12011_v5  ;;  %10260 = vmatprep.subr.bf16.mxu1 %v12048_v15  ;;  %v12082_v62 = vld [vmem:[#allocation27 + $0x1ac] ss:$16 sps:$4 sm:$0xff]   ;;  %v12080_v44 = vld [vmem:[#allocation27 + $0x1a8] ss:$16 sps:$4 sm:$0xff]   ;;  %v12102_v40 = vld [vmem:[#allocation27 + $0x124] ss:$16 sps:$4 sm:$0xff]  }
0x10c4   : > { %9833 = vmatprep.subr.bf16.mxu0 %v12012_v48  ;;  %v12088_v63 = vld [vmem:[#allocation27 + $0x18c] ss:$16 sps:$4 sm:$0xff]   ;;  %v12086_v46 = vld [vmem:[#allocation27 + $0x188] ss:$16 sps:$4 sm:$0xff]   ;;  %v12107_v12 = vld [vmem:[#allocation27 + $0x120] ss:$16 sps:$4 sm:$0xff]  }
0x10c5   : > { %v12094_v60 = vld [vmem:[#allocation27 + $0x16c] ss:$16 sps:$4 sm:$0xff]   ;;  %v12092_v26 = vld [vmem:[#allocation27 + $0x168] ss:$16 sps:$4 sm:$0xff]   ;;  %v12108_v38 = vld [vmem:[#allocation27 + $0x104] ss:$16 sps:$4 sm:$0xff]  }
0x10c6   : > { %10261 = vmatpush1.bf16.msra.mxu1 %v12053_v4  ;;  %v12100_v34 = vld [vmem:[#allocation27 + $0x14c] ss:$16 sps:$4 sm:$0xff]   ;;  %v12098_v8 = vld [vmem:[#allocation27 + $0x148] ss:$16 sps:$4 sm:$0xff]   ;;  %v12113_v5 = vld [vmem:[#allocation27 + $0x100] ss:$16 sps:$4 sm:$0xff]  }
0x10c7   : > { %9834 = vmatpush1.bf16.msra.mxu0 %v12014_v27  ;;  %10262 = vmatprep.subr.bf16.mxu1 %v12054_v19  ;;  %v12106_v53 = vld [vmem:[#allocation27 + $0x12c] ss:$16 sps:$4 sm:$0xff]   ;;  %v12104_v55 = vld [vmem:[#allocation27 + $0x128] ss:$16 sps:$4 sm:$0xff]   ;;  %v12118_v15 = vld [vmem:[#allocation28 + $0x70] sm:$0xff]  }
0x10c8   : > { %9835 = vmatprep.subr.bf16.mxu0 %v12015_v37  ;;  %v12112_v52 = vld [vmem:[#allocation27 + $0x10c] ss:$16 sps:$4 sm:$0xff]   ;;  %v12110_v57 = vld [vmem:[#allocation27 + $0x108] ss:$16 sps:$4 sm:$0xff]  }
0x10c9   : > { %v12114_v30 = vld [vmem:[#allocation28 + $0x78] sm:$0xff]   ;;  %v12122_v4 = vld [vmem:[#allocation28 + $0x68] sm:$0xff]  }
0x10ca   : > { %10263 = vmatpush1.bf16.msra.mxu1 %v12059_v13  ;;  %v12115_v48 = vld [vmem:[#allocation28 + $0xf8] sm:$0xff]   ;;  %v12123_v19 = vld [vmem:[#allocation28 + $0xe8] sm:$0xff]  }
0x10cb   : > { %9836 = vmatpush1.bf16.msra.mxu0 %v12017_v31  ;;  %10264 = vmatprep.subr.bf16.mxu1 %v12060_v23  ;;  %v12116_v31 = vld [vmem:[#allocation28 + $0x38] sm:$0xff]   ;;  %v12125_v13 = vld [vmem:[#allocation28 + $0xa8] sm:$0xff]   ;;  %v12127_v23 = vld [vmem:[#allocation28 + $0xe0] sm:$0xff]  }
0x10cc   : > { %10293 = vmatprep.subr.bf16.mxu0 %v12022_v32  ;;  %v12117_v18 = vld [vmem:[#allocation28 + $0xb8] sm:$0xff]  }
0x10ce   : > { %9854 = vmatmul.mubr.bf16.vlgmr.msra.gmra.mxu0 %v9724_v29  ;;  %10265 = vmatpush1.bf16.msra.mxu1 %v12065_v59  ;;  %v12119_v29 = vld [vmem:[#allocation28 + $0xf0] sm:$0xff]   ;;  %v12130_v59 = vld [vmem:[#allocation28 + $0x58] sm:$0xff]  }
0x10cf   : > { %10294 = vmatpush1.bf16.msra.mxu0 %v12020_v45  ;;  %10266 = vmatprep.subr.bf16.mxu1 %v12066_v7  ;;  %v12120_v45 = vld [vmem:[#allocation28 + $0x30] sm:$0xff]   ;;  %v12131_v7 = vld [vmem:[#allocation28 + $0xd8] sm:$0xff]  }
0x10d0   : > { %10295 = vmatprep.subr.bf16.mxu0 %v12028_v56  ;;  %v12121_v56 = vld [vmem:[#allocation28 + $0xb0] sm:$0xff]  }
0x10d2   : > { %10267 = vmatpush2.bf16.msra.mxu1 %v12071_v35  ;;  %v12133_v35 = vld [vmem:[#allocation28 + $0x98] sm:$0xff]  }
0x10d3   : > { %10296 = vmatpush1.bf16.msra.mxu0 %v12026_v51  ;;  %10268 = vmatprep.subr.bf16.mxu1 %v12072_v2  ;;  %v12124_v51 = vld [vmem:[#allocation28 + $0x28] sm:$0xff]   ;;  %v12135_v2 = vld [vmem:[#allocation28 + $0xd0] sm:$0xff]  }
0x10d4   : > { %10297 = vmatprep.subr.bf16.mxu0 %v12034_v58  ;;  %v12126_v58 = vld [vmem:[#allocation28 + $0x60] sm:$0xff]  }
0x10d6   : > { %10269 = vmatpush2.bf16.msra.mxu1 %v12077_v54  ;;  %v12138_v54 = vld [vmem:[#allocation28 + $0x48] sm:$0xff]  }
0x10d7   : > { %10298 = vmatpush1.bf16.msra.mxu0 %v12032_v24  ;;  %10270 = vmatprep.subr.bf16.mxu1 %v12078_v25  ;;  %v12128_v24 = vld [vmem:[#allocation28 + $0x20] sm:$0xff]   ;;  %v12139_v25 = vld [vmem:[#allocation28 + $0xc8] sm:$0xff]  }
0x10d8   : > { %10299 = vmatprep.subr.bf16.mxu0 %v12040_v17  ;;  %v12129_v17 = vld [vmem:[#allocation28 + $0xa0] sm:$0xff]  }
0x10da   : > { %10271 = vmatpush2.bf16.msra.mxu1 %v12083_v41  ;;  %v12141_v41 = vld [vmem:[#allocation28 + $0x88] sm:$0xff]  }
0x10db   : > { %10300 = vmatpush1.bf16.msra.mxu0 %v12038_v3  ;;  %10272 = vmatprep.subr.bf16.mxu1 %v12084_v9  ;;  %v12132_v3 = vld [vmem:[#allocation28 + $0x18] sm:$0xff]   ;;  %v12143_v9 = vld [vmem:[#allocation28 + $0xc0] sm:$0xff]  }
0x10dc   : > { %10301 = vmatprep.subr.bf16.mxu0 %v12046_v47  ;;  %v12134_v47 = vld [vmem:[#allocation28 + $0x50] sm:$0xff]  }
0x10de   : > { %10273 = vmatpush2.bf16.msra.mxu1 %v12089_v22  ;;  %v12145_v22 = vld [vmem:[#allocation28 + $0x80] sm:$0xff]  }
0x10df   : > { %10302 = vmatpush1.bf16.msra.mxu0 %v12044_v16  ;;  %10274 = vmatprep.subr.bf16.mxu1 %v12090_v33  ;;  %v12136_v16 = vld [vmem:[#allocation28 + $0x10] sm:$0xff]  }
0x10e0   : > { %10303 = vmatprep.subr.bf16.mxu0 %v12052_v50  ;;  %v12137_v50 = vld [vmem:[#allocation28 + $0x90] sm:$0xff]  }
0x10e2   : > { %10275 = vmatpush2.bf16.msra.mxu1 %v12095_v10 }
0x10e3   : > { %10304 = vmatpush1.bf16.msra.mxu0 %v12050_v39  ;;  %10276 = vmatprep.subr.bf16.mxu1 %v12096_v6  ;;  %v12140_v39 = vld [vmem:[#allocation28 + $0x8] sm:$0xff]  }
0x10e4   : > { %10305 = vmatprep.subr.bf16.mxu0 %v12058_v43  ;;  %v12142_v43 = vld [vmem:[#allocation28 + $0x40] sm:$0xff]  }
0x10e6   : > { %10277 = vmatpush2.bf16.msra.mxu1 %v12101_v42 }
0x10e7   : > { %10306 = vmatpush1.bf16.msra.mxu0 %v12056_v61  ;;  %10278 = vmatprep.subr.bf16.mxu1 %v12102_v40  ;;  %v12144_v61 = vld [vmem:[#allocation28] sm:$0xff]  }
0x10e8   : > { %10307 = vmatprep.subr.bf16.mxu0 %v12064_v0 }
0x10ea   : > { %10279 = vmatpush2.bf16.msra.mxu1 %v12107_v12 }
0x10eb   : > { %10308 = vmatpush1.bf16.msra.mxu0 %v12062_v1  ;;  %10280 = vmatprep.subr.bf16.mxu1 %v12108_v38 }
0x10ec   : > { %10309 = vmatprep.subr.bf16.mxu0 %v12070_v14 }
0x10ee   : > { %10281 = vmatpush2.bf16.msra.mxu1 %v12113_v5 }
0x10ef   : > { %10310 = vmatpush2.bf16.msra.mxu0 %v12068_v49  ;;  %11485 = vmatprep.subr.bf16.mxu1 %v12114_v30 }
0x10f0   : > { %10311 = vmatprep.subr.bf16.mxu0 %v12076_v21 }
0x10f3   : > { %10312 = vmatpush2.bf16.msra.mxu0 %v12074_v36 }
0x10f4   : > { %10313 = vmatprep.subr.bf16.mxu0 %v12082_v62 }
0x10f7   : > { %10314 = vmatpush2.bf16.msra.mxu0 %v12080_v44 }
0x10f8   : > { %10315 = vmatprep.subr.bf16.mxu0 %v12088_v63 }
0x10fb   : > { %10316 = vmatpush2.bf16.msra.mxu0 %v12086_v46 }
0x10fc   : > { %10317 = vmatprep.subr.bf16.mxu0 %v12094_v60 }
0x10ff   : > { %10318 = vmatpush2.bf16.msra.mxu0 %v12092_v26 }
0x1100   : > { %10319 = vmatprep.subr.bf16.mxu0 %v12100_v34 }
0x1103   : > { %10320 = vmatpush2.bf16.msra.mxu0 %v12098_v8 }
0x1104   : > { %10321 = vmatprep.subr.bf16.mxu0 %v12106_v53 }
0x1107   : > { %10322 = vmatpush2.bf16.msra.mxu0 %v12104_v55 }
0x1108   : > { %10323 = vmatprep.subr.bf16.mxu0 %v12112_v52 }
0x110b   : > { %10324 = vmatpush2.bf16.msra.mxu0 %v12110_v57 }
0x110c   : > { %11507 = vmatprep.subr.bf16.mxu0 %v12115_v48 }
0x118e   : > { %v9855_v28 = vpop.f32.mrf.mxu0 }
0x1190   : > { %v9857_v27 = vpop.f32.mrf.mxu0 }
0x1192   : > { %v9859_v37 = vpop.f32.mrf.mxu0 }
0x1193   : > { %v9864_v32 = vpack.c.bf16 %v9859_v37, %v9855_v28 }
0x1194   : > { %v9861_v11 = vpop.f32.mrf.mxu0 }
0x1195   : > { %v9865_v20 = vpack.c.bf16 %v9861_v11, %v9857_v27 }
0x1197   : > { %10282 = vmatprep.mubr.bf16.mxu1 %v9865_v20  ;;  %10325 = vmatprep.mubr.bf16.mxu0 %v9865_v20 }
0x1198   : > { %10283 = vmatmul.mubr.bf16.vlgmr.msra.gmra.mxu1 %v9864_v32  ;;  %10326 = vmatmul.mubr.bf16.vlgmr.msra.gmra.mxu0 %v9864_v32 }
0x1199   : > { %11486 = vmatpush3.bf16.msra.mxu1 %v12116_v31  ;;  %11508 = vmatpush3.bf16.msra.mxu0 %v12117_v18 }
0x119a   : > { %11487 = vmatprep.subr.bf16.mxu1 %v12118_v15  ;;  %11509 = vmatprep.subr.bf16.mxu0 %v12119_v29 }
0x119d   : > { %11488 = vmatpush3.bf16.msra.mxu1 %v12120_v45  ;;  %11510 = vmatpush3.bf16.msra.mxu0 %v12121_v56 }
0x119e   : > { %11489 = vmatprep.subr.bf16.mxu1 %v12122_v4  ;;  %11511 = vmatprep.subr.bf16.mxu0 %v12123_v19 }
0x11a1   : > { %11490 = vmatpush3.bf16.msra.mxu1 %v12124_v51  ;;  %11512 = vmatpush3.bf16.msra.mxu0 %v12125_v13 }
0x11a2   : > { %11491 = vmatprep.subr.bf16.mxu1 %v12126_v58  ;;  %11513 = vmatprep.subr.bf16.mxu0 %v12127_v23 }
0x11a5   : > { %11492 = vmatpush3.bf16.msra.mxu1 %v12128_v24  ;;  %11514 = vmatpush3.bf16.msra.mxu0 %v12129_v17 }
0x11a6   : > { %11493 = vmatprep.subr.bf16.mxu1 %v12130_v59  ;;  %11515 = vmatprep.subr.bf16.mxu0 %v12131_v7 }
0x11a9   : > { %11494 = vmatpush3.bf16.msra.mxu1 %v12132_v3  ;;  %11516 = vmatpush3.bf16.msra.mxu0 %v12133_v35 }
0x11aa   : > { %11495 = vmatprep.subr.bf16.mxu1 %v12134_v47  ;;  %11517 = vmatprep.subr.bf16.mxu0 %v12135_v2 }
0x11ad   : > { %11496 = vmatpush3.bf16.msra.mxu1 %v12136_v16  ;;  %11518 = vmatpush3.bf16.msra.mxu0 %v12137_v50 }
0x11ae   : > { %11497 = vmatprep.subr.bf16.mxu1 %v12138_v54  ;;  %11519 = vmatprep.subr.bf16.mxu0 %v12139_v25 }
0x11b1   : > { %11498 = vmatpush3.bf16.msra.mxu1 %v12140_v39  ;;  %11520 = vmatpush3.bf16.msra.mxu0 %v12141_v41 }
0x11b2   : > { %11499 = vmatprep.subr.bf16.mxu1 %v12142_v43  ;;  %11521 = vmatprep.subr.bf16.mxu0 %v12143_v9 }
0x11b5   : > { %11500 = vmatpush3.bf16.msra.mxu1 %v12144_v61  ;;  %11522 = vmatpush3.bf16.msra.mxu0 %v12145_v22 }
0x1258   : > { %v10284_v0 = vpop.f32.mrf.mxu1  ;;  %v10327_v33 = vpop.f32.mrf.mxu0 }
0x125a   : > { %v10286_v1 = vpop.f32.mrf.mxu1  ;;  %v10329_v10 = vpop.f32.mrf.mxu0 }
0x125c   : > { %v10288_v14 = vpop.f32.mrf.mxu1  ;;  %v10331_v6 = vpop.f32.mrf.mxu0 }
0x125d   : > { %v10336_v62 = vpack.c.bf16 %v10288_v14, %v10284_v0  ;;  %v10338_v44 = vpack.c.bf16 %v10331_v6, %v10327_v33 }
0x125e   : > { %v10290_v49 = vpop.f32.mrf.mxu1  ;;  %v10333_v42 = vpop.f32.mrf.mxu0 }
0x125f   : > { %v10337_v21 = vpack.c.bf16 %v10290_v49, %v10286_v1  ;;  %v10339_v36 = vpack.c.bf16 %v10333_v42, %v10329_v10 }
0x1261   : > { %10628 = vmatprep.mubr.bf16.mxu1 %v10337_v21  ;;  %10669 = vmatprep.mubr.bf16.mxu0 %v10339_v36 }
0x1262   : > { %10629 = vmatmul.mubr.bf16.vlgmr.msra.gmra.mxu1 %v10336_v62  ;;  %10670 = vmatmul.mubr.bf16.vlgmr.msra.gmra.mxu0 %v10338_v44 }
0x1322   : > { %v11501_v63 = vpop.f32.mrf.mxu1  ;;  %v11523_v46 = vpop.f32.mrf.mxu0 }
0x1324   : > { %v11502_v60 = vpop.f32.mrf.mxu1  ;;  %v11524_v26 = vpop.f32.mrf.mxu0 }
0x1325   : > { %v11503_v34 = vadd.f32 %v11502_v60, %v11501_v63  ;;  %v11525_v8 = vadd.f32 %v11524_v26, %v11523_v46 }
0x1326   : > { %v11504_v40 = vpop.f32.mrf.mxu1  ;;  %v11526_v53 = vpop.f32.mrf.mxu0 }
0x1327   : > { %v10672_v55 = vadd.f32 %v11525_v8, %v11503_v34 }
0x1328   : > { %v11505_v12 = vpop.f32.mrf.mxu1  ;;  %v11527_v38 = vpop.f32.mrf.mxu0 }
0x1329   : > { %10678 = vst [vmem:[%s13483_s9] sm:$0xff] %v10672_v55  ;;  %v11506_v52 = vadd.f32 %v11505_v12, %v11504_v40  ;;  %v11528_v57 = vadd.f32 %v11527_v38, %v11526_v53 }
0x132b   : > { %v10675_v5 = vadd.f32 %v11528_v57, %v11506_v52 }
0x132d   : > { %10679 = vst [vmem:[%s13483_s9 + $0x8] sm:$0xff] %v10675_v5 }
0x132e PF: > { %s16383_s6 = sld [smem:[#allocation42_spill]]  ;;  %s10694_s10 = sshll.u32 %s13483_s9, 4  ;;  %s15867_s10 = int_to_ptr.vmem [resolvable:$true] %s10694_s10 }
0x132f   : > { %s16384_s17 = sld [smem:[#allocation50_spill]]  ;;  %s10681_s29 = scalar_lea.sflag [#allocation5], %s13417_s12 }
0x1330   : > { %s16385_s28 = sld [smem:[#allocation105_spill]]  ;;  %s12692_s4 = scalar_lea.vmem %s15867_s10, 256 }
0x1331   : > { %p12693_p13 = scmp.ne.s32.totalorder %s15867_s10, %s12692_s4  ;;  %s12878_s18 = smov [#allocation29]  }
0x1332   : > { %s12696_s20 = sshll.u32 %s12878_s18, 4  ;;  %s12697_s20 = int_to_ptr.vmem [resolvable:$false] %s12696_s20 }
0x1333   : > { %s12698_s22 = scalar_lea.vmem %s12697_s20, 512  ;;  %p12699_p7 = scmp.lt.s32.totalorder %s15867_s10, %s12697_s20 }
0x1334   : > { %s11397_s16 = sshll.u32 %s16383_s6, 8  ;;  %p12700_p1 = scmp.lt.s32.totalorder %s12698_s22, %s12692_s4 }
0x1335   : > { %p16387_p12 = scmp.ne.s32.totalorder %s16384_s17, 0 }
0x1336   : > { %s16386_s24 = smov %s16385_s28  ;;  %s15864_s26 = scalar_lea.hbm %s16385_s28, %s11397_s16 }
0x1337   : > { %p12694_p11 = pnand %p12693_p13, %p16387_p12  ;;  %p12701_p5 = por %p12700_p1, %p12699_p7 }
0x1339   : > { %p12695_p4 = pneg %p12694_p11 }
0x133b   : > { %p12702_p0 = pnand %p12701_p5, %p12695_p4 }
0x133d   : > { %12705 = shalt.err (!%p12702_p0)
}
0x133e   : > { %s12706_s9 = scalar_lea.hbm %s15864_s26, 256  ;;  %s12710_s25 = scalar_lea.hbm %s16386_s24, 512 }
0x133f   : > { %p12707_p6 = scmp.ne.s32.totalorder %s15864_s26, %s12706_s9  ;;  %p12711_p3 = scmp.lt.s32.totalorder %s15864_s26, %s16386_s24 }
0x1340   : > { %p12712_p10 = scmp.lt.s32.totalorder %s12710_s25, %s12706_s9 }
0x1341   : > { %p12708_p8 = pnand %p12707_p6, %p16387_p12 }
0x1342   : > { %p12713_p2 = por %p12712_p10, %p12711_p3 }
0x1343   : > { %p12709_p9 = pneg %p12708_p8 }
0x1345   : > { %p12714_p13 = pnand %p12713_p2, %p12709_p9 }
0x1347   : > { %12717 = shalt.err (!%p12714_p13)
}
0x1348   : > { %s12879_s8 = smov 128   ;;  %s12880_s6 = smov 8  }
0x1349   : > { %11727 = dma.vmem_to_hbm [thread:$0]  (%p16387_p12), %s15867_s10, 256, %s15864_s26, %s10681_s29, %s12879_s8, %s12879_s8, %s12880_s6  }
0x134a PF: > { %s16388_s16 = sld [smem:[#allocation39_spill]]  ;;  %p11769_p11 = scmp.ge.s32.totalorder %s12836_s3, 2 }
0x134b   : > { %s16389_s21 = sld [smem:[#allocation51_spill]] }
0x1350   : > { %s10709_s19 = sand.u32 1, %s16388_s16  }
0x1351   : > { %p16390_p4 = scmp.ne.s32.totalorder %s16389_s21, 0  ;;  %s10710_s28 = scalar_lea.sflag [#allocation5], %s10709_s19 }
0x1353   : > { %p11752_p7 = pnand %p11769_p11, %p16390_p4 }
0x1355   : > { %p11753_p1 = pneg %p11752_p7 }
0x1357   : > { %12791 = dma.done.wait (%p11753_p1), %s10710_s28, 256  }
0x1358   : > { %12793 = vsyncadd (%p11753_p1), %s10710_s28, 4294967040  ;;  %s43_s3 = sadd.s32 1, %s12836_s3   ;;  %s16391_s5 = sld [smem:[#allocation38_spill]] }
0x1359   : > { %p40_p5 = scmp.ge.s32.totalorder %s43_s3, 6   ;;  %s16392_s17 = sld [smem:[#allocation47_spill]] }
0x135a   : > { %s16393_s28 = sld [smem:[#allocation40_spill]]  ;;  %s16397_s26 = smov %s12804_s27 }
0x135b   : > { %s16394_s12 = sld [smem:[#allocation48_spill]]  ;;  %s16399_s6 = smov %s12816_s2 }
0x135c   : > { %s16395_s10 = sld [smem:[#allocation44_spill]]  ;;  %s16401_s29 = smov %s12828_s7 }
0x135d   : > { %s16396_s4 = sld [smem:[#allocation45_spill]]  ;;  %s16402_s0 = smov %s12832_s30 }
0x135f   : > { %s16398_s27 = smov %s16392_s17  ;;  %42 = sbr.rel (!%p40_p5) target bundleno = 36 (0x24), region = 346 }
0x1361   : > { %s16400_s2 = smov %s16394_s12 }
0x1362   : > { %s16403_s7 = smov %s16395_s10 }
0x1363   : > { %s16404_s30 = smov %s16396_s4 }
0x1364   :  { %10715 = vsyncpa [#allocation4], 1 }
0x1365   :  { %10717 = vsyncpa [#allocation4 + $0x1], 1 }
0x1366   :  { %10718 = vsyncpa [#allocation7], 1 }
0x1367   :  { %10719 = vsyncpa [#allocation10], 1 }
0x1368   :  { %10720 = vsyncpa [#allocation13], 1 }
0x1369   :  { %10721 = vsyncpa [#allocation5], 1 }
0x136a   :  { %10723 = vsyncpa [#allocation5 + $0x1], 1 }

</bundles_post_ra>
